<compile_context>
chip_gen: v7x
topology: tpu7x:2x2x1
jax: 0.10.0
libtpu: 0.0.40
codegen_flags: <defaults>
</compile_context>

<pallas_src>
import math
import functools

import jax
import jax.numpy as jnp
import numpy as np
from jax.experimental import pallas as pl
from jax.experimental.pallas import tpu as pltpu

GROUPS = 32      # normalization() == GroupNorm32(32, channels)
EPS = 1e-5


def _pick_tile(T):
    """Token-axis (lane) tile length for q and kv tiles."""
    assert T % 128 == 0, "H*W must be a multiple of 128 for lane-dense tiles"
    return 256 if (T % 256 == 0 and T >= 512) else 128


def attention_block_kernel(x_ref, gamma_ref, beta_ref, wqkv_ref, bqkv_ref,
                           wproj_ref, bproj_ref, out_ref, qkv_scr,
                           *, num_heads, tile):
    C = gamma_ref.shape[0]
    T = x_ref.shape[-1]
    H = num_heads
    ch = C // H
    cpg = C // GROUPS
    nk = T // tile
    qt = pl.program_id(1)

    # ----------------- per-image prologue (first q-tile only) ---------------
    # GroupNorm statistics + the full qkv 1x1 conv, written once per batch
    # element into the persistent bf16 scratch, reused by all q-tiles.
    @pl.when(qt == 0)
    def _prologue():
        x = x_ref[0]                                        # (C, T) f32
        # Per-channel moments via lane reductions (native layout) ...
        s1 = jnp.sum(x, axis=-1, keepdims=True)             # (C, 1)
        s2 = jnp.sum(x * x, axis=-1, keepdims=True)         # (C, 1)

        # ... combined inside each GroupNorm group by a tiny sublane-split
        # reshape + reduce on the (C,1) vectors (no (C,C) indicator matmul,
        # no reshape of the big (C,T) tile).
        def group_total(v):                                 # (C,1) -> (C,1) group totals
            g = jnp.sum(v.reshape(GROUPS, cpg, 1), axis=1, keepdims=True)
            return jnp.broadcast_to(g, (GROUPS, cpg, 1)).reshape(C, 1)

        inv_n = 1.0 / float(cpg * T)
        mean_c = group_total(s1) * inv_n
        ex2_c = group_total(s2) * inv_n
        var_c = jnp.maximum(ex2_c - mean_c * mean_c, 0.0)   # clamp E[x^2]-m^2 >= 0
        scale_c = jax.lax.rsqrt(var_c + EPS) * gamma_ref[...]
        shift_c = beta_ref[...] - mean_c * scale_c

        # qkv = W_qkv @ groupnorm(x) + b_qkv, column tile by column tile so the
        # f32 (3C, tile) intermediate stays small; stored as bf16.  W_qkv/b_qkv
        # rows were permuted host-side into [q | k | v] slabs and the attention
        # scale 1/sqrt(ch) was folded into the q rows.
        def qkv_tile(i, carry):
            c0 = pl.multiple_of(i * tile, 128)
            xn = (x_ref[0, :, pl.ds(c0, tile)] * scale_c + shift_c).astype(jnp.bfloat16)
            acc = jnp.dot(wqkv_ref[...], xn, preferred_element_type=jnp.float32)
            qkv_scr[:, pl.ds(c0, tile)] = (acc + bqkv_ref[...]).astype(jnp.bfloat16)
            return carry

        jax.lax.fori_loop(0, nk, qkv_tile, 0)

    # ----------------- flash attention for this q-tile ----------------------
    q0 = pl.multiple_of(qt * tile, 128)
    q_t = qkv_scr[pl.ds(0, C), pl.ds(q0, tile)].reshape(H, ch, tile)   # bf16, pre-scaled

    # scores[h, s, t]: softmax (kv) axis on sublanes so the running stats
    # (H, 1, tq) broadcast directly over the (H, ch, tq) accumulator.
    dn_scores = (((1,), (1,)), ((0,), (0,)))   # contract ch; batch over heads
    dn_apply = (((2,), (1,)), ((0,), (0,)))    # contract kv axis; batch over heads

    def kv_step(s, carry):
        m, l, acc = carry
        k0 = pl.multiple_of(s * tile, 128)
        k_s = qkv_scr[pl.ds(C, C), pl.ds(k0, tile)].reshape(H, ch, tile)
        v_s = qkv_scr[pl.ds(2 * C, C), pl.ds(k0, tile)].reshape(H, ch, tile)
        st = jax.lax.dot_general(k_s, q_t, dn_scores,
                                 preferred_element_type=jnp.float32)   # (H, tk, tq)
        m_new = jnp.maximum(m, jnp.max(st, axis=1, keepdims=True))     # (H, 1, tq)
        alpha = jnp.exp(m - m_new)
        p = jnp.exp(st - m_new)
        l_new = alpha * l + jnp.sum(p, axis=1, keepdims=True)
        pv = jax.lax.dot_general(v_s, p.astype(jnp.bfloat16), dn_apply,
                                 preferred_element_type=jnp.float32)   # (H, ch, tq)
        return m_new, l_new, alpha * acc + pv

    m0 = jnp.full((H, 1, tile), -jnp.inf, dtype=jnp.float32)
    l0 = jnp.zeros((H, 1, tile), dtype=jnp.float32)
    a0 = jnp.zeros((H, ch, tile), dtype=jnp.float32)
    _, l, acc = jax.lax.fori_loop(0, nk, kv_step, (m0, l0, a0))

    a_cols = (acc * pl.reciprocal(l, approx=True)).reshape(C, tile).astype(jnp.bfloat16)

    # ----------------- proj_out (1x1 conv) + residual for this q-tile -------
    h_cols = jnp.dot(wproj_ref[...], a_cols,
                     preferred_element_type=jnp.float32) + bproj_ref[...]
    out_ref[0] = x_ref[0, :, pl.ds(q0, tile)] + h_cols


def attention_block(x, params, num_heads):
    """x: (B, C, H, W) float32 (NCHW, as in PyTorch)."""
    B, C, Hs, Ws = x.shape
    T = Hs * Ws
    assert C % GROUPS == 0, "GroupNorm(32) requires C % 32 == 0"
    assert C % num_heads == 0
    ch = C // num_heads
    tile = _pick_tile(T)
    nq = T // tile

    x2 = x.reshape(B, C, T).astype(jnp.float32)

    gamma = params["gamma"].reshape(C, 1).astype(jnp.float32)
    beta = params["beta"].reshape(C, 1).astype(jnp.float32)

    # One-time host-side weight prep (O(C^2)):
    #  * permute qkv rows from the legacy (head, [q|k|v], ch) interleave into
    #    three contiguous [q | k | v] slabs, each in (head, ch) order;
    #  * fold the attention scale 1/sqrt(ch) (= 1/ch^0.25 applied to both q and
    #    k in QKVAttentionLegacy) into the q rows of weight and bias.
    perm = np.arange(3 * C).reshape(num_heads, 3, ch).transpose(1, 0, 2).reshape(3 * C)
    row_scale = np.ones((3 * C, 1), np.float32)
    row_scale[:C, :] = 1.0 / math.sqrt(ch)
    row_scale = jnp.asarray(row_scale)
    wqkv = (jnp.asarray(params["wqkv"], jnp.float32)[perm] * row_scale).astype(jnp.bfloat16)
    bqkv = jnp.asarray(params["bqkv"], jnp.float32).reshape(3 * C, 1)[perm] * row_scale
    wproj = params["wproj"].astype(jnp.bfloat16)
    bproj = params["bproj"].reshape(C, 1).astype(jnp.float32)

    # Advisory cost estimate (qkv + proj convs, scores, attention apply, exps).
    flops = B * (8 * C * C * T + 4 * C * T * T)
    transcendentals = B * num_heads * T * T
    bytes_accessed = B * C * T * 4 * 2 + (3 * C * C + C * C) * 2 + 8 * C * 4

    # Rough VMEM demand (x block + out block double-buffered, bf16 qkv scratch,
    # weights, score/acc tiles), with headroom; capped at 56 MiB so the same
    # config also fits v7x's 64 MiB physical VMEM.
    est = (2 * C * T * 4 + 2 * C * tile * 4 + 3 * C * T * 2
           + 2 * 4 * C * C * 2 + 3 * C * tile * 4
           + 3 * num_heads * tile * tile * 4 + 2 * C * tile * 4)
    vmem_limit = int(min(max(int(est * 1.5), 32 * 2 ** 20), 56 * 2 ** 20))

    kernel = functools.partial(attention_block_kernel, num_heads=num_heads, tile=tile)

    out = pl.pallas_call(
        kernel,
        out_shape=jax.ShapeDtypeStruct((B, C, T), jnp.float32),
        grid=(B, nq),
        in_specs=[
            pl.BlockSpec((1, C, T), lambda b, q: (b, 0, 0)),      # x (full image, resident)
            pl.BlockSpec((C, 1), lambda b, q: (0, 0)),            # gamma
            pl.BlockSpec((C, 1), lambda b, q: (0, 0)),            # beta
            pl.BlockSpec((3 * C, C), lambda b, q: (0, 0)),        # W_qkv (bf16, permuted+scaled)
            pl.BlockSpec((3 * C, 1), lambda b, q: (0, 0)),        # b_qkv (f32, permuted+scaled)
            pl.BlockSpec((C, C), lambda b, q: (0, 0)),            # W_proj (bf16)
            pl.BlockSpec((C, 1), lambda b, q: (0, 0)),            # b_proj
        ],
        out_specs=pl.BlockSpec((1, C, tile), lambda b, q: (b, 0, q)),
        scratch_shapes=[pltpu.VMEM((3 * C, T), jnp.bfloat16)],    # persistent bf16 qkv
        compiler_params=pltpu.CompilerParams(
            dimension_semantics=("parallel", "arbitrary"),
            vmem_limit_bytes=vmem_limit),
        cost_estimate=pl.CostEstimate(
            flops=int(flops), transcendentals=int(transcendentals),
            bytes_accessed=int(bytes_accessed)),
    )(x2, gamma, beta, wqkv, bqkv, wproj, bproj)

    return out.reshape(B, C, Hs, Ws)


def attention_block_reference(x, params, num_heads):
    """Pure-JAX (f32) mirror of the PyTorch AttentionBlock._forward."""
    B, C, Hs, Ws = x.shape
    T = Hs * Ws
    xf = x.reshape(B, C, T).astype(jnp.float32)

    g = xf.reshape(B, GROUPS, C // GROUPS, T)
    mean = g.mean(axis=(2, 3), keepdims=True)
    var = ((g - mean) ** 2).mean(axis=(2, 3), keepdims=True)
    xn = ((g - mean) / jnp.sqrt(var + EPS)).reshape(B, C, T)
    xn = xn * params["gamma"][None, :, None] + params["beta"][None, :, None]

    qkv = jnp.einsum("oc,bct->bot", params["wqkv"], xn) + params["bqkv"][None, :, None]

    ch = C // num_heads
    qkv_h = qkv.reshape(B * num_heads, 3 * ch, T)
    q, k, v = qkv_h[:, :ch], qkv_h[:, ch:2 * ch], qkv_h[:, 2 * ch:]
    scale = 1.0 / math.sqrt(math.sqrt(ch))
    w = jnp.einsum("bct,bcs->bts", q * scale, k * scale)
    w = jax.nn.softmax(w, axis=-1)
    a = jnp.einsum("bts,bcs->bct", w, v).reshape(B, C, T)

    h_out = jnp.einsum("oc,bct->bot", params["wproj"], a) + params["bproj"][None, :, None]
    return (xf + h_out).reshape(B, C, Hs, Ws)


if __name__ == "__main__":
    # GroupNorm(32, C) requires C % 32 == 0 -> C = 64; 16x16 spatial -> T = 256
    # (lane-dense; tile=128 so the q-tile grid and KV loop both run 2 steps).
    B, C, Hs, Ws = 2, 64, 16, 16
    num_heads = 2

    key = jax.random.PRNGKey(0)
    kx, k1, k2, k3, k4 = jax.random.split(key, 5)

    x = jax.random.normal(kx, (B, C, Hs, Ws), dtype=jnp.float32)

    # Deterministic parameter init (shapes from the module's __init__).
    # NOTE: the original module zero-initializes proj_out (zero_module); small
    # random values are used here so the full attention/proj path is exercised.
    params = {
        "gamma": jnp.ones((C,), jnp.float32),            # GroupNorm default affine
        "beta": jnp.zeros((C,), jnp.float32),
        "wqkv": 0.05 * jax.random.normal(k1, (3 * C, C), jnp.float32),
        "bqkv": 0.05 * jax.random.normal(k2, (3 * C,), jnp.float32),
        "wproj": 0.05 * jax.random.normal(k3, (C, C), jnp.float32),
        "bproj": 0.05 * jax.random.normal(k4, (C,), jnp.float32),
    }

    out = attention_block(x, params, num_heads)
    out = jax.block_until_ready(out)

    ref = attention_block_reference(x, params, num_heads)
    # bf16 MXU operands + approx reciprocal + online softmax + E[x^2]-mean^2
    # variance -> small drift vs the f32 reference; tolerance set accordingly.
    np.testing.assert_allclose(np.asarray(out), np.asarray(ref),
                               rtol=5e-3, atol=5e-3)

    print("KERNEL_OK")
</pallas_src>

<mosaic_0001>
module attributes {stable_mosaic.version = 11 : i64} {
  func.func @attention_block_kernel(%arg0: i32, %arg1: i32, %arg2: memref<1x64x256xf32, #tpu.memory_space<vmem>>, %arg3: memref<64x1xf32, #tpu.memory_space<vmem>>, %arg4: memref<64x1xf32, #tpu.memory_space<vmem>>, %arg5: memref<192x64xbf16, #tpu.memory_space<vmem>>, %arg6: memref<192x1xf32, #tpu.memory_space<vmem>>, %arg7: memref<64x64xbf16, #tpu.memory_space<vmem>>, %arg8: memref<64x1xf32, #tpu.memory_space<vmem>>, %arg9: memref<1x64x128xf32, #tpu.memory_space<vmem>>, %arg10: memref<192x256xbf16, #tpu.memory_space<vmem>>) attributes {dimension_semantics = [#tpu.dimension_semantics<parallel>, #tpu.dimension_semantics<arbitrary>], iteration_bounds = array<i64: 2, 2>, scalar_prefetch = 0 : i64, scratch_operands = 1 : i64, tpu.core_type = #tpu.core_type<tc>, window_params = [{transform_indices = @transform_0, window_bounds = array<i64: 1, 64, 256>}, {pipeline_mode = #tpu.pipeline_mode<synchronous>, transform_indices = @transform_1, window_bounds = array<i64: 64, 1>}, {pipeline_mode = #tpu.pipeline_mode<synchronous>, transform_indices = @transform_2, window_bounds = array<i64: 64, 1>}, {pipeline_mode = #tpu.pipeline_mode<synchronous>, transform_indices = @transform_3, window_bounds = array<i64: 192, 64>}, {pipeline_mode = #tpu.pipeline_mode<synchronous>, transform_indices = @transform_4, window_bounds = array<i64: 192, 1>}, {pipeline_mode = #tpu.pipeline_mode<synchronous>, transform_indices = @transform_5, window_bounds = array<i64: 64, 64>}, {pipeline_mode = #tpu.pipeline_mode<synchronous>, transform_indices = @transform_6, window_bounds = array<i64: 64, 1>}, {transform_indices = @transform_7, window_bounds = array<i64: 1, 64, 128>}]} {
    %c0_i32 = arith.constant 0 : i32
    %0 = arith.cmpi eq, %arg1, %c0_i32 : i32
    %1 = arith.extui %0 : i1 to i32
    %c0_i32_0 = arith.constant 0 : i32
    %2 = arith.cmpi ne, %1, %c0_i32_0 : i32
    scf.if %2 {
      %c0_15 = arith.constant 0 : index
      %c0_16 = arith.constant 0 : index
      %c0_17 = arith.constant 0 : index
      %30 = vector.load %arg2[%c0_15, %c0_16, %c0_17] : memref<1x64x256xf32, #tpu.memory_space<vmem>>, vector<1x64x256xf32>
      %31 = vector.shape_cast %30 : vector<1x64x256xf32> to vector<64x256xf32>
      %cst_18 = arith.constant dense<0.000000e+00> : vector<64xf32>
      %32 = vector.multi_reduction <add>, %31, %cst_18 [1] : vector<64x256xf32> to vector<64xf32>
      %33 = vector.shape_cast %32 : vector<64xf32> to vector<64x1xf32>
      %34 = arith.mulf %31, %31 : vector<64x256xf32>
      %cst_19 = arith.constant dense<0.000000e+00> : vector<64xf32>
      %35 = vector.multi_reduction <add>, %34, %cst_19 [1] : vector<64x256xf32> to vector<64xf32>
      %36 = vector.shape_cast %35 : vector<64xf32> to vector<64x1xf32>
      %37 = vector.shape_cast %33 : vector<64x1xf32> to vector<32x2x1xf32>
      %cst_20 = arith.constant dense<0.000000e+00> : vector<32x1xf32>
      %38 = vector.multi_reduction <add>, %37, %cst_20 [1] : vector<32x2x1xf32> to vector<32x1xf32>
      %39 = vector.shape_cast %38 : vector<32x1xf32> to vector<32x1x1xf32>
      %40 = vector.shape_cast %39 : vector<32x1x1xf32> to vector<32x1x1xf32>
      %41 = vector.broadcast %40 : vector<32x1x1xf32> to vector<32x2x1xf32>
      %42 = vector.shape_cast %41 : vector<32x2x1xf32> to vector<64x1xf32>
      %cst_21 = arith.constant 0.001953125 : f32
      %43 = vector.broadcast %cst_21 : f32 to vector<64x1xf32>
      %44 = arith.mulf %42, %43 : vector<64x1xf32>
      %45 = vector.shape_cast %36 : vector<64x1xf32> to vector<32x2x1xf32>
      %cst_22 = arith.constant dense<0.000000e+00> : vector<32x1xf32>
      %46 = vector.multi_reduction <add>, %45, %cst_22 [1] : vector<32x2x1xf32> to vector<32x1xf32>
      %47 = vector.shape_cast %46 : vector<32x1xf32> to vector<32x1x1xf32>
      %48 = vector.shape_cast %47 : vector<32x1x1xf32> to vector<32x1x1xf32>
      %49 = vector.broadcast %48 : vector<32x1x1xf32> to vector<32x2x1xf32>
      %50 = vector.shape_cast %49 : vector<32x2x1xf32> to vector<64x1xf32>
      %cst_23 = arith.constant 0.001953125 : f32
      %51 = vector.broadcast %cst_23 : f32 to vector<64x1xf32>
      %52 = arith.mulf %50, %51 : vector<64x1xf32>
      %53 = arith.mulf %44, %44 : vector<64x1xf32>
      %54 = arith.subf %52, %53 : vector<64x1xf32>
      %cst_24 = arith.constant 0.000000e+00 : f32
      %55 = vector.broadcast %cst_24 : f32 to vector<64x1xf32>
      %56 = arith.maximumf %54, %55 : vector<64x1xf32>
      %cst_25 = arith.constant 9.99999974E-6 : f32
      %57 = vector.broadcast %cst_25 : f32 to vector<64x1xf32>
      %58 = arith.addf %56, %57 : vector<64x1xf32>
      %59 = math.rsqrt %58 : vector<64x1xf32>
      %c0_26 = arith.constant 0 : index
      %c0_27 = arith.constant 0 : index
      %60 = vector.load %arg3[%c0_26, %c0_27] : memref<64x1xf32, #tpu.memory_space<vmem>>, vector<64x1xf32>
      %61 = arith.mulf %59, %60 : vector<64x1xf32>
      %c0_28 = arith.constant 0 : index
      %c0_29 = arith.constant 0 : index
      %62 = vector.load %arg4[%c0_28, %c0_29] : memref<64x1xf32, #tpu.memory_space<vmem>>, vector<64x1xf32>
      %63 = arith.mulf %44, %61 : vector<64x1xf32>
      %64 = arith.subf %62, %63 : vector<64x1xf32>
      %c0_i32_30 = arith.constant 0 : i32
      %c2_i32_31 = arith.constant 2 : i32
      %65 = arith.addi %c0_i32_30, %c2_i32_31 : i32
      %c1_i32_32 = arith.constant 1 : i32
      scf.for %arg11 = %c0_i32_30 to %65 step %c1_i32_32  : i32 {
        %c128_i32_34 = arith.constant 128 : i32
        %66 = arith.muli %arg11, %c128_i32_34 : i32
        %67 = tpu.assume_multiple %66, 128 : i32
        %c0_35 = arith.constant 0 : index
        %c0_36 = arith.constant 0 : index
        %68 = arith.index_cast %67 : i32 to index
        %69 = vector.load %arg2[%c0_35, %c0_36, %68] : memref<1x64x256xf32, #tpu.memory_space<vmem>>, vector<1x64x128xf32>
        %70 = vector.shape_cast %69 : vector<1x64x128xf32> to vector<64x128xf32>
        %71 = vector.broadcast %61 : vector<64x1xf32> to vector<64x128xf32>
        %72 = arith.mulf %70, %71 : vector<64x128xf32>
        %73 = vector.broadcast %64 : vector<64x1xf32> to vector<64x128xf32>
        %74 = arith.addf %72, %73 : vector<64x128xf32>
        %75 = arith.truncf %74 : vector<64x128xf32> to vector<64x128xbf16>
        %c0_37 = arith.constant 0 : index
        %c0_38 = arith.constant 0 : index
        %76 = vector.load %arg5[%c0_37, %c0_38] : memref<192x64xbf16, #tpu.memory_space<vmem>>, vector<192x64xbf16>
        %cst_39 = arith.constant dense<0.000000e+00> : vector<192x128xf32>
        %77 = tpu.matmul %76, %75, %cst_39 {dimension_numbers = #tpu.dot_dimension_numbers<[1], [0], [0], [1], [0, 0, 1, 1], [], []>} : vector<192x64xbf16>, vector<64x128xbf16>, vector<192x128xf32> -> vector<192x128xf32>
        %c0_40 = arith.constant 0 : index
        %c0_41 = arith.constant 0 : index
        %78 = vector.load %arg6[%c0_40, %c0_41] : memref<192x1xf32, #tpu.memory_space<vmem>>, vector<192x1xf32>
        %79 = vector.broadcast %78 : vector<192x1xf32> to vector<192x128xf32>
        %80 = arith.addf %77, %79 : vector<192x128xf32>
        %81 = arith.truncf %80 : vector<192x128xf32> to vector<192x128xbf16>
        %c0_42 = arith.constant 0 : index
        %82 = arith.index_cast %67 : i32 to index
        %83 = vector.load %arg10[%c0_42, %82] : memref<192x256xbf16, #tpu.memory_space<vmem>>, vector<192x128xbf16>
        tpu.vector_store %arg10[%c0_42, %82], %81 {strides = array<i32>} : memref<192x256xbf16, #tpu.memory_space<vmem>>, vector<192x128xbf16>,
      }
      %c2_i32_33 = arith.constant 2 : i32
    } else {
    }
    %c128_i32 = arith.constant 128 : i32
    %3 = arith.muli %arg1, %c128_i32 : i32
    %4 = tpu.assume_multiple %3, 128 : i32
    %c0 = arith.constant 0 : index
    %5 = arith.index_cast %4 : i32 to index
    %6 = vector.load %arg10[%c0, %5] : memref<192x256xbf16, #tpu.memory_space<vmem>>, vector<64x128xbf16>
    %7 = vector.shape_cast %6 : vector<64x128xbf16> to vector<2x32x128xbf16>
    %cst = arith.constant 0xFF800000 : f32
    %8 = vector.broadcast %cst : f32 to vector<2x1x128xf32>
    %cst_1 = arith.constant 0.000000e+00 : f32
    %9 = vector.broadcast %cst_1 : f32 to vector<2x1x128xf32>
    %cst_2 = arith.constant 0.000000e+00 : f32
    %10 = vector.broadcast %cst_2 : f32 to vector<2x32x128xf32>
    %c0_i32_3 = arith.constant 0 : i32
    %c2_i32 = arith.constant 2 : i32
    %11 = arith.addi %c0_i32_3, %c2_i32 : i32
    %c1_i32 = arith.constant 1 : i32
    %12:3 = scf.for %arg11 = %c0_i32_3 to %11 step %c1_i32 iter_args(%arg12 = %8, %arg13 = %9, %arg14 = %10) -> (vector<2x1x128xf32>, vector<2x1x128xf32>, vector<2x32x128xf32>)  : i32 {
      %c128_i32_15 = arith.constant 128 : i32
      %30 = arith.muli %arg11, %c128_i32_15 : i32
      %31 = tpu.assume_multiple %30, 128 : i32
      %c64 = arith.constant 64 : index
      %32 = arith.index_cast %31 : i32 to index
      %33 = vector.load %arg10[%c64, %32] : memref<192x256xbf16, #tpu.memory_space<vmem>>, vector<64x128xbf16>
      %34 = vector.shape_cast %33 : vector<64x128xbf16> to vector<2x32x128xbf16>
      %c128 = arith.constant 128 : index
      %35 = arith.index_cast %31 : i32 to index
      %36 = vector.load %arg10[%c128, %35] : memref<192x256xbf16, #tpu.memory_space<vmem>>, vector<64x128xbf16>
      %37 = vector.shape_cast %36 : vector<64x128xbf16> to vector<2x32x128xbf16>
      %cst_16 = arith.constant dense<0.000000e+00> : vector<2x128x128xf32>
      %38 = tpu.matmul %34, %7, %cst_16 {dimension_numbers = #tpu.dot_dimension_numbers<[1], [1], [2], [2], [0, 0, 0, 2, 1, 2], [0], [0]>} : vector<2x32x128xbf16>, vector<2x32x128xbf16>, vector<2x128x128xf32> -> vector<2x128x128xf32>
      %cst_17 = arith.constant dense<0xFF800000> : vector<2x128xf32>
      %39 = vector.multi_reduction <maximumf>, %38, %cst_17 [1] : vector<2x128x128xf32> to vector<2x128xf32>
      %40 = vector.shape_cast %39 : vector<2x128xf32> to vector<2x1x128xf32>
      %41 = arith.maximumf %arg12, %40 : vector<2x1x128xf32>
      %42 = arith.subf %arg12, %41 : vector<2x1x128xf32>
      %43 = math.exp %42 : vector<2x1x128xf32>
      %44 = vector.broadcast %41 : vector<2x1x128xf32> to vector<2x128x128xf32>
      %45 = arith.subf %38, %44 : vector<2x128x128xf32>
      %46 = math.exp %45 : vector<2x128x128xf32>
      %47 = arith.mulf %43, %arg13 : vector<2x1x128xf32>
      %cst_18 = arith.constant dense<0.000000e+00> : vector<2x128xf32>
      %48 = vector.multi_reduction <add>, %46, %cst_18 [1] : vector<2x128x128xf32> to vector<2x128xf32>
      %49 = vector.shape_cast %48 : vector<2x128xf32> to vector<2x1x128xf32>
      %50 = arith.addf %47, %49 : vector<2x1x128xf32>
      %51 = arith.truncf %46 : vector<2x128x128xf32> to vector<2x128x128xbf16>
      %cst_19 = arith.constant dense<0.000000e+00> : vector<2x32x128xf32>
      %52 = tpu.matmul %37, %51, %cst_19 {dimension_numbers = #tpu.dot_dimension_numbers<[2], [1], [1], [2], [0, 0, 0, 1, 1, 2], [0], [0]>} : vector<2x32x128xbf16>, vector<2x128x128xbf16>, vector<2x32x128xf32> -> vector<2x32x128xf32>
      %53 = vector.broadcast %43 : vector<2x1x128xf32> to vector<2x32x128xf32>
      %54 = arith.mulf %53, %arg14 : vector<2x32x128xf32>
      %55 = arith.addf %54, %52 : vector<2x32x128xf32>
      scf.yield %41, %50, %55 : vector<2x1x128xf32>, vector<2x1x128xf32>, vector<2x32x128xf32>
    }
    %c2_i32_4 = arith.constant 2 : i32
    %13 = tpu.reciprocal %12#1 {approx = true} : vector<2x1x128xf32> -> vector<2x1x128xf32>
    %14 = vector.broadcast %13 : vector<2x1x128xf32> to vector<2x32x128xf32>
    %15 = arith.mulf %12#2, %14 : vector<2x32x128xf32>
    %16 = vector.shape_cast %15 : vector<2x32x128xf32> to vector<64x128xf32>
    %17 = arith.truncf %16 : vector<64x128xf32> to vector<64x128xbf16>
    %c0_5 = arith.constant 0 : index
    %c0_6 = arith.constant 0 : index
    %18 = vector.load %arg7[%c0_5, %c0_6] : memref<64x64xbf16, #tpu.memory_space<vmem>>, vector<64x64xbf16>
    %cst_7 = arith.constant dense<0.000000e+00> : vector<64x128xf32>
    %19 = tpu.matmul %18, %17, %cst_7 {dimension_numbers = #tpu.dot_dimension_numbers<[1], [0], [0], [1], [0, 0, 1, 1], [], []>} : vector<64x64xbf16>, vector<64x128xbf16>, vector<64x128xf32> -> vector<64x128xf32>
    %c0_8 = arith.constant 0 : index
    %c0_9 = arith.constant 0 : index
    %20 = vector.load %arg8[%c0_8, %c0_9] : memref<64x1xf32, #tpu.memory_space<vmem>>, vector<64x1xf32>
    %21 = vector.broadcast %20 : vector<64x1xf32> to vector<64x128xf32>
    %22 = arith.addf %19, %21 : vector<64x128xf32>
    %c0_10 = arith.constant 0 : index
    %c0_11 = arith.constant 0 : index
    %23 = arith.index_cast %4 : i32 to index
    %24 = vector.load %arg2[%c0_10, %c0_11, %23] : memref<1x64x256xf32, #tpu.memory_space<vmem>>, vector<1x64x128xf32>
    %25 = vector.shape_cast %24 : vector<1x64x128xf32> to vector<64x128xf32>
    %26 = arith.addf %25, %22 : vector<64x128xf32>
    %c0_12 = arith.constant 0 : index
    %c0_13 = arith.constant 0 : index
    %c0_14 = arith.constant 0 : index
    %27 = vector.load %arg9[%c0_12, %c0_13, %c0_14] : memref<1x64x128xf32, #tpu.memory_space<vmem>>, vector<1x64x128xf32>
    %28 = vector.shape_cast %27 : vector<1x64x128xf32> to vector<64x128xf32>
    %29 = vector.shape_cast %26 : vector<64x128xf32> to vector<1x64x128xf32>
    tpu.vector_store %arg9[%c0_12, %c0_13, %c0_14], %29 {strides = array<i32>} : memref<1x64x128xf32, #tpu.memory_space<vmem>>, vector<1x64x128xf32>,
    return
  }
  func.func @transform_0(%arg0: i32, %arg1: i32) -> (i32, i32, i32) {
    %c0_i32 = arith.constant 0 : i32
    %c0_i32_0 = arith.constant 0 : i32
    %c0_i32_1 = arith.constant 0 : i32
    return %arg0, %c0_i32, %c0_i32_0 : i32, i32, i32
  }
  func.func @transform_1(%arg0: i32, %arg1: i32) -> (i32, i32) {
    %c0_i32 = arith.constant 0 : i32
    %c0_i32_0 = arith.constant 0 : i32
    %c0_i32_1 = arith.constant 0 : i32
    return %c0_i32, %c0_i32_0 : i32, i32
  }
  func.func @transform_2(%arg0: i32, %arg1: i32) -> (i32, i32) {
    %c0_i32 = arith.constant 0 : i32
    %c0_i32_0 = arith.constant 0 : i32
    %c0_i32_1 = arith.constant 0 : i32
    return %c0_i32, %c0_i32_0 : i32, i32
  }
  func.func @transform_3(%arg0: i32, %arg1: i32) -> (i32, i32) {
    %c0_i32 = arith.constant 0 : i32
    %c0_i32_0 = arith.constant 0 : i32
    %c0_i32_1 = arith.constant 0 : i32
    return %c0_i32, %c0_i32_0 : i32, i32
  }
  func.func @transform_4(%arg0: i32, %arg1: i32) -> (i32, i32) {
    %c0_i32 = arith.constant 0 : i32
    %c0_i32_0 = arith.constant 0 : i32
    %c0_i32_1 = arith.constant 0 : i32
    return %c0_i32, %c0_i32_0 : i32, i32
  }
  func.func @transform_5(%arg0: i32, %arg1: i32) -> (i32, i32) {
    %c0_i32 = arith.constant 0 : i32
    %c0_i32_0 = arith.constant 0 : i32
    %c0_i32_1 = arith.constant 0 : i32
    return %c0_i32, %c0_i32_0 : i32, i32
  }
  func.func @transform_6(%arg0: i32, %arg1: i32) -> (i32, i32) {
    %c0_i32 = arith.constant 0 : i32
    %c0_i32_0 = arith.constant 0 : i32
    %c0_i32_1 = arith.constant 0 : i32
    return %c0_i32, %c0_i32_0 : i32, i32
  }
  func.func @transform_7(%arg0: i32, %arg1: i32) -> (i32, i32, i32) {
    %c0_i32 = arith.constant 0 : i32
    %c0_i32_0 = arith.constant 0 : i32
    return %arg0, %c0_i32, %arg1 : i32, i32, i32
  }
}

</mosaic_0001>

<bundles_post_ra>
// kernel: tpu_custom_call.1
= control target key start
LH: loop header
LB: loop body
LE: loop exit
PB: predicated region body
PF: predicated region fallthrough
CT: control target
= control target key end

     0   :  { %s6515_s0 = inlined_call_operand.vmem [shape: f32[2,64,256], index: 0, kind: input, shape index: {}]   ;;  %s6516_s1 = inlined_call_operand.vmem [shape: f32[64,1], index: 1, kind: input, shape index: {}]   ;;  %s6517_s2 = inlined_call_operand.vmem [shape: f32[64,1], index: 2, kind: input, shape index: {}]   ;;  %s6518_s3 = inlined_call_operand.vmem [shape: bf16[192,64], index: 3, kind: input, shape index: {}]   ;;  %s6519_s4 = inlined_call_operand.vmem [shape: f32[192,1], index: 4, kind: input, shape index: {}]   ;;  %s6520_s5 = inlined_call_operand.vmem [shape: bf16[64,64], index: 5, kind: input, shape index: {}]   ;;  %s6521_s6 = inlined_call_operand.vmem [shape: f32[64,1], index: 6, kind: input, shape index: {}]   ;;  %s6522_s7 = inlined_call_operand.hbm [shape: f32[2,64,256], index: 7, kind: output, shape index: {}]  }
   0x1   :  { %6569 = sst [smem:[#allocation68_spill]] %s6515_s0 }
   0x2   :  { %6570 = sst [smem:[#allocation69_spill]] %s6516_s1 }
   0x3   :  { %12 = vsyncpa [#allocation4], 0 }
   0x4   :  { %14 = vsyncpa [#allocation4 + $0x1], 0  ;;  %s4949_s24 = smov 0   ;;  %s4951_s25 = smov 0  }
   0x5   :  { %s4953_s26 = smov 0   ;;  %s4955_s27 = smov 0  }
   0x6   :  { %s4957_s28 = smov 0   ;;  %s4959_s29 = smov 0  }
   0x7   :  { %s4961_s30 = smov 0   ;;  %s4963_s8 = smov 0  }
   0x8 LB: > { %s4053_s9 = sadd.s32 4294967295, %s4840_s8   ;;  %s4054_s10 = sadd.s32 4294967294, %s4840_s8   ;;  %s4840_s8 = sphi %s4963_s8, %s20_s8   ;;  %s4836_s30 = sphi %s4961_s30, %s6741_s30   ;;  %s4832_s29 = sphi %s4959_s29, %s6740_s29   ;;  %s4828_s28 = sphi %s4957_s28, %s6739_s28   ;;  %s4824_s27 = sphi %s4955_s27, %s6738_s27   ;;  %s4820_s26 = sphi %s4953_s26, %s6737_s26   ;;  %s4816_s25 = sphi %s4951_s25, %s6736_s25   ;;  %s4812_s24 = sphi %s4949_s24, %s6735_s24  }
   0x9   : > { %s29_s11 = sadd.s32 1, %s4832_s29  ;;  %s32_s12 = sadd.s32 1, %s4836_s30 }
   0xa   : > { %p30_p0 = scmp.ge.s32.totalorder %s29_s11, 2  ;;  %p203_p1 = scmp.ne.s32.totalorder %s4820_s26, %s4816_s25 }
   0xb   : > { %p204_p2 = scmp.eq.s32.totalorder %s4053_s9, 3  ;;  %p209_p5 = scmp.ne.s32.totalorder %s4816_s25, %s4812_s24 }
   0xc   : > { %s6743_s11 = smov (%p30_p0, %s29_s11), 0  ;;  %s6745_s12 = smov (!%p30_p0, %s32_s12), %s4836_s30 }
   0xd   : > { %s189_s13 = ssub.s32 %s4832_s29, %s6743_s11  ;;  %p5000_p3 = por %p204_p2, %p203_p1 }
   0xe   : > { %p34_p4 = scmp.ge.s32.totalorder %s6745_s12, 2  ;;  %p210_p6 = scmp.eq.s32.totalorder %s4054_s10, 3 }
   0xf   : > { %p4057_p7 = scmp.ge.s32.totalorder %s4840_s8, 1  ;;  %p254_p9 = scmp.lt.s32.totalorder %s4840_s8, 5 }
  0x10   : > { %s6747_s12 = smov (%p34_p4, %s6745_s12), 0  ;;  %p5009_p8 = por %p210_p6, %p209_p5 }
  0x11   : > { %6572 = sst [smem:[#allocation6_spill]] %s6747_s12  ;;  %s188_s16 = ssub.s32 %s4836_s30, %s6747_s12 }
  0x12   : > { %s193_s17 = sadd.s32 1, %s4820_s26  ;;  %s190_s18 = sor.u32 %s189_s13, %s188_s16 }
  0x13   : > { %p255_p10 = pnand %p4057_p7, %p254_p9  ;;  %p191_p11 = scmp.eq.s32.totalorder %s190_s18, 0 }
  0x15   : > { %s5018_s19 = scalar_select %p191_p11, %s4820_s26, %s193_s17  }
  0x16   : > { %258 = sbr.rel (%p255_p10) target bundleno = 1792 (0x700), region = 48 }
  0x1d   : > { %s6552_s20 = sand.u32 1, %s4816_s25   ;;  %p286_p12 = scmp.lt.s32.totalorder %s4828_s28, 1 }
  0x1e   : > { %s4058_s21 = sshll.u32 %s6552_s20, 6  ;;  %s6574_s0 = sld [smem:[#allocation68_spill]] }
  0x1f   : > { %s287_s22 = scalar_select %p286_p12, %s4828_s28, 1 }
  0x20   : > { %s5030_s13 = scalar_lea.vmem [#allocation3], %s4058_s21  ;;  %p4061_p13 = scmp.ne.s32.totalorder %s4824_s27, 0 }
  0x21   : > { %s4123_s23 = sshll.u32 %s287_s22, 7 }
  0x22   : > { %295 = sbr.rel (%p4061_p13) target bundleno = 877 (0x36d), region = 52 }
  0x24   : > { %s5028_s12 = scalar_lea.vmem %s6574_s0, %s4123_s23 }
  0x29   : > { %v300_v0 = vld [vmem:[%s5028_s12 + $0x20] sm:$0xff]  ;;  %v301_v1 = vld [vmem:[%s5028_s12 + $0x28] sm:$0xff]  ;;  %v302_v5 = vld [vmem:[%s5028_s12 + $0x30] sm:$0xff]  ;;  %v4898_v48 = vmov 269488144   ;;  %v387_v50 = vlaneseq  ;;  %s6576_s1 = sld [smem:[#allocation69_spill]] }
  0x2a   : > { %v296_v2 = vld [vmem:[%s5028_s12] sm:$0xff]  ;;  %v318_v3 = vadd.f32 %v301_v1, %v300_v0  ;;  %v297_v4 = vld [vmem:[%s5028_s12 + $0x8] sm:$0xff]  ;;  %v303_v6 = vld [vmem:[%s5028_s12 + $0x38] sm:$0xff]  ;;  %v342_v29 = vmul.f32 %v302_v5, %v302_v5  ;;  %v340_v31 = vmul.f32 %v300_v0, %v300_v0  ;;  %v341_v32 = vmul.f32 %v301_v1, %v301_v1  ;;  %s5770_s16 = smov 0  }
  0x2b   : > { %v312_v7 = vadd.f32 %v297_v4, %v296_v2  ;;  %v298_v8 = vld [vmem:[%s5028_s12 + $0x10] sm:$0xff]  ;;  %v299_v9 = vld [vmem:[%s5028_s12 + $0x18] sm:$0xff]  ;;  %v321_v10 = vadd.f32 %v303_v6, %v302_v5  ;;  %v304_v14 = vld [vmem:[%s5028_s12 + $0x40] sm:$0xff]  ;;  %v336_v25 = vmul.f32 %v296_v2, %v296_v2  ;;  %v337_v26 = vmul.f32 %v297_v4, %v297_v4 }
  0x2c   : > { %319 = vadd.xlane.f32.xlu1 %v318_v3  ;;  %v315_v11 = vadd.f32 %v299_v9, %v298_v8  ;;  %v306_v12 = vld [vmem:[%s5028_s12 + $0x50] sm:$0xff]  ;;  %v307_v13 = vld [vmem:[%s5028_s12 + $0x58] sm:$0xff]  ;;  %v305_v15 = vld [vmem:[%s5028_s12 + $0x48] sm:$0xff]  ;;  %v338_v23 = vmul.f32 %v298_v8, %v298_v8  ;;  %v339_v24 = vmul.f32 %v299_v9, %v299_v9  ;;  %v343_v30 = vmul.f32 %v303_v6, %v303_v6 }
  0x2d   : > { %313 = vadd.xlane.f32.xlu0 %v312_v7  ;;  %v327_v16 = vadd.f32 %v307_v13, %v306_v12  ;;  %v324_v17 = vadd.f32 %v305_v15, %v304_v14  ;;  %v310_v18 = vld [vmem:[%s5028_s12 + $0x70] sm:$0xff]  ;;  %v311_v19 = vld [vmem:[%s5028_s12 + $0x78] sm:$0xff]  ;;  %v308_v20 = vld [vmem:[%s5028_s12 + $0x60] sm:$0xff]  ;;  %v352_v33 = vadd.f32 %v337_v26, %v336_v25  ;;  %v346_v35 = vmul.f32 %v306_v12, %v306_v12 }
  0x2e   : > { %v309_v21 = vld [vmem:[%s5028_s12 + $0x68] sm:$0xff]  ;;  %v333_v22 = vadd.f32 %v311_v19, %v310_v18  ;;  %v355_v28 = vadd.f32 %v339_v24, %v338_v23  ;;  %v361_v34 = vadd.f32 %v343_v30, %v342_v29  ;;  %v347_v36 = vmul.f32 %v307_v13, %v307_v13 }
  0x2f   : > { %v330_v27 = vadd.f32 %v309_v21, %v308_v20  ;;  %v358_v37 = vadd.f32 %v341_v32, %v340_v31  ;;  %v344_v38 = vmul.f32 %v304_v14, %v304_v14  ;;  %v345_v39 = vmul.f32 %v305_v15, %v305_v15  ;;  %v1578_v5 = vld [vmem:[%s6576_s1 + $0x8] sm:$0xff] }
  0x30   : > { %322 = vadd.xlane.f32.xlu1 %v321_v10  ;;  %v367_v40 = vadd.f32 %v347_v36, %v346_v35  ;;  %v350_v41 = vmul.f32 %v310_v18, %v310_v18  ;;  %v351_v42 = vmul.f32 %v311_v19, %v311_v19  ;;  %v348_v44 = vmul.f32 %v308_v20, %v308_v20 }
  0x31   : > { %316 = vadd.xlane.f32.xlu0 %v315_v11  ;;  %v364_v43 = vadd.f32 %v345_v39, %v344_v38  ;;  %v349_v45 = vmul.f32 %v309_v21, %v309_v21  ;;  %v385_v49 = vunpack.c.l.s4 %v4898_v48  ;;  %v4899_v51 = vmov 842150450   ;;  %v1577_v38 = vld [vmem:[%s6576_s1] sm:$0xff]  ;;  %v1580_v39 = vld [vmem:[%s6576_s1 + $0x18] sm:$0xff] }
  0x32   : > { %v373_v46 = vadd.f32 %v351_v42, %v350_v41  ;;  %v392_v52 = vunpack.c.l.s4 %v4899_v51  ;;  %v4900_v53 = vmov 1414812756   ;;  %v4901_v55 = vmov 1987475062  }
  0x33   : > { %v370_v47 = vadd.f32 %v349_v45, %v348_v44  ;;  %v399_v54 = vunpack.c.l.s4 %v4900_v53  ;;  %v406_v56 = vunpack.c.l.s4 %v4901_v55  ;;  %v388_v57 = vshrl.u32 %v387_v50, 7 }
  0x34   : > { %328 = vadd.xlane.f32.xlu1 %v327_v16  ;;  %v4902_v58 = vmov 1983009808   ;;  %v386_v60 = vunpack.c.0.s8 %v385_v49  ;;  %v393_v61 = vunpack.c.0.s8 %v392_v52  ;;  %vm640_vm0 = vcmask 1041408  }
  0x35   : > { %325 = vadd.xlane.f32.xlu0 %v324_v17  ;;  %v1595_v59 = vunpack.c.l.s4 %v4902_v58  ;;  %v400_v62 = vunpack.c.0.s8 %v399_v54  ;;  %v407_v63 = vunpack.c.0.s8 %v406_v56  ;;  %v1610_v8 = vcombine.high %v1578_v5, %v1578_v5 }
  0x36   : > { %v5049_v1 = vsub.s32 %v386_v60, %v388_v57  ;;  %v5051_v2 = vsub.s32 %v393_v61, %v388_v57  ;;  %v1593_v49 = vcombine.high %v1577_v38, %v1577_v38  ;;  %v1644_v50 = vcombine.high %v1580_v39, %v1580_v39 }
  0x37   : > { %v1596_v0 = vunpack.c.0.s8 %v1595_v59  ;;  %v5053_v3 = vsub.s32 %v400_v62, %v388_v57  ;;  %v5055_v4 = vsub.s32 %v407_v63, %v388_v57 }
  0x38   : > { %334 = vadd.xlane.f32.xlu1 %v333_v22  ;;  %6575 = vst [vmem:[#allocation7_spill] sm:$0xff] %v5049_v1 }
  0x39   : > { %331 = vadd.xlane.f32.xlu0 %v330_v27  ;;  %v5060_v7 = vsub.s32 %v1596_v0, %v388_v57 }
  0x3b   : > { %6577 = vst [vmem:[#allocation8_spill] sm:$0xff] %v5060_v7  ;;  %v5085_v55 = vrot.slane %v1578_v5, %v5060_v7  ;;  %v5088_v56 = vrot.slane %v1610_v8, %v5060_v7  ;;  %v5091_v61 = vrot.slane %v1577_v38, %v5060_v7  ;;  %v5094_v62 = vrot.slane %v1593_v49, %v5060_v7 }
  0x3c   : > { %356 = vadd.xlane.f32.xlu1 %v355_v28  ;;  %v5097_v63 = vrot.slane %v1580_v39, %v5060_v7  ;;  %v5100_v0 = vrot.slane %v1644_v50, %v5060_v7 }
  0x3d   : > { %353 = vadd.xlane.f32.xlu0 %v352_v33 }
  0x3e   : > { %6578 = vst [vmem:[#allocation9_spill] sm:$0xff] %v5097_v63  ;;  %6579 = vst [vmem:[#allocation10_spill] sm:$0xff] %v5100_v0 }
  0x40   : > { %362 = vadd.xlane.f32.xlu1 %v361_v34 }
  0x41   : > { %359 = vadd.xlane.f32.xlu0 %v358_v37 }
  0x44   : > { %368 = vadd.xlane.f32.xlu1 %v367_v40 }
  0x45   : > { %365 = vadd.xlane.f32.xlu0 %v364_v43 }
  0x48   : > { %374 = vadd.xlane.f32.xlu1 %v373_v46 }
  0x49   : > { %371 = vadd.xlane.f32.xlu0 %v370_v47 }
  0xb9   : > { %v320_v6 = vpop.xlane.xlu1 %319 }
  0xba   : > { %v446_v9 = vrot.slane %v320_v6, %v5049_v1  ;;  %v453_v10 = vrot.slane %v320_v6, %v5051_v2  ;;  %v460_v11 = vrot.slane %v320_v6, %v5053_v3  ;;  %v467_v12 = vrot.slane %v320_v6, %v5055_v4  ;;  %v314_v13 = vpop.xlane.xlu0 %313 }
  0xbb   : > { %v390_v14 = vrot.slane %v314_v13, %v5049_v1  ;;  %v397_v15 = vrot.slane %v314_v13, %v5051_v2  ;;  %v404_v16 = vrot.slane %v314_v13, %v5053_v3  ;;  %v411_v17 = vrot.slane %v314_v13, %v5055_v4 }
  0xbc   : > { %v697_v18 = vsel %vm640_vm0, %v446_v9, 0.0  ;;  %v704_v19 = vsel %vm640_vm0, %v453_v10, 0.0  ;;  %v711_v20 = vsel %vm640_vm0, %v460_v11, 0.0  ;;  %v718_v21 = vsel %vm640_vm0, %v467_v12, 0.0 }
  0xbd   : > { %v698_v22 = vrot.slane %v697_v18, 4  ;;  %v705_v23 = vrot.slane %v704_v19, 4  ;;  %v712_v24 = vrot.slane %v711_v20, 4  ;;  %v719_v25 = vrot.slane %v718_v21, 4 }
  0xbe   : > { %v641_v26 = vsel %vm640_vm0, %v390_v14, 0.0  ;;  %v648_v27 = vsel %vm640_vm0, %v397_v15, 0.0  ;;  %v655_v28 = vsel %vm640_vm0, %v404_v16, 0.0  ;;  %v662_v29 = vsel %vm640_vm0, %v411_v17, 0.0  ;;  %v323_v16 = vpop.xlane.xlu1 %322 }
  0xbf   : > { %v699_v30 = vadd.f32 %v698_v22, %v697_v18  ;;  %v706_v31 = vadd.f32 %v705_v23, %v704_v19  ;;  %v713_v32 = vadd.f32 %v712_v24, %v711_v20  ;;  %v720_v33 = vadd.f32 %v719_v25, %v718_v21 }
  0xc0   : > { %v642_v34 = vrot.slane %v641_v26, 4  ;;  %v649_v35 = vrot.slane %v648_v27, 4  ;;  %v656_v36 = vrot.slane %v655_v28, 4  ;;  %v663_v37 = vrot.slane %v662_v29, 4 }
  0xc1   : > { %v700_v40 = vrot.slane %v699_v30, 2  ;;  %v707_v41 = vrot.slane %v706_v31, 2  ;;  %v714_v42 = vrot.slane %v713_v32, 2  ;;  %v721_v43 = vrot.slane %v720_v33, 2 }
  0xc2   : > { %v643_v44 = vadd.f32 %v642_v34, %v641_v26  ;;  %v650_v45 = vadd.f32 %v649_v35, %v648_v27  ;;  %v657_v46 = vadd.f32 %v656_v36, %v655_v28  ;;  %v664_v47 = vadd.f32 %v663_v37, %v662_v29 }
  0xc3   : > { %v701_v48 = vadd.f32 %v700_v40, %v699_v30  ;;  %v708_v51 = vadd.f32 %v707_v41, %v706_v31  ;;  %v715_v52 = vadd.f32 %v714_v42, %v713_v32  ;;  %v722_v53 = vadd.f32 %v721_v43, %v720_v33  ;;  %v317_v33 = vpop.xlane.xlu0 %316 }
  0xc4   : > { %v644_v54 = vrot.slane %v643_v44, 2  ;;  %v651_v58 = vrot.slane %v650_v45, 2  ;;  %v658_v59 = vrot.slane %v657_v46, 2  ;;  %v665_v60 = vrot.slane %v664_v47, 2 }
  0xc5   : > { %v702_v5 = vrot.slane %v701_v48, 1  ;;  %v709_v6 = vrot.slane %v708_v51, 1  ;;  %v716_v8 = vrot.slane %v715_v52, 1  ;;  %v723_v9 = vrot.slane %v722_v53, 1 }
  0xc6   : > { %v645_v57 = vadd.f32 %v644_v54, %v643_v44  ;;  %v652_v13 = vadd.f32 %v651_v58, %v650_v45  ;;  %v659_v14 = vadd.f32 %v658_v59, %v657_v46  ;;  %v666_v15 = vadd.f32 %v665_v60, %v664_v47 }
  0xc7   : > { %v703_v21 = vadd.f32 %v702_v5, %v701_v48  ;;  %v710_v22 = vadd.f32 %v709_v6, %v708_v51  ;;  %v717_v23 = vadd.f32 %v716_v8, %v715_v52  ;;  %v724_v24 = vadd.f32 %v723_v9, %v722_v53 }
  0xc8   : > { %v646_v12 = vrot.slane %v645_v57, 1  ;;  %v474_v25 = vrot.slane %v323_v16, %v5049_v1  ;;  %v481_v26 = vrot.slane %v323_v16, %v5051_v2  ;;  %v488_v27 = vrot.slane %v323_v16, %v5053_v3 }
  0xc9   : > { %v495_v28 = vrot.slane %v323_v16, %v5055_v4  ;;  %v653_v30 = vrot.slane %v652_v13, 1  ;;  %v660_v31 = vrot.slane %v659_v14, 1  ;;  %v667_v32 = vrot.slane %v666_v15, 1 }
  0xca   : > { %v647_v29 = vadd.f32 %v646_v12, %v645_v57  ;;  %v725_v34 = vsel %vm640_vm0, %v474_v25, 0.0  ;;  %v732_v35 = vsel %vm640_vm0, %v481_v26, 0.0  ;;  %v739_v36 = vsel %vm640_vm0, %v488_v27, 0.0 }
  0xcb   : > { %v746_v37 = vsel %vm640_vm0, %v495_v28, 0.0  ;;  %v726_v38 = vrot.slane %v725_v34, 4  ;;  %v733_v39 = vrot.slane %v732_v35, 4  ;;  %v740_v40 = vrot.slane %v739_v36, 4 }
  0xcc   : > { %v747_v41 = vrot.slane %v746_v37, 4  ;;  %v418_v42 = vrot.slane %v317_v33, %v5049_v1  ;;  %v425_v43 = vrot.slane %v317_v33, %v5051_v2  ;;  %v432_v44 = vrot.slane %v317_v33, %v5053_v3 }
  0xcd   : > { %v439_v45 = vrot.slane %v317_v33, %v5055_v4  ;;  %v727_v46 = vadd.f32 %v726_v38, %v725_v34  ;;  %v734_v47 = vadd.f32 %v733_v39, %v732_v35  ;;  %v741_v48 = vadd.f32 %v740_v40, %v739_v36 }
  0xce   : > { %v748_v49 = vadd.f32 %v747_v41, %v746_v37  ;;  %v669_v50 = vsel %vm640_vm0, %v418_v42, 0.0  ;;  %v676_v51 = vsel %vm640_vm0, %v425_v43, 0.0  ;;  %v683_v52 = vsel %vm640_vm0, %v432_v44, 0.0 }
  0xcf   : > { %v690_v53 = vsel %vm640_vm0, %v439_v45, 0.0  ;;  %v728_v54 = vrot.slane %v727_v46, 2  ;;  %v735_v57 = vrot.slane %v734_v47, 2  ;;  %v742_v58 = vrot.slane %v741_v48, 2 }
  0xd0   : > { %v749_v59 = vrot.slane %v748_v49, 2  ;;  %v670_v60 = vrot.slane %v669_v50, 4  ;;  %v677_v5 = vrot.slane %v676_v51, 4  ;;  %v684_v6 = vrot.slane %v683_v52, 4 }
  0xd1   : > { %v691_v8 = vrot.slane %v690_v53, 4  ;;  %v654_v9 = vadd.f32 %v653_v30, %v652_v13  ;;  %v661_v12 = vadd.f32 %v660_v31, %v659_v14  ;;  %v668_v16 = vadd.f32 %v667_v32, %v666_v15 }
  0xd2   : > { %v729_v25 = vadd.f32 %v728_v54, %v727_v46  ;;  %v671_v26 = vadd.f32 %v670_v60, %v669_v50  ;;  %v678_v27 = vadd.f32 %v677_v5, %v676_v51  ;;  %v685_v28 = vadd.f32 %v684_v6, %v683_v52 }
  0xd3   : > { %v692_v33 = vadd.f32 %v691_v8, %v690_v53  ;;  %v5130_v34 = vmul.f32 0.001953125, %v703_v21  ;;  %v5132_v35 = vmul.f32 0.001953125, %v710_v22  ;;  %v5134_v36 = vmul.f32 0.001953125, %v717_v23 }
  0xd4   : > { %v5136_v37 = vmul.f32 0.001953125, %v724_v24  ;;  %v730_v38 = vrot.slane %v729_v25, 1  ;;  %v736_v39 = vadd.f32 %v735_v57, %v734_v47  ;;  %v743_v40 = vadd.f32 %v742_v58, %v741_v48  ;;  %v329_v47 = vpop.xlane.xlu1 %328 }
  0xd5   : > { %6580 = vst [vmem:[#allocation11_spill] sm:$0xff] %v5130_v34  ;;  %6581 = vst [vmem:[#allocation12_spill] sm:$0xff] %v5132_v35  ;;  %v750_v41 = vadd.f32 %v749_v59, %v748_v49  ;;  %v5138_v13 = vmul.f32 0.001953125, %v647_v29  ;;  %v5140_v14 = vmul.f32 0.001953125, %v654_v9  ;;  %v5142_v15 = vmul.f32 0.001953125, %v661_v12 }
  0xd6   : > { %6582 = vst [vmem:[#allocation13_spill] sm:$0xff] %v5134_v36  ;;  %6583 = vst [vmem:[#allocation14_spill] sm:$0xff] %v5136_v37  ;;  %v5144_v30 = vmul.f32 0.001953125, %v668_v16  ;;  %v672_v21 = vrot.slane %v671_v26, 2  ;;  %v679_v31 = vrot.slane %v678_v27, 2  ;;  %v686_v22 = vrot.slane %v685_v28, 2 }
  0xd7   : > { %6584 = vst [vmem:[#allocation15_spill] sm:$0xff] %v5142_v15  ;;  %v693_v32 = vrot.slane %v692_v33, 2  ;;  %v5148_v23 = vmul.f32 %v5130_v34, %v5130_v34  ;;  %v5152_v24 = vmul.f32 %v5132_v35, %v5132_v35  ;;  %v5156_v29 = vmul.f32 %v5134_v36, %v5134_v36 }
  0xd8   : > { %6585 = vst [vmem:[#allocation16_spill] sm:$0xff] %v5144_v30  ;;  %v5160_v42 = vmul.f32 %v5136_v37, %v5136_v37  ;;  %v731_v43 = vadd.f32 %v730_v38, %v729_v25  ;;  %v737_v44 = vrot.slane %v736_v39, 1  ;;  %v744_v45 = vrot.slane %v743_v40, 1 }
  0xd9   : > { %6586 = vst [vmem:[#allocation17_spill] sm:$0xff] %v5148_v23  ;;  %6587 = vst [vmem:[#allocation18_spill] sm:$0xff] %v5152_v24  ;;  %v751_v46 = vrot.slane %v750_v41, 1  ;;  %v5164_v48 = vmul.f32 %v5138_v13, %v5138_v13  ;;  %v5168_v49 = vmul.f32 %v5140_v14, %v5140_v14  ;;  %v5172_v50 = vmul.f32 %v5142_v15, %v5142_v15 }
  0xda   : > { %6588 = vst [vmem:[#allocation19_spill] sm:$0xff] %v5156_v29  ;;  %6589 = vst [vmem:[#allocation20_spill] sm:$0xff] %v5160_v42  ;;  %v5176_v51 = vmul.f32 %v5144_v30, %v5144_v30  ;;  %v673_v52 = vadd.f32 %v672_v21, %v671_v26  ;;  %v680_v53 = vadd.f32 %v679_v31, %v678_v27  ;;  %v5182_v12 = vmul.f32 0.001953125, %v731_v43 }
  0xdb   : > { %v687_v54 = vadd.f32 %v686_v22, %v685_v28  ;;  %v694_v57 = vadd.f32 %v693_v32, %v692_v33  ;;  %v530_v58 = vrot.slane %v329_v47, %v5049_v1  ;;  %v537_v59 = vrot.slane %v329_v47, %v5051_v2  ;;  %v326_v28 = vpop.xlane.xlu0 %325 }
  0xdc   : > { %v544_v60 = vrot.slane %v329_v47, %v5053_v3  ;;  %v551_v5 = vrot.slane %v329_v47, %v5055_v4  ;;  %v738_v6 = vadd.f32 %v737_v44, %v736_v39  ;;  %v745_v8 = vadd.f32 %v744_v45, %v743_v40  ;;  %6590 = vst [vmem:[#allocation21_spill] sm:$0xff] %v5182_v12 }
  0xdd   : > { %v752_v9 = vadd.f32 %v751_v46, %v750_v41  ;;  %v781_v16 = vsel %vm640_vm0, %v530_v58, 0.0  ;;  %v788_v25 = vsel %vm640_vm0, %v537_v59, 0.0  ;;  %v674_v33 = vrot.slane %v673_v52, 1 }
  0xde   : > { %v795_v26 = vsel %vm640_vm0, %v544_v60, 0.0  ;;  %v802_v27 = vsel %vm640_vm0, %v551_v5, 0.0  ;;  %v681_v38 = vrot.slane %v680_v53, 1  ;;  %v688_v21 = vrot.slane %v687_v54, 1 }
  0xdf   : > { %v695_v31 = vrot.slane %v694_v57, 1  ;;  %v782_v22 = vrot.slane %v781_v16, 4  ;;  %v789_v32 = vrot.slane %v788_v25, 4  ;;  %v796_v39 = vrot.slane %v795_v26, 4 }
  0xe0   : > { %v803_v40 = vrot.slane %v802_v27, 4  ;;  %v502_v41 = vrot.slane %v326_v28, %v5049_v1  ;;  %v509_v43 = vrot.slane %v326_v28, %v5051_v2  ;;  %v516_v44 = vrot.slane %v326_v28, %v5053_v3 }
  0xe1   : > { %v523_v45 = vrot.slane %v326_v28, %v5055_v4  ;;  %v783_v46 = vadd.f32 %v782_v22, %v781_v16  ;;  %v790_v47 = vadd.f32 %v789_v32, %v788_v25  ;;  %v797_v58 = vadd.f32 %v796_v39, %v795_v26 }
  0xe2   : > { %v804_v59 = vadd.f32 %v803_v40, %v802_v27  ;;  %v753_v60 = vsel %vm640_vm0, %v502_v41, 0.0  ;;  %v760_v5 = vsel %vm640_vm0, %v509_v43, 0.0  ;;  %v767_v20 = vsel %vm640_vm0, %v516_v44, 0.0 }
  0xe3   : > { %v774_v19 = vsel %vm640_vm0, %v523_v45, 0.0  ;;  %v784_v18 = vrot.slane %v783_v46, 2  ;;  %v791_v17 = vrot.slane %v790_v47, 2  ;;  %v798_v11 = vrot.slane %v797_v58, 2 }
  0xe4   : > { %v805_v10 = vrot.slane %v804_v59, 2  ;;  %v754_v37 = vrot.slane %v753_v60, 4  ;;  %v761_v36 = vrot.slane %v760_v5, 4  ;;  %v768_v35 = vrot.slane %v767_v20, 4 }
  0xe5   : > { %v775_v28 = vrot.slane %v774_v19, 4  ;;  %v675_v16 = vadd.f32 %v674_v33, %v673_v52  ;;  %v682_v25 = vadd.f32 %v681_v38, %v680_v53  ;;  %v689_v26 = vadd.f32 %v688_v21, %v687_v54 }
  0xe6   : > { %v696_v27 = vadd.f32 %v695_v31, %v694_v57  ;;  %v755_v22 = vadd.f32 %v754_v37, %v753_v60  ;;  %v762_v32 = vadd.f32 %v761_v36, %v760_v5  ;;  %v769_v39 = vadd.f32 %v768_v35, %v767_v20 }
  0xe7   : > { %v776_v40 = vadd.f32 %v775_v28, %v774_v19  ;;  %v5196_v41 = vmul.f32 0.001953125, %v738_v6  ;;  %v5198_v43 = vmul.f32 0.001953125, %v745_v8  ;;  %v5200_v44 = vmul.f32 0.001953125, %v752_v9  ;;  %v335_v8 = vpop.xlane.xlu1 %334 }
  0xe8   : > { %v785_v45 = vadd.f32 %v784_v18, %v783_v46  ;;  %v792_v34 = vadd.f32 %v791_v17, %v790_v47  ;;  %v799_v42 = vadd.f32 %v798_v11, %v797_v58  ;;  %v806_v29 = vadd.f32 %v805_v10, %v804_v59 }
  0xe9   : > { %6591 = vst [vmem:[#allocation22_spill] sm:$0xff] %v5196_v41  ;;  %6592 = vst [vmem:[#allocation23_spill] sm:$0xff] %v5198_v43  ;;  %v756_v24 = vrot.slane %v755_v22, 2  ;;  %v5202_v0 = vmul.f32 0.001953125, %v675_v16  ;;  %v5204_v52 = vmul.f32 0.001953125, %v682_v25  ;;  %v5206_v53 = vmul.f32 0.001953125, %v689_v26 }
  0xea   : > { %6593 = vst [vmem:[#allocation24_spill] sm:$0xff] %v5200_v44  ;;  %v5208_v36 = vmul.f32 0.001953125, %v696_v27  ;;  %v763_v20 = vrot.slane %v762_v32, 2  ;;  %v770_v35 = vrot.slane %v769_v39, 2  ;;  %v777_v37 = vrot.slane %v776_v40, 2 }
  0xeb   : > { %v757_v19 = vadd.f32 %v756_v24, %v755_v22  ;;  %v5212_v54 = vmul.f32 %v5182_v12, %v5182_v12  ;;  %v5216_v10 = vmul.f32 %v5196_v41, %v5196_v41  ;;  %v5220_v11 = vmul.f32 %v5198_v43, %v5198_v43 }
  0xec   : > { %v5224_v17 = vmul.f32 %v5200_v44, %v5200_v44  ;;  %v786_v18 = vrot.slane %v785_v45, 1  ;;  %v793_v24 = vrot.slane %v792_v34, 1  ;;  %v800_v57 = vrot.slane %v799_v42, 1 }
  0xed   : > { %6594 = vst [vmem:[#allocation25_spill] sm:$0xff] %v5212_v54  ;;  %6595 = vst [vmem:[#allocation26_spill] sm:$0xff] %v5216_v10  ;;  %v807_v6 = vrot.slane %v806_v29, 1  ;;  %v5228_v9 = vmul.f32 %v5202_v0, %v5202_v0  ;;  %v5232_v33 = vmul.f32 %v5204_v52, %v5204_v52  ;;  %v5236_v38 = vmul.f32 %v5206_v53, %v5206_v53 }
  0xee   : > { %6596 = vst [vmem:[#allocation27_spill] sm:$0xff] %v5220_v11  ;;  %6597 = vst [vmem:[#allocation28_spill] sm:$0xff] %v5224_v17  ;;  %v5240_v21 = vmul.f32 %v5208_v36, %v5208_v36  ;;  %v758_v31 = vrot.slane %v757_v19, 1  ;;  %v764_v46 = vadd.f32 %v763_v20, %v762_v32  ;;  %v771_v47 = vadd.f32 %v770_v35, %v769_v39 }
  0xef   : > { %v778_v58 = vadd.f32 %v777_v37, %v776_v40  ;;  %v586_v59 = vrot.slane %v335_v8, %v5049_v1  ;;  %v593_v60 = vrot.slane %v335_v8, %v5051_v2  ;;  %v600_v5 = vrot.slane %v335_v8, %v5053_v3  ;;  %v332_v40 = vpop.xlane.xlu0 %331 }
  0xf0   : > { %v607_v28 = vrot.slane %v335_v8, %v5055_v4  ;;  %v787_v16 = vadd.f32 %v786_v18, %v785_v45  ;;  %v794_v25 = vadd.f32 %v793_v24, %v792_v34  ;;  %v801_v26 = vadd.f32 %v800_v57, %v799_v42 }
  0xf1   : > { %v808_v27 = vadd.f32 %v807_v6, %v806_v29  ;;  %v837_v22 = vsel %vm640_vm0, %v586_v59, 0.0  ;;  %v844_v44 = vsel %vm640_vm0, %v593_v60, 0.0  ;;  %v851_v32 = vsel %vm640_vm0, %v600_v5, 0.0 }
  0xf2   : > { %v858_v39 = vsel %vm640_vm0, %v607_v28, 0.0  ;;  %v759_v20 = vadd.f32 %v758_v31, %v757_v19  ;;  %v765_v35 = vrot.slane %v764_v46, 1  ;;  %v772_v37 = vrot.slane %v771_v47, 1 }
  0xf3   : > { %v779_v43 = vrot.slane %v778_v58, 1  ;;  %v838_v41 = vrot.slane %v837_v22, 4  ;;  %v845_v12 = vrot.slane %v844_v44, 4  ;;  %v852_v8 = vrot.slane %v851_v32, 4 }
  0xf4   : > { %v859_v45 = vrot.slane %v858_v39, 4  ;;  %v558_v34 = vrot.slane %v332_v40, %v5049_v1  ;;  %v565_v29 = vrot.slane %v332_v40, %v5051_v2  ;;  %v572_v42 = vrot.slane %v332_v40, %v5053_v3 }
  0xf5   : > { %v579_v18 = vrot.slane %v332_v40, %v5055_v4  ;;  %v839_v24 = vadd.f32 %v838_v41, %v837_v22  ;;  %v846_v57 = vadd.f32 %v845_v12, %v844_v44  ;;  %v853_v6 = vadd.f32 %v852_v8, %v851_v32 }
  0xf6   : > { %v860_v59 = vadd.f32 %v859_v45, %v858_v39  ;;  %v766_v19 = vadd.f32 %v765_v35, %v764_v46  ;;  %v773_v31 = vadd.f32 %v772_v37, %v771_v47  ;;  %v780_v60 = vadd.f32 %v779_v43, %v778_v58 }
  0xf7   : > { %v809_v5 = vsel %vm640_vm0, %v558_v34, 0.0  ;;  %v840_v28 = vrot.slane %v839_v24, 2  ;;  %v816_v23 = vsel %vm640_vm0, %v565_v29, 0.0  ;;  %v823_v63 = vsel %vm640_vm0, %v572_v42, 0.0  ;;  %v357_v42 = vpop.xlane.xlu1 %356 }
  0xf8   : > { %v830_v17 = vsel %vm640_vm0, %v579_v18, 0.0  ;;  %v847_v30 = vrot.slane %v846_v57, 2  ;;  %v854_v11 = vrot.slane %v853_v6, 2  ;;  %v861_v10 = vrot.slane %v860_v59, 2 }
  0xf9   : > { %v810_v40 = vrot.slane %v809_v5, 4  ;;  %v5258_v41 = vmul.f32 0.001953125, %v787_v16  ;;  %v5260_v12 = vmul.f32 0.001953125, %v794_v25  ;;  %v5262_v44 = vmul.f32 0.001953125, %v801_v26 }
  0xfa   : > { %v5264_v43 = vmul.f32 0.001953125, %v808_v27  ;;  %v841_v46 = vadd.f32 %v840_v28, %v839_v24  ;;  %v817_v47 = vrot.slane %v816_v23, 4  ;;  %v824_v58 = vrot.slane %v823_v63, 4 }
  0xfb   : > { %6598 = vst [vmem:[#allocation29_spill] sm:$0xff] %v5258_v41  ;;  %6599 = vst [vmem:[#allocation30_spill] sm:$0xff] %v5260_v12  ;;  %v831_v22 = vrot.slane %v830_v17, 4  ;;  %v5266_v32 = vmul.f32 0.001953125, %v759_v20  ;;  %v5268_v39 = vmul.f32 0.001953125, %v766_v19  ;;  %v5270_v35 = vmul.f32 0.001953125, %v773_v31 }
  0xfc   : > { %6600 = vst [vmem:[#allocation31_spill] sm:$0xff] %v5262_v44  ;;  %6601 = vst [vmem:[#allocation32_spill] sm:$0xff] %v5264_v43  ;;  %v5272_v37 = vmul.f32 0.001953125, %v780_v60  ;;  %v848_v16 = vadd.f32 %v847_v30, %v846_v57  ;;  %v855_v8 = vadd.f32 %v854_v11, %v853_v6  ;;  %v862_v25 = vadd.f32 %v861_v10, %v860_v59 }
  0xfd   : > { %6602 = vst [vmem:[#allocation33_spill] sm:$0xff] %v5266_v32  ;;  %6603 = vst [vmem:[#allocation34_spill] sm:$0xff] %v5268_v39  ;;  %v811_v45 = vadd.f32 %v810_v40, %v809_v5  ;;  %v5276_v26 = vmul.f32 %v5258_v41, %v5258_v41  ;;  %v5280_v27 = vmul.f32 %v5260_v12, %v5260_v12  ;;  %v842_v30 = vrot.slane %v841_v46, 1 }
  0xfe   : > { %6604 = vst [vmem:[#allocation35_spill] sm:$0xff] %v5270_v35  ;;  %6605 = vst [vmem:[#allocation36_spill] sm:$0xff] %v5272_v37  ;;  %v5284_v20 = vmul.f32 %v5262_v44, %v5262_v44  ;;  %v5288_v34 = vmul.f32 %v5264_v43, %v5264_v43  ;;  %v5290_v11 = vadd.f32 %v817_v47, %v816_v23  ;;  %v863_v6 = vrot.slane %v862_v25, 1 }
  0xff   : > { %6606 = vst [vmem:[#allocation37_spill] sm:$0xff] %v5276_v26  ;;  %6607 = vst [vmem:[#allocation38_spill] sm:$0xff] %v5280_v27  ;;  %v5292_v10 = vadd.f32 %v824_v58, %v823_v63  ;;  %v5294_v29 = vadd.f32 %v831_v22, %v830_v17  ;;  %v5298_v18 = vmul.f32 %v5266_v32, %v5266_v32  ;;  %v849_v63 = vrot.slane %v848_v16, 1  ;;  %v354_v32 = vpop.xlane.xlu0 %353 }
 0x100   : > { %6608 = vst [vmem:[#allocation39_spill] sm:$0xff] %v5284_v20  ;;  %6609 = vst [vmem:[#allocation40_spill] sm:$0xff] %v5288_v34  ;;  %v5302_v24 = vmul.f32 %v5268_v39, %v5268_v39  ;;  %v5306_v57 = vmul.f32 %v5270_v35, %v5270_v35  ;;  %v5310_v23 = vmul.f32 %v5272_v37, %v5272_v37  ;;  %v856_v17 = vrot.slane %v855_v8, 1 }
 0x101   : > { %6610 = vst [vmem:[#allocation41_spill] sm:$0xff] %v5298_v18  ;;  %v812_v59 = vrot.slane %v811_v45, 2  ;;  %v939_v19 = vrot.slane %v357_v42, %v5049_v1  ;;  %v946_v31 = vrot.slane %v357_v42, %v5051_v2  ;;  %v953_v60 = vrot.slane %v357_v42, %v5053_v3 }
 0x102   : > { %6611 = vst [vmem:[#allocation42_spill] sm:$0xff] %v5302_v24  ;;  %6612 = vst [vmem:[#allocation43_spill] sm:$0xff] %v5306_v57  ;;  %v960_v5 = vrot.slane %v357_v42, %v5055_v4  ;;  %v5316_v28 = vadd.f32 %v842_v30, %v841_v46  ;;  %v5325_v43 = vadd.f32 %v849_v63, %v848_v16 }
 0x103   : > { %6613 = vst [vmem:[#allocation44_spill] sm:$0xff] %v5310_v23  ;;  %v1189_v22 = vsel %vm640_vm0, %v939_v19, 0.0  ;;  %v1196_v37 = vsel %vm640_vm0, %v946_v31, 0.0  ;;  %v1203_v35 = vsel %vm640_vm0, %v953_v60, 0.0  ;;  %v5327_v42 = vadd.f32 %v856_v17, %v855_v8 }
 0x104   : > { %v1210_v39 = vsel %vm640_vm0, %v960_v5, 0.0  ;;  %v5329_v46 = vadd.f32 %v863_v6, %v862_v25  ;;  %v5331_v30 = vadd.f32 %v812_v59, %v811_v45  ;;  %v1190_v47 = vrot.slane %v1189_v22, 4 }
 0x105   : > { %6614 = vst [vmem:[#allocation45_spill] sm:$0xff] %v5327_v42  ;;  %v1197_v40 = vrot.slane %v1196_v37, 4  ;;  %v1204_v58 = vrot.slane %v1203_v35, 4  ;;  %v1211_v23 = vrot.slane %v1210_v39, 4  ;;  %v911_v19 = vrot.slane %v354_v32, %v5049_v1 }
 0x106   : > { %6615 = vst [vmem:[#allocation46_spill] sm:$0xff] %v5329_v46  ;;  %6616 = vst [vmem:[#allocation47_spill] sm:$0xff] %v5331_v30  ;;  %v918_v31 = vrot.slane %v354_v32, %v5051_v2  ;;  %v925_v60 = vrot.slane %v354_v32, %v5053_v3  ;;  %v932_v5 = vrot.slane %v354_v32, %v5055_v4 }
 0x107   : > { %v1191_v16 = vadd.f32 %v1190_v47, %v1189_v22  ;;  %v1198_v63 = vadd.f32 %v1197_v40, %v1196_v37  ;;  %v1205_v8 = vadd.f32 %v1204_v58, %v1203_v35  ;;  %v1212_v17 = vadd.f32 %v1211_v23, %v1210_v39 }
 0x108   : > { %v1161_v25 = vsel %vm640_vm0, %v911_v19, 0.0  ;;  %v1168_v45 = vsel %vm640_vm0, %v918_v31, 0.0  ;;  %v1175_v6 = vsel %vm640_vm0, %v925_v60, 0.0  ;;  %v1182_v59 = vsel %vm640_vm0, %v932_v5, 0.0 }
 0x109   : > { %v1192_v44 = vrot.slane %v1191_v16, 2  ;;  %v1199_v57 = vrot.slane %v1198_v63, 2  ;;  %v1206_v12 = vrot.slane %v1205_v8, 2  ;;  %v1213_v24 = vrot.slane %v1212_v17, 2 }
 0x10a   : > { %v1162_v41 = vrot.slane %v1161_v25, 4  ;;  %v1169_v18 = vrot.slane %v1168_v45, 4  ;;  %v1176_v34 = vrot.slane %v1175_v6, 4  ;;  %v1183_v32 = vrot.slane %v1182_v59, 4 }
 0x10b   : > { %v1193_v47 = vadd.f32 %v1192_v44, %v1191_v16  ;;  %v1200_v37 = vadd.f32 %v1199_v57, %v1198_v63  ;;  %v1207_v35 = vadd.f32 %v1206_v12, %v1205_v8  ;;  %v1214_v39 = vadd.f32 %v1213_v24, %v1212_v17 }
 0x10c   : > { %v1163_v23 = vadd.f32 %v1162_v41, %v1161_v25  ;;  %v1170_v40 = vadd.f32 %v1169_v18, %v1168_v45  ;;  %v1177_v58 = vadd.f32 %v1176_v34, %v1175_v6  ;;  %v1184_v22 = vadd.f32 %v1183_v32, %v1182_v59 }
 0x10d   : > { %v1194_v19 = vrot.slane %v1193_v47, 1  ;;  %v1201_v31 = vrot.slane %v1200_v37, 1  ;;  %v1208_v60 = vrot.slane %v1207_v35, 1  ;;  %v1215_v5 = vrot.slane %v1214_v39, 1 }
 0x10e   : > { %v1164_v20 = vrot.slane %v1163_v23, 2  ;;  %v1171_v27 = vrot.slane %v1170_v40, 2  ;;  %v1178_v26 = vrot.slane %v1177_v58, 2  ;;  %v1185_v30 = vrot.slane %v1184_v22, 2 }
 0x10f   : > { %v1195_v46 = vadd.f32 %v1194_v19, %v1193_v47  ;;  %v1202_v42 = vadd.f32 %v1201_v31, %v1200_v37  ;;  %v1209_v15 = vadd.f32 %v1208_v60, %v1207_v35  ;;  %v1216_v54 = vadd.f32 %v1215_v5, %v1214_v39 }
 0x110   : > { %v1165_v44 = vadd.f32 %v1164_v20, %v1163_v23  ;;  %v1172_v57 = vadd.f32 %v1171_v27, %v1170_v40  ;;  %v1179_v12 = vadd.f32 %v1178_v26, %v1177_v58  ;;  %v1186_v24 = vadd.f32 %v1185_v30, %v1184_v22 }
 0x111   : > { %v1389_v41 = vmul.f32 0.001953125, %v1195_v46  ;;  %v1390_v18 = vmul.f32 0.001953125, %v1202_v42  ;;  %v1391_v34 = vmul.f32 0.001953125, %v1209_v15  ;;  %v1392_v16 = vmul.f32 0.001953125, %v1216_v54  ;;  %v363_v46 = vpop.xlane.xlu1 %362 }
 0x112   : > { %v1166_v63 = vrot.slane %v1165_v44, 1  ;;  %v1173_v8 = vrot.slane %v1172_v57, 1  ;;  %v1180_v17 = vrot.slane %v1179_v12, 1  ;;  %v1187_v25 = vrot.slane %v1186_v24, 1 }
 0x113   : > { %v1453_v45 = vsub.f32 %v1389_v41, %v5228_v9  ;;  %v1454_v6 = vsub.f32 %v1390_v18, %v5232_v33  ;;  %v1455_v59 = vsub.f32 %v1391_v34, %v5236_v38  ;;  %v1456_v32 = vsub.f32 %v1392_v16, %v5240_v21 }
 0x114   : > { %v1167_v20 = vadd.f32 %v1166_v63, %v1165_v44  ;;  %v1174_v27 = vadd.f32 %v1173_v8, %v1172_v57  ;;  %v1181_v26 = vadd.f32 %v1180_v17, %v1179_v12  ;;  %v1188_v30 = vadd.f32 %v1187_v25, %v1186_v24 }
 0x115   : > { %v1485_v42 = vmax.f32 %v1453_v45, 0.0  ;;  %v1486_v15 = vmax.f32 %v1454_v6, 0.0  ;;  %v1487_v54 = vmax.f32 %v1455_v59, 0.0  ;;  %v1488_v47 = vmax.f32 %v1456_v32, 0.0 }
 0x116   : > { %v1385_v37 = vmul.f32 0.001953125, %v1167_v20  ;;  %v1386_v35 = vmul.f32 0.001953125, %v1174_v27  ;;  %v1387_v39 = vmul.f32 0.001953125, %v1181_v26  ;;  %v1388_v23 = vmul.f32 0.001953125, %v1188_v30 }
 0x117   : > { %v1517_v9 = vadd.f32 1e-05, %v1485_v42  ;;  %v1518_v40 = vadd.f32 1e-05, %v1486_v15  ;;  %v1519_v33 = vadd.f32 1e-05, %v1487_v54  ;;  %v995_v38 = vrot.slane %v363_v46, %v5049_v1 }
 0x118   : > { %v1520_v58 = vadd.f32 1e-05, %v1488_v47  ;;  %v1449_v21 = vsub.f32 %v1385_v37, %v5164_v48  ;;  %v1450_v22 = vsub.f32 %v1386_v35, %v5168_v49  ;;  %v1451_v19 = vsub.f32 %v1387_v39, %v5172_v50 }
 0x119   : > { %4534 = vrsqrt.f32 %v1517_v9  ;;  %v1452_v31 = vsub.f32 %v1388_v23, %v5176_v51  ;;  %v1002_v60 = vrot.slane %v363_v46, %v5051_v2  ;;  %v1009_v5 = vrot.slane %v363_v46, %v5053_v3 }
 0x11a   : > { %4536 = vrsqrt.f32 %v1518_v40  ;;  %v1481_v44 = vmax.f32 %v1449_v21, 0.0  ;;  %v1482_v57 = vmax.f32 %v1450_v22, 0.0  ;;  %v1483_v12 = vmax.f32 %v1451_v19, 0.0 }
 0x11b   : > { %4538 = vrsqrt.f32 %v1519_v33  ;;  %v1484_v24 = vmax.f32 %v1452_v31, 0.0  ;;  %v1016_v41 = vrot.slane %v363_v46, %v5055_v4  ;;  %v1245_v48 = vsel %vm640_vm0, %v995_v38, 0.0  ;;  %v5367_v46 = vpop.xlane.xlu0 %359 }
 0x11c   : > { %4540 = vrsqrt.f32 %v1520_v58  ;;  %v1513_v49 = vadd.f32 1e-05, %v1481_v44  ;;  %v1514_v50 = vadd.f32 1e-05, %v1482_v57  ;;  %v1515_v18 = vadd.f32 1e-05, %v1483_v12 }
 0x11d   : > { %v1516_v34 = vadd.f32 1e-05, %v1484_v24  ;;  %v1246_v51 = vrot.slane %v1245_v48, 4  ;;  %v1252_v16 = vsel %vm640_vm0, %v1002_v60, 0.0  ;;  %v1259_v63 = vsel %vm640_vm0, %v1009_v5, 0.0 }
 0x11e   : > { %4542 = vrsqrt.f32 %v1513_v49  ;;  %v1253_v8 = vrot.slane %v1252_v16, 4  ;;  %v1260_v17 = vrot.slane %v1259_v63, 4  ;;  %v1266_v25 = vsel %vm640_vm0, %v1016_v41, 0.0 }
 0x11f   : > { %v6617_v45 = vrot.slane %v5290_v11, 2  ;;  %4544 = vrsqrt.f32 %v1514_v50  ;;  %v1247_v59 = vadd.f32 %v1246_v51, %v1245_v48  ;;  %v1267_v32 = vrot.slane %v1266_v25, 4 }
 0x120   : > { %v6618_v20 = vrot.slane %v5292_v10, 2  ;;  %4546 = vrsqrt.f32 %v1515_v18  ;;  %v1254_v26 = vadd.f32 %v1253_v8, %v1252_v16  ;;  %v1261_v30 = vadd.f32 %v1260_v17, %v1259_v63 }
 0x121   : > { %v5360_v6 = vadd.f32 %v6617_v45, %v5290_v11  ;;  %v6619_v42 = vrot.slane %v5294_v29, 2  ;;  %4548 = vrsqrt.f32 %v1516_v34  ;;  %v1248_v11 = vrot.slane %v1247_v59, 2 }
 0x122   : > { %v5365_v27 = vadd.f32 %v6618_v20, %v5292_v10  ;;  %v1268_v54 = vadd.f32 %v1267_v32, %v1266_v25  ;;  %v5375_v47 = vmul.f32 0.001953125, %v5316_v28  ;;  %v5378_v37 = vmul.f32 0.001953125, %v5325_v43 }
 0x123   : > { %v5372_v15 = vadd.f32 %v6619_v42, %v5294_v29  ;;  %v1255_v10 = vrot.slane %v1254_v26, 2  ;;  %v1262_v35 = vrot.slane %v1261_v30, 2  ;;  %v4535_v39 = vpop.eup %4534  ;;  %v1249_v23 = vadd.f32 %v1248_v11, %v1247_v59 }
 0x124   : > { %v1269_v9 = vrot.slane %v1268_v54, 2  ;;  %v967_v40 = vrot.slane %v5367_v46, %v5049_v1  ;;  %v974_v29 = vrot.slane %v5367_v46, %v5051_v2  ;;  %v4537_v33 = vpop.eup %4536  ;;  %v5385_v38 = vmul.f32 %v4535_v39, %v5085_v55 }
 0x125   : > { %v1256_v28 = vadd.f32 %v1255_v10, %v1254_v26  ;;  %v1263_v58 = vadd.f32 %v1262_v35, %v1261_v30  ;;  %v981_v43 = vrot.slane %v5367_v46, %v5053_v3  ;;  %v4539_v21 = vpop.eup %4538  ;;  %v6620_v22 = vcombine.high %v5085_v55, %v5085_v55 }
 0x126   : > { %v1250_v31 = vrot.slane %v1249_v23, 1  ;;  %v1270_v60 = vadd.f32 %v1269_v9, %v1268_v54  ;;  %v988_v5 = vrot.slane %v5367_v46, %v5055_v4  ;;  %v4541_v44 = vpop.eup %4540  ;;  %v5397_v57 = vmul.f32 %v4539_v21, %v5088_v56  ;;  %v6635_v46 = vld [vmem:[#allocation46_spill] sm:$0xff] }
 0x127   : > { %v5392_v19 = vmul.f32 %v4537_v33, %v6620_v22  ;;  %v1805_v12 = vmul.f32 %v5385_v38, %v5202_v0  ;;  %v1257_v24 = vrot.slane %v1256_v28, 1  ;;  %v1264_v41 = vrot.slane %v1263_v58, 1  ;;  %v6627_v33 = vld [vmem:[#allocation15_spill] sm:$0xff] }
 0x128   : > { %v6622_v48 = vcombine.high %v5088_v56, %v5088_v56  ;;  %v1251_v50 = vadd.f32 %v1250_v31, %v1249_v23  ;;  %v1271_v18 = vrot.slane %v1270_v60, 1  ;;  %v4543_v34 = vpop.eup %4542  ;;  %v1807_v51 = vmul.f32 %v5397_v57, %v5206_v53  ;;  %v6626_v23 = vld [vmem:[#allocation25_spill] sm:$0xff]  ;;  %v6629_v22 = vld [vmem:[#allocation27_spill] sm:$0xff]  ;;  %v6630_v31 = vld [vmem:[#allocation16_spill] sm:$0xff] }
 0x129   : > { %6621 = vst [vmem:[#allocation48_spill] sm:$0xff] %v5392_v19  ;;  %v1806_v49 = vmul.f32 %v5392_v19, %v5204_v52  ;;  %v1258_v16 = vadd.f32 %v1257_v24, %v1256_v28  ;;  %v1265_v63 = vadd.f32 %v1264_v41, %v1263_v58  ;;  %v1217_v0 = vsel %vm640_vm0, %v967_v40, 0.0  ;;  %v4545_v8 = vpop.eup %4544  ;;  %v6628_v58 = vld [vmem:[#allocation26_spill] sm:$0xff] }
 0x12a   : > { %v5404_v55 = vmul.f32 %v4541_v44, %v6622_v48  ;;  %v5414_v25 = vmul.f32 %v4543_v34, %v5091_v61  ;;  %v1272_v45 = vadd.f32 %v1271_v18, %v1270_v60  ;;  %v4547_v52 = vpop.eup %4546  ;;  %v6624_v59 = vcombine.high %v5091_v61, %v5091_v61  ;;  %v6631_v44 = vld [vmem:[#allocation28_spill] sm:$0xff] }
 0x12b   : > { %v1882_v56 = vcombine.low %v1805_v12, %v1806_v49  ;;  %v1397_v53 = vmul.f32 0.001953125, %v1251_v50  ;;  %v1398_v20 = vmul.f32 0.001953125, %v1258_v16  ;;  %v1399_v26 = vmul.f32 0.001953125, %v1265_v63  ;;  %v4549_v30 = vpop.eup %4548 }
 0x12c   : > { %v1808_v17 = vmul.f32 %v5404_v55, %v5208_v36  ;;  %6623 = vst [vmem:[#allocation49_spill] sm:$0xff] %v5414_v25  ;;  %v5419_v32 = vmul.f32 %v4545_v8, %v6624_v59  ;;  %v5423_v36 = vmul.f32 %v4547_v52, %v5094_v62  ;;  %v1801_v54 = vmul.f32 %v5414_v25, %v5138_v13 }
 0x12d   : > { %v1890_v11 = vrot.slane %v1882_v56, %v5060_v7  ;;  %v6625_v10 = vcombine.high %v5094_v62, %v5094_v62  ;;  %v1400_v39 = vmul.f32 0.001953125, %v1272_v45  ;;  %v1461_v9 = vsub.f32 %v1397_v53, %v6626_v23  ;;  %v1794_v62 = vld [vmem:[%s6517_s2 + $0x8] sm:$0xff]  ;;  %v1793_v53 = vld [vmem:[%s6517_s2] sm:$0xff] }
 0x12e   : > { %v1883_v42 = vcombine.low %v1807_v51, %v1808_v17  ;;  %v1802_v61 = vmul.f32 %v5419_v32, %v5140_v14  ;;  %v1803_v28 = vmul.f32 %v5423_v36, %v6627_v33  ;;  %v1462_v21 = vsub.f32 %v1398_v20, %v6628_v58  ;;  %v1579_v20 = vld [vmem:[%s6576_s1 + $0x10] sm:$0xff]  ;;  %v6633_v23 = vld [vmem:[#allocation45_spill] sm:$0xff] }
 0x12f   : > { %v5430_v35 = vmul.f32 %v4549_v30, %v6625_v10  ;;  %v1463_v13 = vsub.f32 %v1399_v26, %v6629_v22  ;;  %v1464_v12 = vsub.f32 %v1400_v39, %v6631_v44  ;;  %v1493_v24 = vmax.f32 %v1461_v9, 0.0 }
 0x130   : > { %v1897_v40 = vrot.slane %v1883_v42, %v5060_v7  ;;  %v1865_v14 = vcombine.low %v1801_v54, %v1802_v61  ;;  %v1494_v48 = vmax.f32 %v1462_v21, 0.0  ;;  %v1218_v50 = vrot.slane %v1217_v0, 4  ;;  %v369_v54 = vpop.xlane.xlu1 %368 }
 0x131   : > { %v1804_v60 = vmul.f32 %v5430_v35, %v6630_v31  ;;  %v1495_v49 = vmax.f32 %v1463_v13, 0.0  ;;  %v1496_v51 = vmax.f32 %v1464_v12, 0.0  ;;  %v1525_v16 = vadd.f32 1e-05, %v1493_v24 }
 0x132   : > { %v1898_v41 = vcombine.low %v1890_v11, %v1897_v40  ;;  %v1873_v34 = vrot.slane %v1865_v14, %v5060_v7  ;;  %v1526_v8 = vadd.f32 1e-05, %v1494_v48  ;;  %v1219_v56 = vadd.f32 %v1218_v50, %v1217_v0 }
 0x133   : > { %v1866_v18 = vcombine.low %v1803_v28, %v1804_v60  ;;  %v1527_v17 = vadd.f32 1e-05, %v1495_v49  ;;  %v1528_v52 = vadd.f32 1e-05, %v1496_v51  ;;  %4550 = vrsqrt.f32 %v1525_v16 }
 0x134   : > { %v5447_v63 = vsub.f32 %v1794_v62, %v1898_v41  ;;  %v1224_v59 = vsel %vm640_vm0, %v974_v29, 0.0  ;;  %4552 = vrsqrt.f32 %v1526_v8  ;;  %v1220_v26 = vrot.slane %v1219_v56, 2 }
 0x135   : > { %v1880_v45 = vrot.slane %v1866_v18, %v5060_v7  ;;  %v1225_v0 = vrot.slane %v1224_v59, 4  ;;  %v1231_v30 = vsel %vm640_vm0, %v981_v43, 0.0  ;;  %4554 = vrsqrt.f32 %v1527_v17 }
 0x136   : > { %6632 = vst [vmem:[#allocation50_spill] sm:$0xff] %v5447_v63  ;;  %v1232_v11 = vrot.slane %v1231_v30, 4  ;;  %v1238_v29 = vsel %vm640_vm0, %v988_v5, 0.0  ;;  %4556 = vrsqrt.f32 %v1528_v52  ;;  %v1221_v10 = vadd.f32 %v1220_v26, %v1219_v56 }
 0x137   : > { %v1881_v42 = vcombine.low %v1873_v34, %v1880_v45  ;;  %v1226_v61 = vadd.f32 %v1225_v0, %v1224_v59  ;;  %v1239_v39 = vrot.slane %v1238_v29, 4  ;;  %v5469_v9 = vmul.f32 0.001953125, %v6633_v23  ;;  %v6636_v59 = vld [vmem:[#allocation9_spill] sm:$0xff]  ;;  %v6639_v23 = vld [vmem:[#allocation10_spill] sm:$0xff] }
 0x138   : > { %v1627_v33 = vcombine.high %v1579_v20, %v1579_v20  ;;  %v1233_v43 = vadd.f32 %v1232_v11, %v1231_v30  ;;  %v1222_v28 = vrot.slane %v1221_v10, 1  ;;  %v1051_v22 = vrot.slane %v369_v54, %v5049_v1  ;;  %v6637_v0 = vld [vmem:[#allocation17_spill] sm:$0xff] }
 0x139   : > { %v5471_v40 = vsub.f32 %v1793_v53, %v1881_v42  ;;  %v1227_v58 = vrot.slane %v1226_v61, 2  ;;  %v1240_v21 = vadd.f32 %v1239_v39, %v1238_v29  ;;  %v5475_v13 = vmul.f32 0.001953125, %v6635_v46 }
 0x13a   : > { %v5478_v5 = vrot.slane %v1579_v20, %v5060_v7  ;;  %v1234_v62 = vrot.slane %v1233_v43, 2  ;;  %v1058_v31 = vrot.slane %v369_v54, %v5051_v2  ;;  %v1223_v60 = vadd.f32 %v1222_v28, %v1221_v10 }
 0x13b   : > { %6634 = vst [vmem:[#allocation51_spill] sm:$0xff] %v5471_v40  ;;  %v1228_v14 = vadd.f32 %v1227_v58, %v1226_v61  ;;  %v1241_v44 = vrot.slane %v1240_v21, 2  ;;  %v1065_v12 = vrot.slane %v369_v54, %v5053_v3  ;;  %v5483_v24 = vrot.slane %v1627_v33, %v5060_v7 }
 0x13c   : > { %v1235_v41 = vadd.f32 %v1234_v62, %v1233_v43  ;;  %v1072_v48 = vrot.slane %v369_v54, %v5055_v4  ;;  %v1301_v49 = vsel %vm640_vm0, %v1051_v22, 0.0  ;;  %v1393_v34 = vmul.f32 0.001953125, %v1223_v60  ;;  %v6640_v43 = vld [vmem:[#allocation21_spill] sm:$0xff]  ;;  %v6642_v62 = vld [vmem:[#allocation22_spill] sm:$0xff] }
 0x13d   : > { %v1229_v50 = vrot.slane %v1228_v14, 1  ;;  %v1242_v18 = vadd.f32 %v1241_v44, %v1240_v21  ;;  %v1302_v51 = vrot.slane %v1301_v49, 4  ;;  %v4551_v16 = vpop.eup %4550  ;;  %v1308_v17 = vsel %vm640_vm0, %v1058_v31, 0.0  ;;  %v6643_v44 = vld [vmem:[#allocation23_spill] sm:$0xff] }
 0x13e   : > { %v1236_v8 = vrot.slane %v1235_v41, 1  ;;  %v1315_v56 = vsel %vm640_vm0, %v1065_v12, 0.0  ;;  %v1322_v45 = vsel %vm640_vm0, %v1072_v48, 0.0  ;;  %v4553_v52 = vpop.eup %4552  ;;  %v5491_v53 = vmul.f32 %v4551_v16, %v6636_v59  ;;  %v6644_v48 = vld [vmem:[#allocation18_spill] sm:$0xff]  ;;  %v6646_v16 = vld [vmem:[#allocation19_spill] sm:$0xff] }
 0x13f   : > { %v1230_v20 = vadd.f32 %v1229_v50, %v1228_v14  ;;  %v1243_v26 = vrot.slane %v1242_v18, 1  ;;  %v1457_v30 = vsub.f32 %v1393_v34, %v6637_v0  ;;  %v4555_v42 = vpop.eup %4554  ;;  %v6638_v11 = vcombine.high %v6636_v59, %v6636_v59  ;;  %v6645_v34 = vld [vmem:[#allocation24_spill] sm:$0xff] }
 0x140   : > { %v1237_v54 = vadd.f32 %v1236_v8, %v1235_v41  ;;  %v1303_v10 = vadd.f32 %v1302_v51, %v1301_v49  ;;  %v1309_v61 = vrot.slane %v1308_v17, 4  ;;  %v4557_v39 = vpop.eup %4556  ;;  %v5500_v33 = vmul.f32 %v4555_v42, %v6639_v23  ;;  %v6647_v59 = vld [vmem:[#allocation20_spill] sm:$0xff] }
 0x141   : > { %v5497_v29 = vmul.f32 %v4553_v52, %v6638_v11  ;;  %v1813_v28 = vmul.f32 %v5491_v53, %v6640_v43  ;;  %v1244_v58 = vadd.f32 %v1243_v26, %v1242_v18  ;;  %v1394_v21 = vmul.f32 0.001953125, %v1230_v20 }
 0x142   : > { %v6641_v22 = vcombine.high %v6639_v23, %v6639_v23  ;;  %v1395_v60 = vmul.f32 0.001953125, %v1237_v54  ;;  %v1489_v14 = vmax.f32 %v1457_v30, 0.0  ;;  %v1815_v12 = vmul.f32 %v5500_v33, %v6643_v44 }
 0x143   : > { %v1814_v31 = vmul.f32 %v5497_v29, %v6642_v62  ;;  %v1396_v41 = vmul.f32 0.001953125, %v1244_v58  ;;  %v1458_v49 = vsub.f32 %v1394_v21, %v6644_v48  ;;  %v1304_v50 = vrot.slane %v1303_v10, 2 }
 0x144   : > { %v5507_v46 = vmul.f32 %v4557_v39, %v6641_v22  ;;  %v1459_v8 = vsub.f32 %v1395_v60, %v6646_v16  ;;  %v1521_v52 = vadd.f32 1e-05, %v1489_v14  ;;  %v1310_v42 = vadd.f32 %v1309_v61, %v1308_v17 }
 0x145   : > { %v1916_v51 = vcombine.low %v1813_v28, %v1814_v31  ;;  %v1460_v20 = vsub.f32 %v1396_v41, %v6647_v59  ;;  %v1490_v26 = vmax.f32 %v1458_v49, 0.0  ;;  %v1305_v0 = vadd.f32 %v1304_v50, %v1303_v10  ;;  %v1796_v31 = vld [vmem:[%s6517_s2 + $0x18] sm:$0xff]  ;;  %v5529_v49 = vld [vmem:[%s6576_s1 + $0x28] sm:$0xff] }
 0x146   : > { %v1816_v18 = vmul.f32 %v5507_v46, %v6645_v34  ;;  %v1491_v54 = vmax.f32 %v1459_v8, 0.0  ;;  %4558 = vrsqrt.f32 %v1521_v52  ;;  %v1311_v58 = vrot.slane %v1310_v42, 2  ;;  %v6648_v41 = vld [vmem:[#allocation47_spill] sm:$0xff]  ;;  %v6650_v52 = vld [vmem:[#allocation37_spill] sm:$0xff] }
 0x147   : > { %v1924_v11 = vrot.slane %v1916_v51, %v5060_v7  ;;  %v1492_v39 = vmax.f32 %v1460_v20, 0.0  ;;  %v1522_v23 = vadd.f32 1e-05, %v1490_v26  ;;  %v1306_v43 = vrot.slane %v1305_v0, 1 }
 0x148   : > { %v1917_v30 = vcombine.low %v1815_v12, %v1816_v18  ;;  %v1523_v28 = vadd.f32 1e-05, %v1491_v54  ;;  %v1316_v22 = vrot.slane %v1315_v56, 4  ;;  %v1323_v62 = vrot.slane %v1322_v45, 4  ;;  %v5523_v12 = vpop.xlane.xlu0 %365 }
 0x149   : > { %v1524_v10 = vadd.f32 1e-05, %v1492_v39  ;;  %4560 = vrsqrt.f32 %v1522_v23  ;;  %v1307_v17 = vadd.f32 %v1306_v43, %v1305_v0  ;;  %v1312_v61 = vadd.f32 %v1311_v58, %v1310_v42 }
 0x14a   : > { %v1931_v21 = vrot.slane %v1917_v30, %v5060_v7  ;;  %4562 = vrsqrt.f32 %v1523_v28  ;;  %v1317_v14 = vadd.f32 %v1316_v22, %v1315_v56  ;;  %v1324_v44 = vadd.f32 %v1323_v62, %v1322_v45 }
 0x14b   : > { %4564 = vrsqrt.f32 %v1524_v10  ;;  %v1313_v50 = vrot.slane %v1312_v61, 1  ;;  %v1405_v34 = vmul.f32 0.001953125, %v1307_v17  ;;  %v1642_v51 = vcombine.high %v5478_v5, %v5478_v5 }
 0x14c   : > { %v1932_v60 = vcombine.low %v1924_v11, %v1931_v21  ;;  %v1318_v16 = vrot.slane %v1317_v14, 2  ;;  %v1325_v56 = vrot.slane %v1324_v44, 2  ;;  %v1643_v45 = vcombine.high %v5483_v24, %v5483_v24 }
 0x14d   : > { %v1314_v8 = vadd.f32 %v1313_v50, %v1312_v61  ;;  %v1469_v59 = vsub.f32 %v1405_v34, %v6650_v52  ;;  %v1023_v20 = vrot.slane %v5523_v12, %v5049_v1  ;;  %v1678_v26 = vcombine.high %v5529_v49, %v5529_v49  ;;  %v6652_v34 = vld [vmem:[#allocation11_spill] sm:$0xff] }
 0x14e   : > { %v5531_v18 = vsub.f32 %v1796_v31, %v1932_v60  ;;  %v1319_v0 = vadd.f32 %v1318_v16, %v1317_v14  ;;  %v1326_v42 = vadd.f32 %v1325_v56, %v1324_v44  ;;  %v1030_v30 = vrot.slane %v5523_v12, %v5051_v2  ;;  %v6651_v31 = vld [vmem:[#allocation38_spill] sm:$0xff] }
 0x14f   : > { %v5546_v11 = vrot.slane %v5529_v49, %v5060_v7  ;;  %v1406_v54 = vmul.f32 0.001953125, %v1314_v8  ;;  %v1501_v39 = vmax.f32 %v1469_v59, 0.0  ;;  %v1037_v23 = vrot.slane %v5523_v12, %v5053_v3 }
 0x150   : > { %6649 = vst [vmem:[#allocation52_spill] sm:$0xff] %v5531_v18  ;;  %v4559_v43 = vpop.eup %4558  ;;  %v1320_v58 = vrot.slane %v1319_v0, 1  ;;  %v1327_v21 = vrot.slane %v1326_v42, 1  ;;  %v1044_v28 = vrot.slane %v5523_v12, %v5055_v4  ;;  %v1273_v22 = vsel %vm640_vm0, %v1023_v20, 0.0  ;;  %v6679_v18 = vld [vmem:[#allocation34_spill] sm:$0xff] }
 0x151   : > { %v5554_v62 = vmul.f32 %v4559_v43, %v5478_v5  ;;  %v1470_v10 = vsub.f32 %v1406_v54, %v6651_v31  ;;  %v1533_v17 = vadd.f32 1e-05, %v1501_v39  ;;  %v1274_v61 = vrot.slane %v1273_v22, 4  ;;  %v6656_v43 = vld [vmem:[#allocation12_spill] sm:$0xff] }
 0x152   : > { %v1321_v60 = vadd.f32 %v1320_v58, %v1319_v0  ;;  %v1328_v14 = vadd.f32 %v1327_v21, %v1326_v42  ;;  %v1280_v44 = vsel %vm640_vm0, %v1030_v30, 0.0  ;;  %v1287_v49 = vsel %vm640_vm0, %v1037_v23, 0.0  ;;  %v6657_v21 = vld [vmem:[#allocation39_spill] sm:$0xff]  ;;  %v6658_v31 = vld [vmem:[#allocation40_spill] sm:$0xff] }
 0x153   : > { %v4561_v50 = vpop.eup %4560  ;;  %v1809_v16 = vmul.f32 %v5554_v62, %v6652_v34  ;;  %v1502_v12 = vmax.f32 %v1470_v10, 0.0  ;;  %4566 = vrsqrt.f32 %v1533_v17  ;;  %v1275_v56 = vadd.f32 %v1274_v61, %v1273_v22  ;;  %v6659_v10 = vld [vmem:[#allocation13_spill] sm:$0xff] }
 0x154   : > { %v4563_v8 = vpop.eup %4562  ;;  %v5561_v5 = vmul.f32 %v4561_v50, %v1642_v51  ;;  %v1407_v52 = vmul.f32 0.001953125, %v1321_v60  ;;  %v1408_v59 = vmul.f32 0.001953125, %v1328_v14  ;;  %v1281_v20 = vrot.slane %v1280_v44, 4 }
 0x155   : > { %v4565_v54 = vpop.eup %4564  ;;  %v5564_v0 = vmul.f32 %v4563_v8, %v5483_v24  ;;  %v1534_v42 = vadd.f32 1e-05, %v1502_v12  ;;  %v1276_v30 = vrot.slane %v1275_v56, 2  ;;  %v1288_v39 = vrot.slane %v1287_v49, 4  ;;  %v6660_v24 = vld [vmem:[#allocation14_spill] sm:$0xff] }
 0x156   : > { %6653 = vst [vmem:[#allocation53_spill] sm:$0xff] %v5561_v5  ;;  %v5566_v23 = vmul.f32 %v4565_v54, %v1643_v45  ;;  %v1810_v58 = vmul.f32 %v5561_v5, %v6656_v43  ;;  %v1471_v22 = vsub.f32 %v1407_v52, %v6657_v21  ;;  %v1472_v51 = vsub.f32 %v1408_v59, %v6658_v31 }
 0x157   : > { %6654 = vst [vmem:[#allocation54_spill] sm:$0xff] %v5564_v0  ;;  %v1811_v17 = vmul.f32 %v5564_v0, %v6659_v10  ;;  %4568 = vrsqrt.f32 %v1534_v42  ;;  %v1277_v61 = vadd.f32 %v1276_v30, %v1275_v56  ;;  %v1282_v60 = vadd.f32 %v1281_v20, %v1280_v44 }
 0x158   : > { %6655 = vst [vmem:[#allocation55_spill] sm:$0xff] %v5566_v23  ;;  %v1812_v14 = vmul.f32 %v5566_v23, %v6660_v24  ;;  %v1899_v50 = vcombine.low %v1809_v16, %v1810_v58  ;;  %v1503_v34 = vmax.f32 %v1471_v22, 0.0  ;;  %v1504_v45 = vmax.f32 %v1472_v51, 0.0 }
 0x159   : > { %v1278_v12 = vrot.slane %v1277_v61, 1  ;;  %v1283_v8 = vrot.slane %v1282_v60, 2  ;;  %v1289_v54 = vadd.f32 %v1288_v39, %v1287_v49  ;;  %v1294_v43 = vsel %vm640_vm0, %v1044_v28, 0.0  ;;  %v1795_v28 = vld [vmem:[%s6517_s2 + $0x10] sm:$0xff]  ;;  %v1581_v49 = vld [vmem:[%s6576_s1 + $0x20] sm:$0xff] }
 0x15a   : > { %v1900_v52 = vcombine.low %v1811_v17, %v1812_v14  ;;  %v1907_v59 = vrot.slane %v1899_v50, %v5060_v7  ;;  %v1535_v21 = vadd.f32 1e-05, %v1503_v34  ;;  %v1536_v31 = vadd.f32 1e-05, %v1504_v45  ;;  %v375_v45 = vpop.xlane.xlu1 %374 }
 0x15b   : > { %v1279_v10 = vadd.f32 %v1278_v12, %v1277_v61  ;;  %v1284_v42 = vadd.f32 %v1283_v8, %v1282_v60  ;;  %v1290_v56 = vrot.slane %v1289_v54, 2  ;;  %v1295_v44 = vrot.slane %v1294_v43, 4  ;;  %v6665_v12 = vld [vmem:[#allocation42_spill] sm:$0xff] }
 0x15c   : > { %v1914_v16 = vrot.slane %v1900_v52, %v5060_v7  ;;  %v1692_v30 = vrot.slane %v1678_v26, %v5060_v7  ;;  %4570 = vrsqrt.f32 %v1535_v21  ;;  %v1693_v61 = vcombine.high %v5546_v11, %v5546_v11 }
 0x15d   : > { %v4567_v58 = vpop.eup %4566  ;;  %4572 = vrsqrt.f32 %v1536_v31  ;;  %v1285_v39 = vrot.slane %v1284_v42, 1  ;;  %v1291_v22 = vadd.f32 %v1290_v56, %v1289_v54  ;;  %v1296_v51 = vadd.f32 %v1295_v44, %v1294_v43  ;;  %v6663_v43 = vld [vmem:[#allocation41_spill] sm:$0xff] }
 0x15e   : > { %v1915_v17 = vcombine.low %v1907_v59, %v1914_v16  ;;  %v5590_v26 = vmul.f32 %v4567_v58, %v5546_v11  ;;  %v1401_v60 = vmul.f32 0.001953125, %v1279_v10  ;;  %v1661_v54 = vcombine.high %v1581_v49, %v1581_v49  ;;  %v6664_v10 = vld [vmem:[#allocation29_spill] sm:$0xff] }
 0x15f   : > { %v1286_v14 = vadd.f32 %v1285_v39, %v1284_v42  ;;  %v1292_v50 = vrot.slane %v1291_v22, 1  ;;  %v1297_v34 = vrot.slane %v1296_v51, 2  ;;  %v1694_v21 = vcombine.high %v1692_v30, %v1692_v30 }
 0x160   : > { %6661 = vst [vmem:[#allocation56_spill] sm:$0xff] %v5590_v26  ;;  %v5594_v8 = vsub.f32 %v1795_v28, %v1915_v17  ;;  %v1465_v52 = vsub.f32 %v1401_v60, %v6663_v43  ;;  %v1821_v42 = vmul.f32 %v5590_v26, %v6664_v10  ;;  %v1107_v58 = vrot.slane %v375_v45, %v5049_v1  ;;  %v6666_v43 = vld [vmem:[#allocation30_spill] sm:$0xff] }
 0x161   : > { %v4569_v59 = vpop.eup %4568  ;;  %v1293_v31 = vadd.f32 %v1292_v50, %v1291_v22  ;;  %v1298_v56 = vadd.f32 %v1297_v34, %v1296_v51  ;;  %v1402_v11 = vmul.f32 0.001953125, %v1286_v14  ;;  %v5603_v39 = vrot.slane %v1581_v49, %v5060_v7  ;;  %v6667_v34 = vld [vmem:[#allocation43_spill] sm:$0xff] }
 0x162   : > { %6662 = vst [vmem:[#allocation57_spill] sm:$0xff] %v5594_v8  ;;  %v5597_v44 = vmul.f32 %v4569_v59, %v1693_v61  ;;  %v1497_v16 = vmax.f32 %v1465_v52, 0.0  ;;  %v5609_v51 = vrot.slane %v1661_v54, %v5060_v7  ;;  %v1114_v14 = vrot.slane %v375_v45, %v5051_v2 }
 0x163   : > { %v1299_v28 = vrot.slane %v1298_v56, 1  ;;  %v1403_v17 = vmul.f32 0.001953125, %v1293_v31  ;;  %v1466_v60 = vsub.f32 %v1402_v11, %v6665_v12  ;;  %v1121_v49 = vrot.slane %v375_v45, %v5053_v3 }
 0x164   : > { %v1822_v22 = vmul.f32 %v5597_v44, %v6666_v43  ;;  %v1529_v61 = vadd.f32 1e-05, %v1497_v16  ;;  %v1128_v12 = vrot.slane %v375_v45, %v5055_v4  ;;  %v1357_v31 = vsel %vm640_vm0, %v1107_v58, 0.0  ;;  %v6672_v58 = vld [vmem:[#allocation32_spill] sm:$0xff] }
 0x165   : > { %v1300_v50 = vadd.f32 %v1299_v28, %v1298_v56  ;;  %v1467_v52 = vsub.f32 %v1403_v17, %v6667_v34  ;;  %v1498_v59 = vmax.f32 %v1466_v60, 0.0  ;;  %v1358_v28 = vrot.slane %v1357_v31, 4  ;;  %v6670_v60 = vld [vmem:[#allocation31_spill] sm:$0xff] }
 0x166   : > { %v4571_v10 = vpop.eup %4570  ;;  %v1950_v24 = vcombine.low %v1821_v42, %v1822_v22  ;;  %4574 = vrsqrt.f32 %v1529_v61  ;;  %v1364_v17 = vsel %vm640_vm0, %v1114_v14, 0.0  ;;  %v6671_v22 = vld [vmem:[#allocation44_spill] sm:$0xff] }
 0x167   : > { %v4573_v11 = vpop.eup %4572  ;;  %v5616_v43 = vmul.f32 %v4571_v10, %v1692_v30  ;;  %v1404_v54 = vmul.f32 0.001953125, %v1300_v50  ;;  %v1499_v16 = vmax.f32 %v1467_v52, 0.0  ;;  %v1530_v20 = vadd.f32 1e-05, %v1498_v59 }
 0x168   : > { %v5618_v48 = vmul.f32 %v4573_v11, %v1694_v21  ;;  %v1958_v56 = vrot.slane %v1950_v24, %v5060_v7  ;;  %v1359_v50 = vadd.f32 %v1358_v28, %v1357_v31  ;;  %v1365_v34 = vrot.slane %v1364_v17, 4 }
 0x169   : > { %6668 = vst [vmem:[#allocation58_spill] sm:$0xff] %v5616_v43  ;;  %v1823_v42 = vmul.f32 %v5616_v43, %v6670_v60  ;;  %v1468_v45 = vsub.f32 %v1404_v54, %v6671_v22  ;;  %v1531_v61 = vadd.f32 1e-05, %v1499_v16  ;;  %4576 = vrsqrt.f32 %v1530_v20  ;;  %v6680_v43 = vld [vmem:[#allocation35_spill] sm:$0xff] }
 0x16a   : > { %6669 = vst [vmem:[#allocation59_spill] sm:$0xff] %v5618_v48  ;;  %v1824_v30 = vmul.f32 %v5618_v48, %v6672_v58  ;;  %v1371_v21 = vsel %vm640_vm0, %v1121_v49, 0.0  ;;  %v1378_v59 = vsel %vm640_vm0, %v1128_v12, 0.0  ;;  %v1360_v10 = vrot.slane %v1359_v50, 2 }
 0x16b   : > { %v1500_v52 = vmax.f32 %v1468_v45, 0.0  ;;  %4578 = vrsqrt.f32 %v1531_v61  ;;  %v1372_v24 = vrot.slane %v1371_v21, 4  ;;  %v1366_v11 = vadd.f32 %v1365_v34, %v1364_v17  ;;  %v1798_v17 = vld [vmem:[%s6517_s2 + $0x28] sm:$0xff] }
 0x16c   : > { %v1951_v14 = vcombine.low %v1823_v42, %v1824_v30  ;;  %v1379_v60 = vrot.slane %v1378_v59, 4  ;;  %v6673_v54 = vrot.slane %v6648_v41, 1  ;;  %v6674_v31 = vrot.slane %v5360_v6, 1 }
 0x16d   : > { %v1532_v49 = vadd.f32 1e-05, %v1500_v52  ;;  %v1373_v28 = vadd.f32 %v1372_v24, %v1371_v21  ;;  %v1361_v45 = vadd.f32 %v1360_v10, %v1359_v50  ;;  %v1367_v12 = vrot.slane %v1366_v11, 2 }
 0x16e   : > { %v5632_v20 = vadd.f32 %v6673_v54, %v6648_v41  ;;  %v5637_v16 = vadd.f32 %v6674_v31, %v5360_v6  ;;  %v1965_v22 = vrot.slane %v1951_v14, %v5060_v7  ;;  %v1380_v42 = vadd.f32 %v1379_v60, %v1378_v59  ;;  %v5659_v60 = vld [vmem:[%s6576_s1 + $0x38] sm:$0xff]  ;;  %v372_v31 = vpop.xlane.xlu0 %371 }
 0x16f   : > { %v1676_v41 = vcombine.high %v5603_v39, %v5603_v39  ;;  %v1677_v61 = vcombine.high %v5609_v51, %v5609_v51  ;;  %4580 = vrsqrt.f32 %v1532_v49  ;;  %v1374_v6 = vrot.slane %v1373_v28, 2  ;;  %v6676_v49 = vld [vmem:[#allocation33_spill] sm:$0xff] }
 0x170   : > { %v4575_v58 = vpop.eup %4574  ;;  %v1966_v30 = vcombine.low %v1958_v56, %v1965_v22  ;;  %v1362_v34 = vrot.slane %v1361_v45, 1  ;;  %v1368_v21 = vadd.f32 %v1367_v12, %v1366_v11  ;;  %v1381_v52 = vrot.slane %v1380_v42, 2 }
 0x171   : > { %v5648_v50 = vmul.f32 %v4575_v58, %v5603_v39  ;;  %v1445_v24 = vmul.f32 %v5375_v47, %v5375_v47  ;;  %v1446_v59 = vmul.f32 %v5378_v37, %v5378_v37  ;;  %v1375_v14 = vadd.f32 %v1374_v6, %v1373_v28 }
 0x172   : > { %v5654_v10 = vsub.f32 %v1798_v17, %v1966_v30  ;;  %v1363_v56 = vadd.f32 %v1362_v34, %v1361_v45  ;;  %v1369_v11 = vrot.slane %v1368_v21, 1  ;;  %v1382_v54 = vadd.f32 %v1381_v52, %v1380_v42 }
 0x173   : > { %v4577_v39 = vpop.eup %4576  ;;  %v1817_v22 = vmul.f32 %v5648_v50, %v6676_v49  ;;  %v1447_v12 = vmul.f32 %v5469_v9, %v5469_v9  ;;  %v1448_v28 = vmul.f32 %v5475_v13, %v5475_v13  ;;  %v1376_v17 = vrot.slane %v1375_v14, 1 }
 0x174   : > { %6675 = vst [vmem:[#allocation60_spill] sm:$0xff] %v5654_v10  ;;  %v5667_v6 = vmul.f32 %v4577_v39, %v1676_v41  ;;  %v1370_v58 = vadd.f32 %v1369_v11, %v1368_v21  ;;  %v1383_v30 = vrot.slane %v1382_v54, 1  ;;  %v1413_v10 = vmul.f32 0.001953125, %v1363_v56 }
 0x175   : > { %v4579_v45 = vpop.eup %4578  ;;  %v1712_v42 = vcombine.high %v5659_v60, %v5659_v60  ;;  %v1377_v34 = vadd.f32 %v1376_v17, %v1375_v14  ;;  %v1079_v52 = vrot.slane %v372_v31, %v5049_v1  ;;  %v1086_v49 = vrot.slane %v372_v31, %v5051_v2 }
 0x176   : > { %6677 = vst [vmem:[#allocation61_spill] sm:$0xff] %v5667_v6  ;;  %v5674_v8 = vmul.f32 %v4579_v45, %v5609_v51  ;;  %v1818_v40 = vmul.f32 %v5667_v6, %v6679_v18  ;;  %v1384_v41 = vadd.f32 %v1383_v30, %v1382_v54  ;;  %v1414_v39 = vmul.f32 0.001953125, %v1370_v58 }
 0x177   : > { %v1415_v21 = vmul.f32 0.001953125, %v1377_v34  ;;  %v1477_v11 = vsub.f32 %v1413_v10, %v1445_v24  ;;  %v1093_v56 = vrot.slane %v372_v31, %v5053_v3  ;;  %v1100_v63 = vrot.slane %v372_v31, %v5055_v4 }
 0x178   : > { %6678 = vst [vmem:[#allocation62_spill] sm:$0xff] %v5674_v8  ;;  %v1819_v14 = vmul.f32 %v5674_v8, %v6680_v43  ;;  %v1933_v17 = vcombine.low %v1817_v22, %v1818_v40  ;;  %v1416_v1 = vmul.f32 0.001953125, %v1384_v41  ;;  %v1478_v2 = vsub.f32 %v1414_v39, %v1446_v59  ;;  %v6681_v40 = vld [vmem:[#allocation36_spill] sm:$0xff] }
 0x179   : > { %v4581_v48 = vpop.eup %4580  ;;  %v1479_v51 = vsub.f32 %v1415_v21, %v1447_v12  ;;  %v1509_v45 = vmax.f32 %v1477_v11, 0.0  ;;  %v1329_v26 = vsel %vm640_vm0, %v1079_v52, 0.0  ;;  %v1336_v18 = vsel %vm640_vm0, %v1086_v49, 0.0 }
 0x17a   : > { %v5684_v54 = vmul.f32 %v4581_v48, %v1677_v61  ;;  %v1941_v24 = vrot.slane %v1933_v17, %v5060_v7  ;;  %v1480_v3 = vsub.f32 %v1416_v1, %v1448_v28  ;;  %v1510_v10 = vmax.f32 %v1478_v2, 0.0 }
 0x17b   : > { %v1511_v4 = vmax.f32 %v1479_v51, 0.0  ;;  %v1541_v31 = vadd.f32 1e-05, %v1509_v45  ;;  %v1330_v58 = vrot.slane %v1329_v26, 4  ;;  %v1337_v43 = vrot.slane %v1336_v18, 4 }
 0x17c   : > { %v1820_v59 = vmul.f32 %v5684_v54, %v6681_v40  ;;  %v1512_v22 = vmax.f32 %v1480_v3, 0.0  ;;  %v1542_v12 = vadd.f32 1e-05, %v1510_v10  ;;  %v1343_v30 = vsel %vm640_vm0, %v1093_v56, 0.0 }
 0x17d   : > { %v1543_v34 = vadd.f32 1e-05, %v1511_v4  ;;  %4582 = vrsqrt.f32 %v1541_v31  ;;  %v1331_v52 = vadd.f32 %v1330_v58, %v1329_v26  ;;  %v1338_v48 = vadd.f32 %v1337_v43, %v1336_v18  ;;  %v1797_v26 = vld [vmem:[%s6517_s2 + $0x20] sm:$0xff] }
 0x17e   : > { %v1934_v61 = vcombine.low %v1819_v14, %v1820_v59  ;;  %v1544_v49 = vadd.f32 1e-05, %v1512_v22  ;;  %4584 = vrsqrt.f32 %v1542_v12  ;;  %v1344_v1 = vrot.slane %v1343_v30, 4 }
 0x17f   : > { %4586 = vrsqrt.f32 %v1543_v34  ;;  %v1332_v28 = vrot.slane %v1331_v52, 2  ;;  %v1339_v41 = vrot.slane %v1338_v48, 2  ;;  %v1350_v39 = vsel %vm640_vm0, %v1100_v63, 0.0 }
 0x180   : > { %v1948_v21 = vrot.slane %v1934_v61, %v5060_v7  ;;  %4588 = vrsqrt.f32 %v1544_v49  ;;  %v1345_v11 = vadd.f32 %v1344_v1, %v1343_v30  ;;  %v1351_v17 = vrot.slane %v1350_v39, 4 }
 0x181   : > { %v6682_v56 = vrot.slane %v5365_v27, 1  ;;  %v1719_v14 = vrot.slane %v5659_v60, %v5060_v7  ;;  %v1333_v51 = vadd.f32 %v1332_v28, %v1331_v52  ;;  %v1340_v45 = vadd.f32 %v1339_v41, %v1338_v48 }
 0x182   : > { %v1949_v18 = vcombine.low %v1941_v24, %v1948_v21  ;;  %v1726_v63 = vrot.slane %v1712_v42, %v5060_v7  ;;  %v1346_v3 = vrot.slane %v1345_v11, 2  ;;  %v1352_v10 = vadd.f32 %v1351_v17, %v1350_v39 }
 0x183   : > { %v829_v2 = vadd.f32 %v6682_v56, %v5365_v27  ;;  %v5702_v4 = vmul.f32 0.001953125, %v5632_v20  ;;  %v5705_v31 = vmul.f32 0.001953125, %v5637_v16  ;;  %v1334_v27 = vrot.slane %v1333_v51, 1 }
 0x184   : > { %v1341_v58 = vrot.slane %v1340_v45, 1  ;;  %v6683_v43 = vrot.slane %v5372_v15, 1  ;;  %v5710_v60 = vsub.f32 %v1797_v26, %v1949_v18  ;;  %v1347_v59 = vadd.f32 %v1346_v3, %v1345_v11 }
 0x185   : > { %v1353_v24 = vrot.slane %v1352_v10, 2  ;;  %v5712_v22 = vmul.f32 0.001953125, %v829_v2  ;;  %v1727_v42 = vcombine.high %v1719_v14, %v1719_v14  ;;  %v1335_v12 = vadd.f32 %v1334_v27, %v1333_v51 }
 0x186   : > { %v836_v40 = vadd.f32 %v6683_v43, %v5372_v15  ;;  %v1342_v30 = vadd.f32 %v1341_v58, %v1340_v45  ;;  %v1728_v20 = vcombine.high %v1726_v63, %v1726_v63  ;;  %v1348_v34 = vrot.slane %v1347_v59, 1 }
 0x187   : > { %v1354_v52 = vadd.f32 %v1353_v24, %v1352_v10  ;;  %v4583_v16 = vpop.eup %4582  ;;  %v1441_v48 = vmul.f32 %v5702_v4, %v5702_v4  ;;  %v1442_v61 = vmul.f32 %v5705_v31, %v5705_v31  ;;  %v1409_v15 = vmul.f32 0.001953125, %v1335_v12 }
 0x188   : > { %v1410_v49 = vmul.f32 0.001953125, %v1342_v30  ;;  %v4585_v1 = vpop.eup %4584  ;;  %v892_v28 = vmul.f32 0.001953125, %v836_v40  ;;  %v5718_v41 = vmul.f32 %v4583_v16, %v1719_v14  ;;  %v1349_v39 = vadd.f32 %v1348_v34, %v1347_v59 }
 0x189   : > { %v1355_v21 = vrot.slane %v1354_v52, 1  ;;  %v4587_v11 = vpop.eup %4586  ;;  %v5720_v17 = vmul.f32 %v4585_v1, %v1727_v42  ;;  %v1443_v56 = vmul.f32 %v5712_v22, %v5712_v22  ;;  %v1473_v2 = vsub.f32 %v1409_v15, %v1441_v48 }
 0x18a   : > { %v1474_v26 = vsub.f32 %v1410_v49, %v1442_v61  ;;  %v4589_v51 = vpop.eup %4588  ;;  %v5724_v45 = vmul.f32 %v4587_v11, %v1726_v63  ;;  %v1829_v18 = vmul.f32 %v5718_v41, %v5375_v47  ;;  %v1411_v10 = vmul.f32 0.001953125, %v1349_v39 }
 0x18b   : > { %6684 = vst [vmem:[#allocation63_spill] sm:$0xff] %v5720_v17  ;;  %v1356_v3 = vadd.f32 %v1355_v21, %v1354_v52  ;;  %v5728_v14 = vmul.f32 %v4589_v51, %v1728_v20  ;;  %v1830_v27 = vmul.f32 %v5720_v17, %v5378_v37  ;;  %v1505_v58 = vmax.f32 %v1473_v2, 0.0  ;;  %v1583_v37 = vld [vmem:[%s6576_s1 + $0x30] sm:$0xff] }
 0x18c   : > { %v1506_v43 = vmax.f32 %v1474_v26, 0.0  ;;  %v1831_v40 = vmul.f32 %v5724_v45, %v5469_v9  ;;  %v1444_v59 = vmul.f32 %v892_v28, %v892_v28  ;;  %v1475_v42 = vsub.f32 %v1411_v10, %v1443_v56 }
 0x18d   : > { %6685 = vst [vmem:[#allocation64_spill] sm:$0xff] %v5728_v14  ;;  %v1412_v24 = vmul.f32 0.001953125, %v1356_v3  ;;  %v1832_v63 = vmul.f32 %v5728_v14, %v5475_v13  ;;  %v1984_v12 = vcombine.low %v1829_v18, %v1830_v27  ;;  %v1537_v47 = vadd.f32 1e-05, %v1505_v58  ;;  %v1800_v13 = vld [vmem:[%s6517_s2 + $0x38] sm:$0xff] }
 0x18e   : > { %v1538_v30 = vadd.f32 1e-05, %v1506_v43  ;;  %v1507_v20 = vmax.f32 %v1475_v42, 0.0  ;;  %v1695_v1 = vcombine.high %v1583_v37, %v1583_v37  ;;  %v1702_v39 = vrot.slane %v1583_v37, %v5060_v7 }
 0x18f   : > { %v1476_v34 = vsub.f32 %v1412_v24, %v1444_v59  ;;  %v1985_v52 = vcombine.low %v1831_v40, %v1832_v63  ;;  %v1992_v16 = vrot.slane %v1984_v12, %v5060_v7  ;;  %4590 = vrsqrt.f32 %v1537_v47 }
 0x190   : > { %v1539_v48 = vadd.f32 1e-05, %v1507_v20  ;;  %4592 = vrsqrt.f32 %v1538_v30  ;;  %v1709_v11 = vrot.slane %v1695_v1, %v5060_v7  ;;  %v1710_v56 = vcombine.high %v1702_v39, %v1702_v39 }
 0x191   : > { %v1508_v9 = vmax.f32 %v1476_v34, 0.0  ;;  %v1999_v61 = vrot.slane %v1985_v52, %v5060_v7 }
 0x192   : > { %4594 = vrsqrt.f32 %v1539_v48  ;;  %v1711_v18 = vcombine.high %v1709_v11, %v1709_v11 }
 0x193   : > { %v1540_v15 = vadd.f32 1e-05, %v1508_v9  ;;  %v2000_v49 = vcombine.low %v1992_v16, %v1999_v61 }
 0x195   : > { %4596 = vrsqrt.f32 %v1540_v15  ;;  %v5745_v21 = vsub.f32 %v1800_v13, %v2000_v49 }
 0x197   : > { %6686 = vst [vmem:[#allocation65_spill] sm:$0xff] %v5745_v21 }
 0x199   : > { %v4591_v2 = vpop.eup %4590 }
 0x19a   : > { %v4593_v26 = vpop.eup %4592  ;;  %v5748_v51 = vmul.f32 %v4591_v2, %v1702_v39 }
 0x19b   : > { %v5750_v3 = vmul.f32 %v4593_v26, %v1710_v56 }
 0x19c   : > { %v4595_v10 = vpop.eup %4594  ;;  %v1825_v27 = vmul.f32 %v5748_v51, %v5702_v4  ;;  %v1799_v4 = vld [vmem:[%s6517_s2 + $0x30] sm:$0xff] }
 0x19d   : > { %6687 = vst [vmem:[#allocation66_spill] sm:$0xff] %v5750_v3  ;;  %v5754_v58 = vmul.f32 %v4595_v10, %v1709_v11  ;;  %v1826_v43 = vmul.f32 %v5750_v3, %v5705_v31 }
 0x19f   : > { %v4597_v40 = vpop.eup %4596  ;;  %v1827_v24 = vmul.f32 %v5754_v58, %v5712_v22  ;;  %v1967_v42 = vcombine.low %v1825_v27, %v1826_v43 }
 0x1a0   : > { %v5758_v59 = vmul.f32 %v4597_v40, %v1711_v18 }
 0x1a1   : > { %v1975_v47 = vrot.slane %v1967_v42, %v5060_v7 }
 0x1a2   : > { %v1828_v63 = vmul.f32 %v5758_v59, %v892_v28 }
 0x1a4   : > { %v1968_v12 = vcombine.low %v1827_v24, %v1828_v63 }
 0x1a6   : > { %v1982_v30 = vrot.slane %v1968_v12, %v5060_v7 }
 0x1a8   : > { %v1983_v34 = vcombine.low %v1975_v47, %v1982_v30 }
 0x1aa   : > { %v5768_v31 = vsub.f32 %v1799_v4, %v1983_v34 }
 0x1ab LB: >> { %v6688_v7 = vld [vmem:[#allocation8_spill] sm:$0xff]  ;;  %v4903_v22 = vmov 0   ;;  %v6689_v25 = vld [vmem:[#allocation49_spill] sm:$0xff]  ;;  %v6690_v19 = vld [vmem:[#allocation48_spill] sm:$0xff]  ;;  %vm2884_vm1 = vcmask 523264   ;;  %s4062_s21 = sshll.u32 %s4844_s16, 7  ;;  %s4844_s16 = sphi %s5770_s16, %s2022_s16  }
 0x1ac   : >> { %4599 = vset.pattern.permute.xlu1 %v4903_v22  ;;  %4598 = vset.pattern.permute.xlu0 %v4903_v22  ;;  %v6691_v5 = vld [vmem:[#allocation53_spill] sm:$0xff]  ;;  %v6692_v23 = vld [vmem:[#allocation55_spill] sm:$0xff]  ;;  %v6693_v0 = vld [vmem:[#allocation54_spill] sm:$0xff]  ;;  %s5916_s22 = sshra.s32 %s4062_s21, 7  ;;  %s2022_s16 = sadd.s32 1, %s4844_s16  }
 0x1ad   : >> { %2062 = vperm.xlu1 %4599, %v5423_v36   ;;  %2038 = vperm.xlu0 %4598, %v6689_v25   ;;  %v6694_v6 = vld [vmem:[#allocation61_spill] sm:$0xff]  ;;  %v6695_v8 = vld [vmem:[#allocation62_spill] sm:$0xff]  ;;  %v6696_v28 = vld [vmem:[#allocation56_spill] sm:$0xff]  ;;  %s4063_s20 = sshll.u32 %s5916_s22, 3  ;;  %p2019_p0 = scmp.ge.s32.totalorder %s2022_s16, 2  }
 0x1ae   : >> { %v6697_v20 = vld [vmem:[#allocation59_spill] sm:$0xff]  ;;  %v6698_v52 = vld [vmem:[#allocation58_spill] sm:$0xff]  ;;  %v6703_v14 = vld [vmem:[#allocation64_spill] sm:$0xff]  ;;  %s5926_s23 = scalar_lea.vmem %s5028_s12, %s4063_s20  ;;  %s6028_s17 = scalar_lea.vmem [#allocation2], %s4063_s20 }
 0x1af   : >> { %v6699_v16 = vld [vmem:[#allocation50_spill] sm:$0xff]  ;;  %v6700_v37 = vld [vmem:[#allocation51_spill] sm:$0xff]  ;;  %v6704_v9 = vld [vmem:[#allocation52_spill] sm:$0xff] }
 0x1b0   : >> { %v6701_v3 = vld [vmem:[#allocation66_spill] sm:$0xff]  ;;  %v6702_v17 = vld [vmem:[#allocation63_spill] sm:$0xff]  ;;  %v6705_v48 = vld [vmem:[#allocation57_spill] sm:$0xff] }
 0x1b1   : >> { %2074 = vperm.xlu1 %4599, %v5430_v35   ;;  %2050 = vperm.xlu0 %4598, %v5419_v32   ;;  %v6706_v61 = vld [vmem:[#allocation60_spill] sm:$0xff]  ;;  %v6707_v21 = vld [vmem:[#allocation65_spill] sm:$0xff]  ;;  %v2681_v13 = vld [vmem:[%s6519_s4 + $0x8] sm:$0xff] }
 0x1b2   : >> { %v2680_v15 = vld [vmem:[%s6519_s4] sm:$0xff]  ;;  %v2683_v49 = vld [vmem:[%s6519_s4 + $0x18] sm:$0xff]  ;;  %v2682_v1 = vld [vmem:[%s6519_s4 + $0x10] sm:$0xff] }
 0x1b3   : >> { %v4600_v39 = vld [vmem:[%s6518_s3] sm:$0xff]   ;;  %v4601_v11 = vld [vmem:[%s6518_s3 + $0x30] sm:$0xff]   ;;  %v2685_v56 = vld [vmem:[%s6519_s4 + $0x28] sm:$0xff] }
 0x1b4   : >> { %4196 = vmatprep.mubr.msk.bf16.mxu0 %vm2884_vm1, %v4600_v39  ;;  %4208 = vmatprep.mubr.msk.bf16.mxu1 %vm2884_vm1, %v4601_v11  ;;  %v2684_v2 = vld [vmem:[%s6519_s4 + $0x20] sm:$0xff]  ;;  %v2687_v26 = vld [vmem:[%s6519_s4 + $0x38] sm:$0xff]  ;;  %v2686_v18 = vld [vmem:[%s6519_s4 + $0x30] sm:$0xff] }
 0x1b5   : >> { %2098 = vperm.xlu1 %4599, %v6690_v19   ;;  %2086 = vperm.xlu0 %4598, %v5385_v38   ;;  %v2689_v10 = vld [vmem:[%s6519_s4 + $0x48] sm:$0xff]  ;;  %v2688_v27 = vld [vmem:[%s6519_s4 + $0x40] sm:$0xff]  ;;  %v2691_v43 = vld [vmem:[%s6519_s4 + $0x58] sm:$0xff] }
 0x1b6   : >> { %v2690_v40 = vld [vmem:[%s6519_s4 + $0x50] sm:$0xff]  ;;  %v2693_v24 = vld [vmem:[%s6519_s4 + $0x68] sm:$0xff]  ;;  %v2692_v42 = vld [vmem:[%s6519_s4 + $0x60] sm:$0xff] }
 0x1b7   : >> { %v2695_v63 = vld [vmem:[%s6519_s4 + $0x78] sm:$0xff]  ;;  %v2694_v12 = vld [vmem:[%s6519_s4 + $0x70] sm:$0xff]  ;;  %v2697_v47 = vld [vmem:[%s6519_s4 + $0x88] sm:$0xff] }
 0x1b8   : >> { %v2696_v30 = vld [vmem:[%s6519_s4 + $0x80] sm:$0xff]  ;;  %v2699_v4 = vld [vmem:[%s6519_s4 + $0x98] sm:$0xff]  ;;  %v2698_v34 = vld [vmem:[%s6519_s4 + $0x90] sm:$0xff] }
 0x1b9   : >> { %2122 = vperm.xlu1 %4599, %v5404_v55   ;;  %2110 = vperm.xlu0 %4598, %v5397_v57   ;;  %v2701_v22 = vld [vmem:[%s6519_s4 + $0xa8] sm:$0xff] }
 0x1bd   : >> { %2146 = vperm.xlu1 %4599, %v6691_v5   ;;  %2134 = vperm.xlu0 %4598, %v5554_v62  }
 0x1c1   : >> { %2170 = vperm.xlu1 %4599, %v6692_v23   ;;  %2158 = vperm.xlu0 %4598, %v6693_v0  }
 0x1c5   : >> { %2194 = vperm.xlu1 %4599, %v5497_v29   ;;  %2182 = vperm.xlu0 %4598, %v5491_v53  }
 0x1c9   : >> { %2218 = vperm.xlu1 %4599, %v5507_v46   ;;  %2206 = vperm.xlu0 %4598, %v5500_v33  }
 0x1cd   : >> { %2242 = vperm.xlu1 %4599, %v6694_v6   ;;  %2230 = vperm.xlu0 %4598, %v5648_v50  }
 0x1d1   : >> { %2266 = vperm.xlu1 %4599, %v5684_v54   ;;  %2254 = vperm.xlu0 %4598, %v6695_v8  }
 0x1d5   : >> { %2290 = vperm.xlu1 %4599, %v5597_v44   ;;  %2278 = vperm.xlu0 %4598, %v6696_v28   ;;  %v2700_v28 = vld [vmem:[%s6519_s4 + $0xa0] sm:$0xff] }
 0x1d9   : >> { %2314 = vperm.xlu1 %4599, %v6697_v20   ;;  %2302 = vperm.xlu0 %4598, %v6698_v52   ;;  %v2703_v20 = vld [vmem:[%s6519_s4 + $0xb8] sm:$0xff]  ;;  %v2702_v52 = vld [vmem:[%s6519_s4 + $0xb0] sm:$0xff] }
 0x1dd   : >> { %2611 = vperm.xlu1 %4599, %v6699_v16   ;;  %2606 = vperm.xlu0 %4598, %v6700_v37  }
 0x1e1   : >> { %2338 = vperm.xlu1 %4599, %v6701_v3   ;;  %2326 = vperm.xlu0 %4598, %v5748_v51  }
 0x1e5   : >> { %2362 = vperm.xlu1 %4599, %v5758_v59   ;;  %2350 = vperm.xlu0 %4598, %v5754_v58  }
 0x1e9   : >> { %2386 = vperm.xlu1 %4599, %v6702_v17   ;;  %2374 = vperm.xlu0 %4598, %v5718_v41  }
 0x1ed   : >> { %2410 = vperm.xlu1 %4599, %v6703_v14   ;;  %2398 = vperm.xlu0 %4598, %v5724_v45  }
 0x1f1   : >> { %2621 = vperm.xlu1 %4599, %v6704_v9   ;;  %2616 = vperm.xlu0 %4598, %v6705_v48  }
 0x1f5   : >> { %2631 = vperm.xlu1 %4599, %v6706_v61   ;;  %2626 = vperm.xlu0 %4598, %v5710_v60  }
 0x1f9   : >> { %2641 = vperm.xlu1 %4599, %v6707_v21   ;;  %2636 = vperm.xlu0 %4598, %v5768_v31  }
 0x1fd   : >> { %2711 = vperm.xlu1 %4599, %v2681_v13   ;;  %2706 = vperm.xlu0 %4598, %v2680_v15  }
 0x201   : >> { %2721 = vperm.xlu1 %4599, %v2683_v49   ;;  %2716 = vperm.xlu0 %4598, %v2682_v1  }
 0x205   : >> { %2731 = vperm.xlu1 %4599, %v2685_v56   ;;  %2726 = vperm.xlu0 %4598, %v2684_v2  }
 0x209   : >> { %2741 = vperm.xlu1 %4599, %v2687_v26   ;;  %2736 = vperm.xlu0 %4598, %v2686_v18  }
 0x20d   : >> { %2751 = vperm.xlu1 %4599, %v2689_v10   ;;  %2746 = vperm.xlu0 %4598, %v2688_v27   ;;  %v6708_v27 = vld [vmem:[#allocation7_spill] sm:$0xff] }
 0x211   : >> { %2761 = vperm.xlu1 %4599, %v2691_v43   ;;  %2756 = vperm.xlu0 %4598, %v2690_v40  }
 0x215   : >> { %2771 = vperm.xlu1 %4599, %v2693_v24   ;;  %2766 = vperm.xlu0 %4598, %v2692_v42  }
 0x219   : >> { %2781 = vperm.xlu1 %4599, %v2695_v63   ;;  %2776 = vperm.xlu0 %4598, %v2694_v12  }
 0x21d   : >> { %2791 = vperm.xlu1 %4599, %v2697_v47   ;;  %2786 = vperm.xlu0 %4598, %v2696_v30  }
 0x221   : >> { %2801 = vperm.xlu1 %4599, %v2699_v4   ;;  %2796 = vperm.xlu0 %4598, %v2698_v34  }
 0x225   : >> { %2811 = vperm.xlu1 %4599, %v2701_v22   ;;  %2806 = vperm.xlu0 %4598, %v2700_v28  }
 0x229   : >> { %2821 = vperm.xlu1 %4599, %v2703_v20   ;;  %2816 = vperm.xlu0 %4598, %v2702_v52  }
 0x22c   : >> { %v2063_v16 = vpop.permute.xlu1 %2062  ;;  %v2039_v37 = vpop.permute.xlu0 %2038 }
 0x22d   : >> { %v2071_v47 = vrot.slane %v2063_v16, %v6708_v27  ;;  %v2047_v30 = vrot.slane %v2039_v37, %v6708_v27 }
 0x230   : >> { %v2075_v9 = vpop.permute.xlu1 %2074  ;;  %v2051_v48 = vpop.permute.xlu0 %2050 }
 0x231   : >> { %v2083_v43 = vrot.slane %v2075_v9, %v6708_v27  ;;  %v2059_v40 = vrot.slane %v2051_v48, %v6708_v27 }
 0x233   : >> { %v2453_v22 = vcombine.low %v2071_v47, %v2083_v43  ;;  %v2452_v28 = vcombine.low %v2047_v30, %v2059_v40  ;;  %v2029_v47 = vld [vmem:[%s5926_s23 + $0x10] sm:$0xff]  ;;  %v2028_v30 = vld [vmem:[%s5926_s23] sm:$0xff] }
 0x234   : >> { %v2099_v61 = vpop.permute.xlu1 %2098  ;;  %v2087_v13 = vpop.permute.xlu0 %2086 }
 0x235   : >> { %v2107_v4 = vrot.slane %v2099_v61, %v6708_v27  ;;  %v2095_v34 = vrot.slane %v2087_v13, %v6708_v27  ;;  %v2467_v16 = vrot.slane %v2453_v22, %v6688_v7  ;;  %v2460_v37 = vrot.slane %v2452_v28, %v6688_v7 }
 0x237   : >> { %v2469_v48 = vcombine.low %v2095_v34, %v2107_v4  ;;  %v2468_v40 = vcombine.low %v2460_v37, %v2467_v16 }
 0x238   : >> { %v2123_v15 = vpop.permute.xlu1 %2122  ;;  %v2111_v49 = vpop.permute.xlu0 %2110 }
 0x239   : >> { %v2131_v24 = vrot.slane %v2123_v15, %v6708_v27  ;;  %v2119_v42 = vrot.slane %v2111_v49, %v6708_v27  ;;  %v2477_v13 = vrot.slane %v2469_v48, %v6688_v7  ;;  %v2596_v34 = vmul.f32 %v2468_v40, %v2028_v30 }
 0x23b   : >> { %v2470_v20 = vcombine.low %v2119_v42, %v2131_v24 }
 0x23c   : >> { %v5895_v1 = vpop.permute.xlu1 %2146  ;;  %v5897_v39 = vpop.permute.xlu0 %2134 }
 0x23d   : >> { %v2484_v61 = vrot.slane %v2470_v20, %v6688_v7  ;;  %v2155_v16 = vrot.slane %v5895_v1, %v6708_v27  ;;  %v2143_v37 = vrot.slane %v5897_v39, %v6708_v27 }
 0x23f   : >> { %v2485_v43 = vcombine.low %v2477_v13, %v2484_v61 }
 0x240   : >> { %v2171_v11 = vpop.permute.xlu1 %2170  ;;  %v2159_v56 = vpop.permute.xlu0 %2158 }
 0x241   : >> { %v2597_v4 = vmul.f32 %v2485_v43, %v2029_v47  ;;  %v2179_v3 = vrot.slane %v2171_v11, %v6708_v27  ;;  %v2167_v48 = vrot.slane %v2159_v56, %v6708_v27  ;;  %v2486_v47 = vcombine.low %v2143_v37, %v2155_v16 }
 0x243   : >> { %v2487_v56 = vcombine.low %v2167_v48, %v2179_v3 }
 0x244   : >> { %v5899_v2 = vpop.permute.xlu1 %2194  ;;  %v5901_v26 = vpop.permute.xlu0 %2182 }
 0x245   : >> { %v2203_v40 = vrot.slane %v5899_v2, %v6708_v27  ;;  %v2191_v11 = vrot.slane %v5901_v26, %v6708_v27 }
 0x248   : >> { %v2219_v18 = vpop.permute.xlu1 %2218  ;;  %v2207_v10 = vpop.permute.xlu0 %2206 }
 0x249   : >> { %v2227_v5 = vrot.slane %v2219_v18, %v6708_v27  ;;  %v2215_v6 = vrot.slane %v2207_v10, %v6708_v27 }
 0x24b   : >> { %v2504_v1 = vcombine.low %v2215_v6, %v2227_v5  ;;  %v2501_v5 = vrot.slane %v2487_v56, %v6688_v7 }
 0x24c   : >> { %v5907_v63 = vpop.permute.xlu1 %2242  ;;  %v5909_v12 = vpop.permute.xlu0 %2230 }
 0x24d   : >> { %v2251_v2 = vrot.slane %v5907_v63, %v6708_v27  ;;  %v2239_v26 = vrot.slane %v5909_v12, %v6708_v27  ;;  %v2494_v12 = vrot.slane %v2486_v47, %v6688_v7  ;;  %v2031_v47 = vld [vmem:[%s5926_s23 + $0x30] sm:$0xff] }
 0x250   : >> { %v2267_v52 = vpop.permute.xlu1 %2266  ;;  %v2255_v9 = vpop.permute.xlu0 %2254 }
 0x251   : >> { %v2275_v18 = vrot.slane %v2267_v52, %v6708_v27 }
 0x254   : >> { %v2291_v15 = vpop.permute.xlu1 %2290  ;;  %v2279_v49 = vpop.permute.xlu0 %2278 }
 0x255   : >> { %v2299_v52 = vrot.slane %v2291_v15, %v6708_v27 }
 0x258   : >> { %v2315_v24 = vpop.permute.xlu1 %2314  ;;  %v2303_v42 = vpop.permute.xlu0 %2302 }
 0x259   : >> { %v2323_v39 = vrot.slane %v2315_v24, %v6708_v27  ;;  %v2311_v10 = vrot.slane %v2303_v42, %v6708_v27  ;;  %v2518_v24 = vrot.slane %v2504_v1, %v6688_v7 }
 0x25b   : >> { %v2538_v42 = vcombine.low %v2311_v10, %v2323_v39 }
 0x25c   : >> { %v2612_v22 = vpop.permute.xlu1 %2611  ;;  %v2607_v28 = vpop.permute.xlu0 %2606 }
 0x25d   : >> { %v2645_v20 = vadd.f32 %v2612_v22, %v2597_v4  ;;  %v2644_v0 = vadd.f32 %v2607_v28, %v2596_v34  ;;  %v2503_v4 = vcombine.low %v2191_v11, %v2203_v40  ;;  %v2520_v22 = vcombine.low %v2239_v26, %v2251_v2 }
 0x25e   : >> { %v2502_v11 = vcombine.low %v2494_v12, %v2501_v5  ;;  %v2552_v56 = vrot.slane %v2538_v42, %v6688_v7  ;;  %v2032_v42 = vld [vmem:[%s5926_s23 + $0x40] sm:$0xff] }
 0x25f   : >> { %v2652_v61 = vpack.c.bf16 %v2645_v20, %v2644_v0  ;;  %v2263_v0 = vrot.slane %v2255_v9, %v6708_v27  ;;  %v2287_v9 = vrot.slane %v2279_v49, %v6708_v27  ;;  %v2511_v48 = vrot.slane %v2503_v4, %v6688_v7 }
 0x260   : >> { %v2339_v13 = vpop.permute.xlu1 %2338  ;;  %v2327_v43 = vpop.permute.xlu0 %2326 }
 0x261   : >> { %4188 = vmatprep.subr.bf16.mxu0 %v2652_v61  ;;  %4316 = vmatprep.subr.bf16.mxu1 %v2652_v61  ;;  %v2521_v6 = vcombine.low %v2263_v0, %v2275_v18  ;;  %v2347_v28 = vrot.slane %v2339_v13, %v6708_v27  ;;  %v2335_v15 = vrot.slane %v2327_v43, %v6708_v27  ;;  %v2030_v13 = vld [vmem:[%s5926_s23 + $0x20] sm:$0xff] }
 0x262   : >> { %4189 = vmatpush3.bf16.msra.mxu0 %v2652_v61  ;;  %4320 = vmatpush3.bf16.msra.mxu1 %v2652_v61  ;;  %v2537_v61 = vcombine.low %v2287_v9, %v2299_v52  ;;  %v2519_v0 = vcombine.low %v2511_v48, %v2518_v24  ;;  %v2528_v43 = vrot.slane %v2520_v22, %v6688_v7  ;;  %v2033_v22 = vld [vmem:[%s5926_s23 + $0x50] sm:$0xff] }
 0x263   : >> { %v2535_v40 = vrot.slane %v2521_v6, %v6688_v7  ;;  %v2554_v1 = vcombine.low %v2335_v15, %v2347_v28  ;;  %v2598_v4 = vmul.f32 %v2502_v11, %v2030_v13 }
 0x264   : >> { %v2363_v30 = vpop.permute.xlu1 %2362  ;;  %v2351_v3 = vpop.permute.xlu0 %2350  ;;  %v2545_v2 = vrot.slane %v2537_v61, %v6688_v7  ;;  %v2599_v6 = vmul.f32 %v2519_v0, %v2031_v47  ;;  %v2034_v0 = vld [vmem:[%s5926_s23 + $0x60] sm:$0xff] }
 0x265   : >> { %v2371_v34 = vrot.slane %v2363_v30, %v6708_v27  ;;  %v2359_v63 = vrot.slane %v2351_v3, %v6708_v27  ;;  %v2536_v52 = vcombine.low %v2528_v43, %v2535_v40 }
 0x266   : >> { %v2553_v24 = vcombine.low %v2545_v2, %v2552_v56 }
 0x267   : >> { %v2555_v18 = vcombine.low %v2359_v63, %v2371_v34  ;;  %v2562_v34 = vrot.slane %v2554_v1, %v6688_v7  ;;  %v2600_v48 = vmul.f32 %v2536_v52, %v2032_v42  ;;  %v4603_v52 = vld [vmem:[%s6518_s3 + $0x38] sm:$0xff]   ;;  %v4608_v42 = vld [vmem:[%s6518_s3 + $0x20] sm:$0xff]  }
 0x268   : >> { %v2387_v20 = vpop.permute.xlu1 %2386  ;;  %v2375_v49 = vpop.permute.xlu0 %2374 }
 0x269   : >> { %v2395_v16 = vrot.slane %v2387_v20, %v6708_v27  ;;  %v2383_v37 = vrot.slane %v2375_v49, %v6708_v27  ;;  %v2569_v9 = vrot.slane %v2555_v18, %v6688_v7  ;;  %v2035_v18 = vld [vmem:[%s5926_s23 + $0x70] sm:$0xff] }
 0x26b   : >> { %v2571_v26 = vcombine.low %v2383_v37, %v2395_v16  ;;  %v2601_v16 = vmul.f32 %v2553_v24, %v2033_v22  ;;  %v2570_v40 = vcombine.low %v2562_v34, %v2569_v9  ;;  %v4604_v9 = vld [vmem:[%s6518_s3 + $0x10] sm:$0xff]   ;;  %v4607_v24 = vld [vmem:[%s6518_s3 + $0x48] sm:$0xff]  }
 0x26c   : >> { %v2411_v39 = vpop.permute.xlu1 %2410  ;;  %v2399_v10 = vpop.permute.xlu0 %2398  ;;  %v4609_v34 = vld [vmem:[%s6518_s3 + $0x50] sm:$0xff]  }
 0x26d   : >> { %v2419_v30 = vrot.slane %v2411_v39, %v6708_v27  ;;  %v2407_v3 = vrot.slane %v2399_v10, %v6708_v27  ;;  %v2579_v28 = vrot.slane %v2571_v26, %v6688_v7  ;;  %v2602_v10 = vmul.f32 %v2570_v40, %v2034_v0 }
 0x26f   : >> { %v2572_v5 = vcombine.low %v2407_v3, %v2419_v30 }
 0x270   : >> { %v2622_v63 = vpop.permute.xlu1 %2621  ;;  %v2617_v12 = vpop.permute.xlu0 %2616 }
 0x271   : >> { %v2586_v15 = vrot.slane %v2572_v5, %v6688_v7  ;;  %v2647_v20 = vadd.f32 %v2622_v63, %v2599_v6  ;;  %v2646_v49 = vadd.f32 %v2617_v12, %v2598_v4  ;;  %v4602_v4 = vld [vmem:[%s6518_s3 + $0x8] sm:$0xff]   ;;  %v4605_v5 = vld [vmem:[%s6518_s3 + $0x40] sm:$0xff]   ;;  %v4606_v6 = vld [vmem:[%s6518_s3 + $0x18] sm:$0xff]  }
 0x272   : >> { %v4610_v63 = vld [vmem:[%s6518_s3 + $0x28] sm:$0xff]   ;;  %v4611_v12 = vld [vmem:[%s6518_s3 + $0x58] sm:$0xff]  }
 0x273   : >> { %v2653_v61 = vpack.c.bf16 %v2647_v20, %v2646_v49  ;;  %v2587_v37 = vcombine.low %v2579_v28, %v2586_v15 }
 0x274   : >> { %v2632_v11 = vpop.permute.xlu1 %2631  ;;  %v2627_v56 = vpop.permute.xlu0 %2626 }
 0x275   : >> { %v2649_v13 = vadd.f32 %v2632_v11, %v2601_v16  ;;  %v2648_v43 = vadd.f32 %v2627_v56, %v2600_v48  ;;  %4190 = vmatprep.subr.bf16.mxu0 %v2653_v61  ;;  %4317 = vmatprep.subr.bf16.mxu1 %v2653_v61  ;;  %v2603_v39 = vmul.f32 %v2587_v37, %v2035_v18 }
 0x276   : >> { %4191 = vmatpush3.bf16.msra.mxu0 %v2653_v61  ;;  %4321 = vmatpush3.bf16.msra.mxu1 %v2653_v61 }
 0x277   : >> { %v2654_v1 = vpack.c.bf16 %v2649_v13, %v2648_v43 }
 0x278   : >> { %v2642_v47 = vpop.permute.xlu1 %2641  ;;  %v2637_v2 = vpop.permute.xlu0 %2636 }
 0x279   : >> { %v2651_v26 = vadd.f32 %v2642_v47, %v2603_v39  ;;  %v2650_v30 = vadd.f32 %v2637_v2, %v2602_v10  ;;  %4192 = vmatprep.subr.bf16.mxu0 %v2654_v1  ;;  %4318 = vmatprep.subr.bf16.mxu1 %v2654_v1 }
 0x27a   : >> { %4193 = vmatpush3.bf16.msra.mxu0 %v2654_v1  ;;  %4322 = vmatpush3.bf16.msra.mxu1 %v2654_v1 }
 0x27b   : >> { %v2655_v3 = vpack.c.bf16 %v2651_v26, %v2650_v30 }
 0x27c   : >> { %v2712_v22 = vpop.permute.xlu1 %2711  ;;  %v2707_v28 = vpop.permute.xlu0 %2706 }
 0x27d   : >> { %4194 = vmatprep.subr.bf16.mxu0 %v2655_v3  ;;  %4319 = vmatprep.subr.bf16.mxu1 %v2655_v3 }
 0x27e   : >> { %4195 = vmatpush3.bf16.msra.mxu0 %v2655_v3  ;;  %4323 = vmatpush3.bf16.msra.mxu1 %v2655_v3 }
 0x280   : >> { %v2722_v15 = vpop.permute.xlu1 %2721  ;;  %v2717_v20 = vpop.permute.xlu0 %2716 }
 0x281   : >> { %4197 = vmatmul.mubr.msk.bf16.vlgmr.msra.gmra.mrb[0].mxu0 %vm2884_vm1, %v4602_v4  ;;  %4209 = vmatmul.mubr.msk.bf16.vlgmr.msra.gmra.mrb[0].mxu1 %vm2884_vm1, %v4603_v52 }
 0x282   : >> { %4200 = vmatprep.mubr.msk.bf16.mxu0 %vm2884_vm1, %v4604_v9  ;;  %4212 = vmatprep.mubr.msk.bf16.mxu1 %vm2884_vm1, %v4605_v5 }
 0x284   : >> { %v2732_v49 = vpop.permute.xlu1 %2731  ;;  %v2727_v48 = vpop.permute.xlu0 %2726 }
 0x288   : >> { %v2742_v61 = vpop.permute.xlu1 %2741  ;;  %v2737_v16 = vpop.permute.xlu0 %2736 }
 0x289   : >> { %4201 = vmatmul.mubr.msk.bf16.gmra.mrb[4].mxu0 %vm2884_vm1, %v4606_v6  ;;  %4213 = vmatmul.mubr.msk.bf16.gmra.mrb[4].mxu1 %vm2884_vm1, %v4607_v24 }
 0x28a   : >> { %4204 = vmatprep.mubr.msk.bf16.mxu0 %vm2884_vm1, %v4608_v42  ;;  %4216 = vmatprep.mubr.msk.bf16.mxu1 %vm2884_vm1, %v4609_v34 }
 0x28c   : >> { %v6018_v37 = vpop.permute.xlu1 %2751  ;;  %v6020_v40 = vpop.permute.xlu0 %2746 }
 0x290   : >> { %v6022_v11 = vpop.permute.xlu1 %2761  ;;  %v6024_v56 = vpop.permute.xlu0 %2756 }
 0x291   : >> { %4205 = vmatmul.mubr.msk.bf16.gmra.mrb[8].mxu0 %vm2884_vm1, %v4610_v63  ;;  %4217 = vmatmul.mubr.msk.bf16.gmra.mrb[8].mxu1 %vm2884_vm1, %v4611_v12 }
 0x294   : >> { %v2772_v18 = vpop.permute.xlu1 %2771  ;;  %v2767_v0 = vpop.permute.xlu0 %2766 }
 0x298   : >> { %v2782_v13 = vpop.permute.xlu1 %2781  ;;  %v2777_v43 = vpop.permute.xlu0 %2776 }
 0x29c   : >> { %v2792_v1 = vpop.permute.xlu1 %2791  ;;  %v2787_v39 = vpop.permute.xlu0 %2786 }
 0x2a0   : >> { %v2802_v10 = vpop.permute.xlu1 %2801  ;;  %v2797_v47 = vpop.permute.xlu0 %2796 }
 0x2a4   : >> { %v2812_v23 = vpop.permute.xlu1 %2811  ;;  %v2807_v25 = vpop.permute.xlu0 %2806 }
 0x354   : >> { %v4198_v2 = vpop.f32.mrb[0].mxu0  ;;  %v4210_v26 = vpop.f32.mrb[0].mxu1 }
 0x355   : >> { %v2955_v30 = vpop.f32.mrb[1].mxu0  ;;  %v3003_v3 = vpop.f32.mrb[1].mxu1  ;;  %v2964_v9 = vadd.f32 %v4198_v2, %v2717_v20  ;;  %v3012_v5 = vadd.f32 %v4210_v26, %v2777_v43 }
 0x356   : >> { %v4199_v4 = vpop.f32.mrb[2].mxu0  ;;  %v4211_v52 = vpop.f32.mrb[2].mxu1  ;;  %v2956_v63 = vadd.f32 %v2955_v30, %v2707_v28  ;;  %v3004_v12 = vadd.f32 %v3003_v3, %v2767_v0 }
 0x357   : >> { %v2967_v6 = vadd.f32 %v4199_v4, %v2722_v15  ;;  %v3015_v24 = vadd.f32 %v4211_v52, %v2782_v13  ;;  %v2958_v42 = vpop.f32.mrb[3].mxu0  ;;  %v3006_v34 = vpop.f32.mrb[3].mxu1 }
 0x358   : >> { %v2959_v7 = vadd.f32 %v2958_v42, %v2712_v22  ;;  %v3007_v8 = vadd.f32 %v3006_v34, %v2772_v18 }
 0x359   : >> { %v3051_v14 = vpack.c.bf16 %v2967_v6, %v2964_v9  ;;  %v3057_v17 = vpack.c.bf16 %v3015_v24, %v3012_v5  ;;  %v2822_v9 = vpop.permute.xlu1 %2821  ;;  %v2817_v5 = vpop.permute.xlu0 %2816 }
 0x35a   : >> { %v3050_v19 = vpack.c.bf16 %v2959_v7, %v2956_v63  ;;  %v3056_v21 = vpack.c.bf16 %v3007_v8, %v3004_v12 }
 0x35b   : >> { %3065 = vst [vmem:[%s6028_s17 + $0x10] sm:$0xff] %v3051_v14  ;;  %3071 = vst [vmem:[%s6028_s17 + $0x70] sm:$0xff] %v3057_v17 }
 0x35c   : >> { %3064 = vst [vmem:[%s6028_s17] sm:$0xff] %v3050_v19  ;;  %3070 = vst [vmem:[%s6028_s17 + $0x60] sm:$0xff] %v3056_v21  ;;  %v4202_v28 = vpop.f32.mrb[4].mxu0  ;;  %v4214_v22 = vpop.f32.mrb[4].mxu1 }
 0x35d   : >> { %v2971_v15 = vpop.f32.mrb[5].mxu0  ;;  %v3019_v20 = vpop.f32.mrb[5].mxu1  ;;  %v2980_v8 = vadd.f32 %v4202_v28, %v2737_v16  ;;  %v3028_v0 = vadd.f32 %v4214_v22, %v2797_v47 }
 0x35e   : >> { %v4203_v18 = vpop.f32.mrb[6].mxu0  ;;  %v4215_v7 = vpop.f32.mrb[6].mxu1  ;;  %v2972_v14 = vadd.f32 %v2971_v15, %v2727_v48  ;;  %v3020_v17 = vadd.f32 %v3019_v20, %v2787_v39 }
 0x35f   : >> { %v2983_v13 = vadd.f32 %v4203_v18, %v2742_v61  ;;  %v3031_v43 = vadd.f32 %v4215_v7, %v2802_v10  ;;  %v2974_v2 = vpop.f32.mrb[7].mxu0  ;;  %v3022_v26 = vpop.f32.mrb[7].mxu1 }
 0x360   : >> { %v2975_v19 = vadd.f32 %v2974_v2, %v2732_v49  ;;  %v3023_v21 = vadd.f32 %v3022_v26, %v2792_v1 }
 0x361   : >> { %v3053_v30 = vpack.c.bf16 %v2983_v13, %v2980_v8  ;;  %v3059_v3 = vpack.c.bf16 %v3031_v43, %v3028_v0 }
 0x362   : >> { %v3052_v4 = vpack.c.bf16 %v2975_v19, %v2972_v14  ;;  %v3058_v52 = vpack.c.bf16 %v3023_v21, %v3020_v17 }
 0x363   : >> { %3067 = vst [vmem:[%s6028_s17 + $0x30] sm:$0xff] %v3053_v30  ;;  %3073 = vst [vmem:[%s6028_s17 + $0x90] sm:$0xff] %v3059_v3 }
 0x364   : >> { %3066 = vst [vmem:[%s6028_s17 + $0x20] sm:$0xff] %v3052_v4  ;;  %3072 = vst [vmem:[%s6028_s17 + $0x80] sm:$0xff] %v3058_v52  ;;  %v4206_v61 = vpop.f32.mrb[8].mxu0  ;;  %v4218_v16 = vpop.f32.mrb[8].mxu1 }
 0x365   : >> { %v2987_v10 = vpop.f32.mrb[9].mxu0  ;;  %v3035_v47 = vpop.f32.mrb[9].mxu1  ;;  %v2996_v49 = vadd.f32 %v4206_v61, %v6024_v56  ;;  %v3044_v1 = vadd.f32 %v4218_v16, %v2817_v5 }
 0x366   : >> { %v4207_v6 = vpop.f32.mrb[10].mxu0  ;;  %v4219_v48 = vpop.f32.mrb[10].mxu1  ;;  %v2988_v63 = vadd.f32 %v2987_v10, %v6020_v40  ;;  %v3036_v12 = vadd.f32 %v3035_v47, %v2807_v25  ;;  %2021 = sbr.rel (!%p2019_p0) target bundleno = 427 (0x1ab), region = 106 }
 0x367   : >> { %v2999_v39 = vadd.f32 %v4207_v6, %v6022_v11  ;;  %v3047_v24 = vadd.f32 %v4219_v48, %v2822_v9  ;;  %v2990_v42 = vpop.f32.mrb[11].mxu0  ;;  %v3038_v34 = vpop.f32.mrb[11].mxu1 }
 0x368   : >> { %v2991_v28 = vadd.f32 %v2990_v42, %v6018_v37  ;;  %v3039_v22 = vadd.f32 %v3038_v34, %v2812_v23 }
 0x369   : >> { %v3055_v15 = vpack.c.bf16 %v2999_v39, %v2996_v49  ;;  %v3061_v20 = vpack.c.bf16 %v3047_v24, %v3044_v1 }
 0x36a   : >> { %v3054_v18 = vpack.c.bf16 %v2991_v28, %v2988_v63  ;;  %v3060_v7 = vpack.c.bf16 %v3039_v22, %v3036_v12 }
 0x36b   : >> { %3069 = vst [vmem:[%s6028_s17 + $0x50] sm:$0xff] %v3055_v15  ;;  %3075 = vst [vmem:[%s6028_s17 + $0xb0] sm:$0xff] %v3061_v20 }
 0x36c   : >> { %3068 = vst [vmem:[%s6028_s17 + $0x40] sm:$0xff] %v3054_v18  ;;  %3074 = vst [vmem:[%s6028_s17 + $0xa0] sm:$0xff] %v3060_v7 }
 0x36d PF: > { %s4089_s22 = sshll.u32 %s4824_s27, 7  ;;  %v6063_v11 = vmov 0.0   ;;  %v6065_v38 = vmov 0.0   ;;  %v6067_v57 = vmov 0.0   ;;  %v6069_v55 = vmov 0.0   ;;  %s6087_s16 = smov 0  }
 0x36e   : > { %s6050_s20 = sshra.s32 %s4089_s22, 7  ;;  %v6071_v32 = vmov 0.0   ;;  %v6073_v36 = vmov 0.0   ;;  %v6075_v35 = vmov 0.0   ;;  %v6077_v53 = vmov 0.0  }
 0x36f   : > { %s4090_s18 = sshll.u32 %s6050_s20, 3  ;;  %v6079_v29 = vmov 0.0   ;;  %v6081_v33 = vmov 0.0   ;;  %v6083_v46 = vmov -inf   ;;  %v6085_v62 = vmov -inf  }
 0x370   : > { %s3080_s21 = scalar_lea.vmem [#allocation2], %s4090_s18 }
 0x373   : > { %v6055_v25 = vld [vmem:[%s3080_s21] sm:$0xff]  ;;  %v6057_v23 = vld [vmem:[%s3080_s21 + $0x10] sm:$0xff] }
 0x374   : > { %6709 = vst [vmem:[#allocation7_spill] sm:$0xff] %v6055_v25  ;;  %6710 = vst [vmem:[#allocation8_spill] sm:$0xff] %v6057_v23  ;;  %v6059_v37 = vld [vmem:[%s3080_s21 + $0x20] sm:$0xff]  ;;  %v6061_v40 = vld [vmem:[%s3080_s21 + $0x30] sm:$0xff] }
 0x375   : > { %6711 = vst [vmem:[#allocation48_spill] sm:$0xff] %v6059_v37  ;;  %6712 = vst [vmem:[#allocation49_spill] sm:$0xff] %v6061_v40 }
 0x376 LB: >> { %6717 = vst [vmem:[#allocation67_spill] sm:$0xff] %v4856_v57  ;;  %s4091_s23 = sshll.u32 %s4896_s16, 7  ;;  %vm3132_vm2 = vcmask 261120   ;;  %s3090_s16 = sadd.s32 1, %s4896_s16   ;;  %v4860_v55 = vphi %v6069_v55, %v6724_v55   ;;  %v4856_v57 = vphi %v6067_v57, %v6723_v57   ;;  %v4852_v38 = vphi %v6065_v38, %v6722_v38   ;;  %v4848_v11 = vphi %v6063_v11, %v6721_v11   ;;  %s4896_s16 = sphi %s6087_s16, %s3090_s16   ;;  %v4892_v62 = vphi %v6085_v62, %v6732_v62   ;;  %v4888_v46 = vphi %v6083_v46, %v6731_v46   ;;  %v4884_v33 = vphi %v6081_v33, %v6730_v33   ;;  %v4880_v29 = vphi %v6079_v29, %v6729_v29   ;;  %v4876_v53 = vphi %v6077_v53, %v6728_v53   ;;  %v4872_v35 = vphi %v6075_v35, %v6727_v35   ;;  %v4868_v36 = vphi %v6073_v36, %v6726_v36   ;;  %v4864_v32 = vphi %v6071_v32, %v6725_v32  }
 0x377   : >> { %s3104_s0 = sshra.s32 %s4091_s23, 7  ;;  %p6361_p1 = scmp.ge.s32.totalorder %s3090_s16, 2  }
 0x378   : >> { %s4092_s1 = sshll.u32 %s3104_s0, 3  ;;  %vm3803_vm3 = vcmask (%p6361_p1), 523264   ;;  %s4905_s23 = smov (%p6361_p1), [#allocation3]  }
 0x379   : >> { %s6137_s9 = scalar_lea.vmem [#allocation2], %s4092_s1  ;;  %s4119_s1 = sshll.u32 (%p6361_p1), %s4828_s28, 4 }
 0x37a   : >> { %v3110_v44 = vld [vmem:[%s6137_s9 + $0x60] sm:$0xff]  ;;  %v3111_v54 = vld [vmem:[%s6137_s9 + $0x70] sm:$0xff]  ;;  %s6442_s10 = sadd.s32 (%p6361_p1), %s4824_s27, %s4119_s1  ;;  %s3922_s27 = sshll.u32 (%p6361_p1), %s5030_s13, 4  ;;  %s6453_s27 = int_to_ptr.vmem [resolvable:$true] %s3922_s27 }
 0x37b   : >> { %v6715_v25 = vld [vmem:[#allocation7_spill] sm:$0xff]  ;;  %v6716_v23 = vld [vmem:[#allocation8_spill] sm:$0xff]  ;;  %3254 = vxpose.xlu1.c.b16.start [1/2] (short) %v3110_v44, 128  ;;  %v3109_v60 = vld [vmem:[%s6137_s9 + $0x50] sm:$0xff]  ;;  %s4120_s17 = sshll.u32 (%p6361_p1), %s6442_s10, 7  ;;  %s4690_s21 = scalar_lea.vmem (%p6361_p1), %s6453_s27, 1024 }
 0x37c   : >> { %v6713_v40 = vld [vmem:[#allocation49_spill] sm:$0xff]  ;;  %v6714_v37 = vld [vmem:[#allocation48_spill] sm:$0xff]  ;;  %4220 = vmatprep.subr.bf16.mxu0 %v6715_v25  ;;  %v3108_v50 = vld [vmem:[%s6137_s9 + $0x40] sm:$0xff]  ;;  %s6449_s20 = scalar_lea.hbm (%p6361_p1), %s6522_s7, %s4120_s17  ;;  %p4691_p2 = scmp.ne.s32.totalorder (%p6361_p1), %s6453_s27, %s4690_s21 }
 0x37d   : >> { %4240 = vmatprep.subr.bf16.mxu1 %v6714_v37  ;;  %4221 = vmatpush3.bf16.msra.mxu0 %v6715_v25  ;;  %v3112_v19 = vld [vmem:[%s6137_s9 + $0x80] sm:$0xff]  ;;  %s4694_s16 = sshll.u32 (%p6361_p1), %s4905_s23, 4  ;;  %s4695_s16 = int_to_ptr.vmem [resolvable:$false] %s4694_s16 }
 0x37e   : >> { %4241 = vmatpush3.bf16.msra.mxu1 %v6714_v37  ;;  %4222 = vmatprep.subr.bf16.mxu0 %v6716_v23  ;;  %v3114_v21 = vld [vmem:[%s6137_s9 + $0xa0] sm:$0xff]  ;;  %p4692_p4 = pnand (%p6361_p1), %p4691_p2, %p5000_p3  ;;  %s4696_s0 = scalar_lea.vmem (%p6361_p1), %s4695_s16, 2048 }
 0x37f   : >> { %4242 = vmatprep.subr.bf16.mxu1 %v6713_v40  ;;  %3116 = vxpose.xlu0.c.b16.start [1/2] (short) %v3108_v50, 128  ;;  %p4697_p6 = scmp.lt.s32.totalorder (%p6361_p1), %s6453_s27, %s4695_s16  ;;  %p4698_p7 = scmp.lt.s32.totalorder (%p6361_p1), %s4696_s0, %s4690_s21 }
 0x380   : >> { %3255 = vxpose.xlu1.c.b16.end [2/2] (short) %v3111_v54, 128  ;;  %p4693_p5 = pneg (%p6361_p1), %p4692_p4 }
 0x381   : >> { %4223 = vmatpush3.bf16.msra.mxu0 %v6716_v23  ;;  %p4699_p9 = por (%p6361_p1), %p4698_p7, %p4697_p6 }
 0x382   : >> { %4243 = vmatpush3.bf16.msra.mxu1 %v6713_v40 }
 0x383   : >> { %3117 = vxpose.xlu0.c.b16.end [2/2] (short) %v3109_v60, 128  ;;  %p4700_p10 = pnand (%p6361_p1), %p4699_p9, %p4693_p5 }
 0x3e2   : >> { %v3262_v41 = vpop.trf.xlu1 }
 0x3e3   : >> { %4244 = vmatprep.mubr.msk.bf16.mxu1 %vm3132_vm2, %v3262_v41 }
 0x3e5   : >> { %v3124_v45 = vpop.trf.xlu0 }
 0x3e6   : >> { %4224 = vmatprep.mubr.msk.bf16.mxu0 %vm3132_vm2, %v3124_v45  ;;  %v3263_v51 = vpop.trf.xlu1 }
 0x3e7   : >> { %4245 = vmatmul.mubr.msk.bf16.vlgmr.msra.gmra.mrb[0].mxu1 %vm3132_vm2, %v3263_v51 }
 0x3e9   : >> { %v3125_v58 = vpop.trf.xlu0 }
 0x3ea   : >> { %4225 = vmatmul.mubr.msk.bf16.vlgmr.msra.gmra.mrb[0].mxu0 %vm3132_vm2, %v3125_v58  ;;  %v3264_v59 = vpop.trf.xlu1 }
 0x3eb   : >> { %4248 = vmatprep.mubr.msk.bf16.mxu1 %vm3132_vm2, %v3264_v59 }
 0x3ed   : >> { %v3126_v31 = vpop.trf.xlu0 }
 0x3ee   : >> { %4228 = vmatprep.mubr.msk.bf16.mxu0 %vm3132_vm2, %v3126_v31  ;;  %v3265_v27 = vpop.trf.xlu1 }
 0x3ef   : >> { %4249 = vmatmul.mubr.msk.bf16.gmra.mrb[4].mxu1 %vm3132_vm2, %v3265_v27 }
 0x3f1   : >> { %v3127_v56 = vpop.trf.xlu0 }
 0x3f2   : >> { %4229 = vmatmul.mubr.msk.bf16.gmra.mrb[4].mxu0 %vm3132_vm2, %v3127_v56  ;;  %v3266_v8 = vpop.trf.xlu1 }
 0x3f3   : >> { %4252 = vmatprep.mubr.msk.bf16.mxu1 %vm3132_vm2, %v3266_v8 }
 0x3f5   : >> { %v3128_v0 = vpop.trf.xlu0 }
 0x3f6   : >> { %4232 = vmatprep.mubr.msk.bf16.mxu0 %vm3132_vm2, %v3128_v0  ;;  %v3267_v13 = vpop.trf.xlu1 }
 0x3f7   : >> { %4253 = vmatmul.mubr.msk.bf16.gmra.mrb[8].mxu1 %vm3132_vm2, %v3267_v13 }
 0x3f9   : >> { %v3129_v43 = vpop.trf.xlu0 }
 0x3fa   : >> { %4233 = vmatmul.mubr.msk.bf16.gmra.mrb[8].mxu0 %vm3132_vm2, %v3129_v43  ;;  %v3268_v2 = vpop.trf.xlu1 }
 0x3fb   : >> { %4256 = vmatprep.mubr.msk.bf16.mxu1 %vm3132_vm2, %v3268_v2 }
 0x3fd   : >> { %v3130_v26 = vpop.trf.xlu0 }
 0x3fe   : >> { %4236 = vmatprep.mubr.msk.bf16.mxu0 %vm3132_vm2, %v3130_v26  ;;  %v3269_v14 = vpop.trf.xlu1 }
 0x3ff   : >> { %4257 = vmatmul.mubr.msk.bf16.gmra.mrb[12].mxu1 %vm3132_vm2, %v3269_v14 }
 0x400   : >> { %4296 = vmatprep.mubr.bf16.mxu1 %v3114_v21 }
 0x401   : >> { %v3131_v17 = vpop.trf.xlu0 }
 0x402   : >> { %4237 = vmatmul.mubr.msk.bf16.gmra.mrb[12].mxu0 %vm3132_vm2, %v3131_v17 }
 0x403   : >> { %4276 = vmatprep.mubr.bf16.mxu0 %v3112_v19 }
 0x4ba   : >> { %v6163_v3 = vpop.f32.mrb[0].mxu1 }
 0x4bb   : >> { %v6167_v52 = vpop.f32.mrb[1].mxu1 }
 0x4bc   : >> { %v3412_v5 = vmax.f32 %v6167_v52, %v6163_v3  ;;  %v6175_v16 = vpop.f32.mrb[2].mxu1 }
 0x4bd   : >> { %v6161_v30 = vpop.f32.mrb[0].mxu0  ;;  %v6179_v47 = vpop.f32.mrb[3].mxu1 }
 0x4be   : >> { %v6165_v4 = vpop.f32.mrb[1].mxu0  ;;  %v3413_v48 = vmax.f32 %v6179_v47, %v6175_v16 }
 0x4bf   : >> { %v3391_v9 = vmax.f32 %v6165_v4, %v6161_v30  ;;  %v6173_v61 = vpop.f32.mrb[2].mxu0 }
 0x4c0   : >> { %v6177_v10 = vpop.f32.mrb[3].mxu0 }
 0x4c1   : >> { %v3392_v6 = vmax.f32 %v6177_v10, %v6173_v61 }
 0x4c2   : >> { %v6187_v1 = vpop.f32.mrb[4].mxu1 }
 0x4c3   : >> { %v6191_v24 = vpop.f32.mrb[5].mxu1 }
 0x4c4   : >> { %v3414_v34 = vmax.f32 %v3412_v5, %v6191_v24  ;;  %v6197_v12 = vpop.f32.mrb[6].mxu1 }
 0x4c5   : >> { %v6185_v49 = vpop.f32.mrb[4].mxu0  ;;  %v6201_v22 = vpop.f32.mrb[7].mxu1 }
 0x4c6   : >> { %v6189_v39 = vpop.f32.mrb[5].mxu0  ;;  %v3415_v20 = vmax.f32 %v3413_v48, %v6201_v22  ;;  %v3416_v7 = vmax.f32 %v3414_v34, %v6187_v1 }
 0x4c7   : >> { %v3393_v42 = vmax.f32 %v3391_v9, %v6189_v39  ;;  %v6195_v63 = vpop.f32.mrb[6].mxu0 }
 0x4c8   : >> { %v6199_v28 = vpop.f32.mrb[7].mxu0  ;;  %v3417_v50 = vmax.f32 %v3415_v20, %v6197_v12 }
 0x4c9   : >> { %v3394_v15 = vmax.f32 %v3392_v6, %v6199_v28  ;;  %v3395_v18 = vmax.f32 %v3393_v42, %v6185_v49 }
 0x4ca   : >> { %v6211_v60 = vpop.f32.mrb[8].mxu1 }
 0x4cb   : >> { %v3396_v44 = vmax.f32 %v3394_v15, %v6195_v63  ;;  %v6215_v45 = vpop.f32.mrb[9].mxu1 }
 0x4cc   : >> { %v3418_v58 = vmax.f32 %v3416_v7, %v6215_v45  ;;  %v6221_v31 = vpop.f32.mrb[10].mxu1 }
 0x4cd   : >> { %v6209_v54 = vpop.f32.mrb[8].mxu0  ;;  %v6225_v56 = vpop.f32.mrb[11].mxu1 }
 0x4ce   : >> { %v6213_v41 = vpop.f32.mrb[9].mxu0  ;;  %v3419_v0 = vmax.f32 %v3417_v50, %v6225_v56  ;;  %v3420_v43 = vmax.f32 %v3418_v58, %v6211_v60 }
 0x4cf   : >> { %v3397_v51 = vmax.f32 %v3395_v18, %v6213_v41  ;;  %v6219_v59 = vpop.f32.mrb[10].mxu0 }
 0x4d0   : >> { %v6223_v27 = vpop.f32.mrb[11].mxu0  ;;  %v3421_v26 = vmax.f32 %v3419_v0, %v6221_v31 }
 0x4d1   : >> { %v3398_v8 = vmax.f32 %v3396_v44, %v6223_v27  ;;  %v3399_v13 = vmax.f32 %v3397_v51, %v6209_v54 }
 0x4d2   : >> { %v6235_v17 = vpop.f32.mrb[12].mxu1 }
 0x4d3   : >> { %v3400_v2 = vmax.f32 %v3398_v8, %v6219_v59  ;;  %v6239_v21 = vpop.f32.mrb[13].mxu1 }
 0x4d4   : >> { %v3422_v5 = vmax.f32 %v3420_v43, %v6239_v21  ;;  %v6245_v48 = vpop.f32.mrb[14].mxu1 }
 0x4d5   : >> { %v6233_v14 = vpop.f32.mrb[12].mxu0  ;;  %v6249_v34 = vpop.f32.mrb[15].mxu1 }
 0x4d6   : >> { %v6237_v19 = vpop.f32.mrb[13].mxu0  ;;  %v3424_v20 = vmax.f32 %v3422_v5, %v6235_v17  ;;  %v3423_v7 = vmax.f32 %v3421_v26, %v6249_v34 }
 0x4d7   : >> { %v3401_v9 = vmax.f32 %v3399_v13, %v6237_v19  ;;  %v6243_v6 = vpop.f32.mrb[14].mxu0 }
 0x4d8   : >> { %v6247_v42 = vpop.f32.mrb[15].mxu0  ;;  %v3425_v50 = vmax.f32 %v3423_v7, %v6245_v48 }
 0x4d9   : >> { %v3403_v15 = vmax.f32 %v3401_v9, %v6233_v14  ;;  %v3402_v18 = vmax.f32 %v3400_v2, %v6247_v42 }
 0x4da   : >> { %v3426_v58 = vmax.f32 %v3424_v20, %v3425_v50 }
 0x4db   : >> { %v3404_v44 = vmax.f32 %v3402_v18, %v6243_v6 }
 0x4dc   : >> { %v3427_v0 = vrot.slane %v3426_v58, 4 }
 0x4dd   : >> { %v3405_v51 = vmax.f32 %v3403_v15, %v3404_v44 }
 0x4de   : >> { %v3428_v43 = vmax.f32 %v3426_v58, %v3427_v0 }
 0x4df   : >> { %v3406_v8 = vrot.slane %v3405_v51, 4 }
 0x4e0   : >> { %v3429_v25 = vrot.slane %v3428_v43, 2 }
 0x4e1   : >> { %v3407_v13 = vmax.f32 %v3405_v51, %v3406_v8 }
 0x4e2   : >> { %v3430_v9 = vmax.f32 %v3428_v43, %v3429_v25 }
 0x4e3   : >> { %v3408_v23 = vrot.slane %v3407_v13, 2 }
 0x4e4   : >> { %v3431_v5 = vrot.slane %v3430_v9, 1 }
 0x4e5   : >> { %v3409_v37 = vmax.f32 %v3407_v13, %v3408_v23 }
 0x4e6   : >> { %v3432_v2 = vmax.f32 %v3430_v9, %v3431_v5 }
 0x4e7   : >> { %v3410_v40 = vrot.slane %v3409_v37, 1 }
 0x4e8   : >> { %v6261_v18 = vmax.f32 %v4888_v46, %v3432_v2  }
 0x4e9   : >> { %v3411_v57 = vmax.f32 %v3409_v37, %v3410_v40 }
 0x4ea   : >> { %v3459_v0 = vsub.f32 %v6163_v3, %v6261_v18  ;;  %v3461_v13 = vsub.f32 %v6191_v24, %v6261_v18  ;;  %v3462_v43 = vsub.f32 %v6201_v22, %v6261_v18  ;;  %v3463_v9 = vsub.f32 %v6187_v1, %v6261_v18 }
 0x4eb   : >> { %v6258_v26 = vmax.f32 %v4892_v62, %v3411_v57   ;;  %v3465_v3 = vsub.f32 %v6215_v45, %v6261_v18  ;;  %v3467_v24 = vsub.f32 %v6211_v60, %v6261_v18  ;;  %v3468_v22 = vsub.f32 %v6221_v31, %v6261_v18 }
 0x4ec   : >> { %v3469_v1 = vsub.f32 %v6239_v21, %v6261_v18 }
 0x4ed   : >> { %v3441_v15 = vsub.f32 %v6165_v4, %v6258_v26  ;;  %v3442_v20 = vsub.f32 %v6177_v10, %v6258_v26  ;;  %v3443_v23 = vsub.f32 %v6161_v30, %v6258_v26  ;;  %v3444_v25 = vsub.f32 %v6173_v61, %v6258_v26 }
 0x4ee   : >> { %v3445_v37 = vsub.f32 %v6189_v39, %v6258_v26  ;;  %v3446_v40 = vsub.f32 %v6199_v28, %v6258_v26  ;;  %v3447_v57 = vsub.f32 %v6185_v49, %v6258_v26  ;;  %v3448_v4 = vsub.f32 %v6195_v63, %v6258_v26 }
 0x4ef   : >> { %v3449_v10 = vsub.f32 %v6213_v41, %v6258_v26  ;;  %v3450_v30 = vsub.f32 %v6223_v27, %v6258_v26  ;;  %v3451_v61 = vsub.f32 %v6209_v54, %v6258_v26  ;;  %v3452_v39 = vsub.f32 %v6219_v59, %v6258_v26 }
 0x4f0   : >> { %v3453_v28 = vsub.f32 %v6237_v19, %v6258_v26  ;;  %v3454_v49 = vsub.f32 %v6247_v42, %v6258_v26  ;;  %v3473_v7 = vmul.f32 1.442695, %v3441_v15  ;;  %v3475_v63 = vmul.f32 1.442695, %v3442_v20 }
 0x4f1   : >> { %v3477_v44 = vmul.f32 1.442695, %v3443_v23  ;;  %v3479_v50 = vmul.f32 1.442695, %v3444_v25  ;;  %v3457_v41 = vsub.f32 %v6167_v52, %v6261_v18  ;;  %v3481_v27 = vmul.f32 1.442695, %v3445_v37 }
 0x4f2   : >> { %4612 = vpow2.f32 %v3473_v7  ;;  %v3483_v54 = vmul.f32 1.442695, %v3446_v40  ;;  %v3485_v51 = vmul.f32 1.442695, %v3447_v57  ;;  %v3487_v58 = vmul.f32 1.442695, %v3448_v4 }
 0x4f3   : >> { %4614 = vpow2.f32 %v3475_v63  ;;  %v3489_v59 = vmul.f32 1.442695, %v3449_v10  ;;  %v3491_v8 = vmul.f32 1.442695, %v3450_v30  ;;  %v3493_v19 = vmul.f32 1.442695, %v3451_v61 }
 0x4f4   : >> { %4616 = vpow2.f32 %v3477_v44  ;;  %v3458_v42 = vsub.f32 %v6179_v47, %v6261_v18  ;;  %v3460_v52 = vsub.f32 %v6175_v16, %v6261_v18  ;;  %v3464_v47 = vsub.f32 %v6197_v12, %v6261_v18 }
 0x4f5   : >> { %4618 = vpow2.f32 %v3479_v50  ;;  %v3466_v16 = vsub.f32 %v6225_v56, %v6261_v18  ;;  %v3495_v5 = vmul.f32 1.442695, %v3452_v39  ;;  %v3470_v12 = vsub.f32 %v6249_v34, %v6261_v18 }
 0x4f6   : >> { %4620 = vpow2.f32 %v3481_v27  ;;  %v3497_v45 = vmul.f32 1.442695, %v3453_v28  ;;  %v3499_v2 = vmul.f32 1.442695, %v3454_v49  ;;  %v3505_v15 = vmul.f32 1.442695, %v3457_v41 }
 0x4f7   : >> { %4622 = vpow2.f32 %v3483_v54  ;;  %v3507_v60 = vmul.f32 1.442695, %v3458_v42  ;;  %v3509_v23 = vmul.f32 1.442695, %v3459_v0  ;;  %v3511_v25 = vmul.f32 1.442695, %v3460_v52 }
 0x4f8   : >> { %4624 = vpow2.f32 %v3485_v51  ;;  %v3435_v4 = vsub.f32 %v4892_v62, %v6258_v26  ;;  %v3455_v30 = vsub.f32 %v6233_v14, %v6258_v26  ;;  %v3456_v61 = vsub.f32 %v6243_v6, %v6258_v26 }
 0x4f9   : >> { %4626 = vpow2.f32 %v3487_v58  ;;  %v3436_v39 = vsub.f32 %v4888_v46, %v6261_v18  ;;  %v3513_v7 = vmul.f32 1.442695, %v3461_v13  ;;  %v3515_v50 = vmul.f32 1.442695, %v3462_v43 }
 0x4fa   : >> { %4628 = vpow2.f32 %v3489_v59  ;;  %v3517_v41 = vmul.f32 1.442695, %v3463_v9  ;;  %v3471_v6 = vsub.f32 %v6235_v17, %v6261_v18  ;;  %v3519_v58 = vmul.f32 1.442695, %v3464_v47 }
 0x4fb   : >> { %4630 = vpow2.f32 %v3491_v8  ;;  %v3472_v59 = vsub.f32 %v6245_v48, %v6261_v18  ;;  %v3521_v42 = vmul.f32 1.442695, %v3465_v3  ;;  %v3523_v13 = vmul.f32 1.442695, %v3466_v16 }
 0x4fc   : >> { %v4613_v56 = vpop.eup %4612  ;;  %4632 = vpow2.f32 %v3493_v19  ;;  %v3527_v48 = vmul.f32 1.442695, %v3468_v22  ;;  %v3529_v3 = vmul.f32 1.442695, %v3469_v1 }
 0x4fd   : >> { %v4615_v20 = vpop.eup %4614  ;;  %4634 = vpow2.f32 %v3495_v5  ;;  %v3525_v5 = vmul.f32 1.442695, %v3467_v24  ;;  %v3531_v24 = vmul.f32 1.442695, %v3470_v12 }
 0x4fe   : >> { %v4617_v37 = vpop.eup %4616  ;;  %4636 = vpow2.f32 %v3497_v45  ;;  %v3539_v40 = vadd.f32 %v4615_v20, %v4613_v56  ;;  %v3583_v57 = vpack.c.bf16 %v4615_v20, %v4613_v56 }
 0x4ff   : >> { %v4619_v10 = vpop.eup %4618  ;;  %4638 = vpow2.f32 %v3499_v2 }
 0x500   : >> { %v4621_v28 = vpop.eup %4620  ;;  %v3540_v49 = vadd.f32 %v4617_v37, %v3539_v40  ;;  %4640 = vpow2.f32 %v3505_v15  ;;  %4260 = vmatprep.subr.bf16.mxu0 %v3583_v57  ;;  %v3584_v63 = vpack.c.bf16 %v4619_v10, %v4617_v37 }
 0x501   : >> { %v4623_v44 = vpop.eup %4622  ;;  %4642 = vpow2.f32 %v3507_v60  ;;  %4261 = vmatpush3.bf16.msra.mxu0 %v3583_v57  ;;  %v3501_v60 = vmul.f32 1.442695, %v3455_v30  ;;  %v3535_v30 = vmul.f32 1.442695, %v3472_v59 }
 0x502   : >> { %v4625_v27 = vpop.eup %4624  ;;  %v3541_v54 = vadd.f32 %v4619_v10, %v3540_v49  ;;  %4644 = vpow2.f32 %v3509_v23  ;;  %4262 = vmatprep.subr.bf16.mxu0 %v3584_v63  ;;  %v3585_v14 = vpack.c.bf16 %v4623_v44, %v4621_v28  ;;  %v3503_v23 = vmul.f32 1.442695, %v3456_v61 }
 0x503   : >> { %v4627_v51 = vpop.eup %4626  ;;  %4646 = vpow2.f32 %v3511_v25 }
 0x504   : >> { %v4629_v8 = vpop.eup %4628  ;;  %v3542_v19 = vadd.f32 %v4621_v28, %v3541_v54  ;;  %4648 = vpow2.f32 %v3513_v7  ;;  %v3586_v0 = vpack.c.bf16 %v4627_v51, %v4625_v27  ;;  %v3533_v28 = vmul.f32 1.442695, %v3471_v6 }
 0x505   : >> { %v4631_v52 = vpop.eup %4630  ;;  %4650 = vpow2.f32 %v3515_v50  ;;  %4263 = vmatpush3.bf16.msra.mxu0 %v3584_v63 }
 0x506   : >> { %v4633_v43 = vpop.eup %4632  ;;  %v3543_v9 = vadd.f32 %v4623_v44, %v3542_v19  ;;  %4652 = vpow2.f32 %v3517_v41  ;;  %4264 = vmatprep.subr.bf16.mxu0 %v3585_v14  ;;  %v3587_v17 = vpack.c.bf16 %v4631_v52, %v4629_v8 }
 0x507   : >> { %v4635_v45 = vpop.eup %4634  ;;  %4654 = vpow2.f32 %v3519_v58 }
 0x508   : >> { %v4637_v47 = vpop.eup %4636  ;;  %v3544_v2 = vadd.f32 %v4625_v27, %v3543_v9  ;;  %4656 = vpow2.f32 %v3521_v42  ;;  %v3588_v16 = vpack.c.bf16 %v4635_v45, %v4633_v43  ;;  %v3437_v9 = vmul.f32 1.442695, %v3435_v4 }
 0x509   : >> { %v4639_v56 = vpop.eup %4638  ;;  %4658 = vpow2.f32 %v3523_v13  ;;  %4265 = vmatpush3.bf16.msra.mxu0 %v3585_v14 }
 0x50a   : >> { %v4641_v15 = vpop.eup %4640  ;;  %v3545_v20 = vadd.f32 %v4627_v51, %v3544_v2  ;;  %4660 = vpow2.f32 %v3525_v5  ;;  %4266 = vmatprep.subr.bf16.mxu0 %v3586_v0  ;;  %v3589_v31 = vpack.c.bf16 %v4639_v56, %v4637_v47 }
 0x50b   : >> { %v4643_v22 = vpop.eup %4642  ;;  %4662 = vpow2.f32 %v3527_v48 }
 0x50c   : >> { %v4645_v25 = vpop.eup %4644  ;;  %v3546_v21 = vadd.f32 %v4629_v8, %v3545_v20  ;;  %4664 = vpow2.f32 %v3529_v3  ;;  %v3560_v1 = vadd.f32 %v4643_v22, %v4641_v15  ;;  %v3591_v37 = vpack.c.bf16 %v4643_v22, %v4641_v15  ;;  %v3113_v22 = vld [vmem:[%s6137_s9 + $0x90] sm:$0xff] }
 0x50d   : >> { %v4647_v40 = vpop.eup %4646  ;;  %4666 = vpow2.f32 %v3531_v24  ;;  %4267 = vmatpush3.bf16.msra.mxu0 %v3586_v0 }
 0x50e   : >> { %v4649_v34 = vpop.eup %4648  ;;  %v3547_v12 = vadd.f32 %v4631_v52, %v3546_v21  ;;  %v3561_v57 = vadd.f32 %v4645_v25, %v3560_v1  ;;  %4280 = vmatprep.subr.bf16.mxu1 %v3591_v37  ;;  %v3592_v10 = vpack.c.bf16 %v4647_v40, %v4645_v25  ;;  %4268 = vmatprep.subr.bf16.mxu0 %v3587_v17  ;;  %4668 = vpow2.f32 %v3501_v60 }
 0x50f   : >> { %v4651_v49 = vpop.eup %4650  ;;  %4281 = vmatpush3.bf16.msra.mxu1 %v3591_v37  ;;  %4670 = vpow2.f32 %v3503_v23  ;;  %v3439_v21 = vmul.f32 1.442695, %v3436_v39 }
 0x510   : >> { %v4653_v61 = vpop.eup %4652  ;;  %v3548_v7 = vadd.f32 %v4633_v43, %v3547_v12  ;;  %v3562_v63 = vadd.f32 %v4647_v40, %v3561_v57  ;;  %4282 = vmatprep.subr.bf16.mxu1 %v3592_v10  ;;  %v3593_v44 = vpack.c.bf16 %v4651_v49, %v4649_v34  ;;  %4672 = vpow2.f32 %v3533_v28 }
 0x511   : >> { %v4655_v50 = vpop.eup %4654  ;;  %4269 = vmatpush3.bf16.msra.mxu0 %v3587_v17  ;;  %4674 = vpow2.f32 %v3535_v30 }
 0x512   : >> { %v4657_v41 = vpop.eup %4656  ;;  %v3549_v27 = vadd.f32 %v4635_v45, %v3548_v7  ;;  %v3563_v54 = vadd.f32 %v4649_v34, %v3562_v63  ;;  %v3594_v14 = vpack.c.bf16 %v4655_v50, %v4653_v61  ;;  %4270 = vmatprep.subr.bf16.mxu0 %v3588_v16  ;;  %4676 = vpow2.f32 %v3437_v9 }
 0x513   : >> { %v4659_v51 = vpop.eup %4658  ;;  %4283 = vmatpush3.bf16.msra.mxu1 %v3592_v10  ;;  %4678 = vpow2.f32 %v3439_v21  ;;  %v3742_v21 = vld [vmem:[%s6521_s6 + $0x38] sm:$0xff] (%p6361_p1) }
 0x514   : >> { %v4661_v6 = vpop.eup %4660  ;;  %v3550_v58 = vadd.f32 %v4637_v47, %v3549_v27  ;;  %v3564_v59 = vadd.f32 %v4651_v49, %v3563_v54  ;;  %4284 = vmatprep.subr.bf16.mxu1 %v3593_v44  ;;  %v3595_v8 = vpack.c.bf16 %v4659_v51, %v4657_v41 }
 0x515   : >> { %v4663_v19 = vpop.eup %4662  ;;  %4271 = vmatpush3.bf16.msra.mxu0 %v3588_v16 }
 0x516   : >> { %v4665_v42 = vpop.eup %4664  ;;  %v3551_v0 = vadd.f32 %v4639_v56, %v3550_v58  ;;  %v3565_v52 = vadd.f32 %v4653_v61, %v3564_v59  ;;  %v3596_v13 = vpack.c.bf16 %v4663_v19, %v4661_v6  ;;  %4272 = vmatprep.subr.bf16.mxu0 %v3589_v31  ;;  %v3115_v61 = vld [vmem:[%s6137_s9 + $0xb0] sm:$0xff]  ;;  %s3882_s9 = scalar_lea.vmem (%p6361_p1), %s5028_s12, %s4090_s18  ;;  %s6733_s18 = sand.u32 (%p6361_p1), 1, %s4816_s25  }
 0x517   : >> { %v4667_v43 = vpop.eup %4666  ;;  %4285 = vmatpush3.bf16.msra.mxu1 %v3593_v44  ;;  %s6463_s22 = scalar_lea.sflag (%p6361_p1), [#allocation4], %s6733_s18 }
 0x518   : >> { %v3566_v5 = vadd.f32 %v4655_v50, %v3565_v52  ;;  %4286 = vmatprep.subr.bf16.mxu1 %v3594_v14  ;;  %v3597_v17 = vpack.c.bf16 %v4667_v43, %v4665_v42  ;;  %v4669_v45 = vpop.eup %4668 }
 0x519   : >> { %4273 = vmatpush3.bf16.msra.mxu0 %v3589_v31  ;;  %v4671_v48 = vpop.eup %4670  ;;  %v3552_v2 = vadd.f32 %v4669_v45, %v3551_v0 }
 0x51a   : >> { %v3567_v47 = vadd.f32 %v4657_v41, %v3566_v5  ;;  %v3590_v3 = vpack.c.bf16 %v4671_v48, %v4669_v45  ;;  %v4673_v16 = vpop.eup %4672 }
 0x51b   : >> { %4287 = vmatpush3.bf16.msra.mxu1 %v3594_v14  ;;  %v3553_v24 = vadd.f32 %v4671_v48, %v3552_v2  ;;  %v4675_v15 = vpop.eup %4674 }
 0x51c   : >> { %v3568_v56 = vadd.f32 %v4659_v51, %v3567_v47  ;;  %4288 = vmatprep.subr.bf16.mxu1 %v3595_v8  ;;  %4274 = vmatprep.subr.bf16.mxu0 %v3590_v3  ;;  %v3598_v20 = vpack.c.bf16 %v4675_v15, %v4673_v16  ;;  %v4677_v40 = vpop.eup %4676 }
 0x51d   : >> { %v3554_v4 = vrot.slane %v3553_v24, 4  ;;  %4275 = vmatpush3.bf16.msra.mxu0 %v3590_v3  ;;  %v3537_v57 = vmul.f32 %v4884_v33, %v4677_v40  ;;  %v4679_v63 = vpop.eup %4678  ;;  %v3699_v54 = vmul.f32 %v4868_v36, %v4677_v40  ;;  %v3697_v14 = vmul.f32 %v4876_v53, %v4677_v40  ;;  %v4682_v3 = vld [vmem:[%s6520_s5] sm:$0xff] (%p6361_p1)  }
 0x51e   : >> { %v3569_v62 = vadd.f32 %v4661_v6, %v3568_v56  ;;  %v3538_v50 = vmul.f32 %v4880_v29, %v4679_v63  ;;  %v3700_v58 = vmul.f32 %v4864_v32, %v4677_v40  ;;  %v3703_v29 = vmul.f32 %v4852_v38, %v4679_v63  ;;  %v6719_v32 = vld [vmem:[#allocation67_spill] sm:$0xff] }
 0x51f   : >> { %4289 = vmatpush3.bf16.msra.mxu1 %v3595_v8  ;;  %v3555_v60 = vadd.f32 %v3554_v4, %v3553_v24  ;;  %v3704_v53 = vmul.f32 %v4848_v11, %v4679_v63  ;;  %v3702_v45 = vmul.f32 %v6719_v32, %v4679_v63  ;;  %v3740_v56 = vld [vmem:[%s6521_s6 + $0x28] sm:$0xff] (%p6361_p1)  ;;  %v3739_v24 = vld [vmem:[%s6521_s6 + $0x20] sm:$0xff] (%p6361_p1) }
 0x520   : >> { %v3570_v31 = vadd.f32 %v4663_v19, %v3569_v62  ;;  %4290 = vmatprep.subr.bf16.mxu1 %v3596_v13  ;;  %4277 = vmatmul.mubr.bf16.vlgmr.msra.gmra.mrb[16].mxu0 %v3113_v22  ;;  %v3698_v19 = vmul.f32 %v4872_v35, %v4677_v40  ;;  %v6732_v62 = vmov %v6258_v26 }
 0x521   : >> { %v3556_v25 = vrot.slane %v3555_v60, 2  ;;  %4308 = vmatprep.mubr.msk.bf16.mxu0 (%p6361_p1), %vm3803_vm3, %v4682_v3 }
 0x522   : >> { %v3571_v23 = vadd.f32 %v4665_v42, %v3570_v31 }
 0x523   : >> { %4291 = vmatpush3.bf16.msra.mxu1 %v3596_v13  ;;  %v3557_v37 = vadd.f32 %v3556_v25, %v3555_v60 }
 0x524   : >> { %v3572_v1 = vadd.f32 %v4667_v43, %v3571_v23  ;;  %4292 = vmatprep.subr.bf16.mxu1 %v3597_v17  ;;  %v3701_v43 = vmul.f32 %v4860_v55, %v4679_v63 }
 0x525   : >> { %v3558_v34 = vrot.slane %v3557_v37, 1 }
 0x526   : >> { %v3573_v12 = vadd.f32 %v4673_v16, %v3572_v1  ;;  %v4683_v16 = vld [vmem:[%s6520_s5 + $0x10] sm:$0xff] (%p6361_p1)  }
 0x527   : >> { %4293 = vmatpush3.bf16.msra.mxu1 %v3597_v17  ;;  %v3559_v10 = vadd.f32 %v3558_v34, %v3557_v37  ;;  %v3741_v1 = vld [vmem:[%s6521_s6 + $0x30] sm:$0xff] (%p6361_p1) }
 0x528   : >> { %v3574_v28 = vadd.f32 %v4675_v15, %v3573_v12  ;;  %4294 = vmatprep.subr.bf16.mxu1 %v3598_v20 }
 0x529   : >> { %v3581_v49 = vadd.f32 %v3559_v10, %v3537_v57   ;;  %v4685_v10 = vld [vmem:[%s6520_s5 + $0x18] sm:$0xff] (%p6361_p1)  }
 0x52a   : >> { %v3575_v30 = vrot.slane %v3574_v28, 4 }
 0x52b   : >> { %4295 = vmatpush3.bf16.msra.mxu1 %v3598_v20  ;;  %4686 = vrcp.f32 (%p6361_p1), %v3581_v49 }
 0x52c   : >> { %v3576_v46 = vadd.f32 %v3575_v30, %v3574_v28 }
 0x52e   : >> { %v3577_v39 = vrot.slane %v3576_v46, 2  ;;  %4297 = vmatmul.mubr.bf16.vlgmr.msra.gmra.mrb[16].mxu1 %v3115_v61 }
 0x52f   : > { %4312 = vmatprep.mubr.msk.bf16.mxu1 (%p6361_p1), %vm3803_vm3, %v4683_v16 }
 0x530   : >> { %v3578_v7 = vadd.f32 %v3577_v39, %v3576_v46  ;;  %v6731_v46 = vmov %v6261_v18  ;;  %v4904_v18 = vmov (%p6361_p1), 0  }
 0x531   : > { %4681 = vset.pattern.permute.xlu1 (%p6361_p1), %v4904_v18  ;;  %4680 = vset.pattern.permute.xlu0 (%p6361_p1), %v4904_v18 }
 0x532   : >> { %v3579_v44 = vrot.slane %v3578_v7, 1 }
 0x534   : >> { %v3580_v41 = vadd.f32 %v3579_v44, %v3578_v7 }
 0x535   : > { %v4687_v26 = vpop.eup (%p6361_p1), %4686 }
 0x536   : >> { %v3582_v27 = vadd.f32 %v3580_v41, %v3538_v50   ;;  %v3885_v50 = vld [vmem:[%s3882_s9 + $0x20] sm:$0xff] (%p6361_p1) }
 0x538   : > { %4688 = vrcp.f32 (%p6361_p1), %v3582_v27 }
 0x542   : > { %v4689_v15 = vpop.eup (%p6361_p1), %4688 }
 0x5f3   : >> { %v4278_v33 = vpop.f32.mrb[16].mxu0 }
 0x5f4   : >> { %v3707_v51 = vadd.f32 %v4278_v33, %v3699_v54   ;;  %v3633_v6 = vpop.f32.mrb[17].mxu0  ;;  %v6730_v33 = vmov %v3581_v49 }
 0x5f5   : >> { %v3705_v59 = vadd.f32 %v3697_v14, %v3633_v6   ;;  %v4279_v8 = vpop.f32.mrb[18].mxu0 }
 0x5f6   : >> { %v3708_v42 = vadd.f32 %v4279_v8, %v3700_v58   ;;  %v3636_v0 = vpop.f32.mrb[19].mxu0  ;;  %v3717_v20 = vmul.f32 (%p6361_p1), %v4687_v26, %v3707_v51  ;;  %v3887_v58 = vld [vmem:[%s3882_s9 + $0x40] sm:$0xff] (%p6361_p1) }
 0x5f7   : >> { %v3706_v52 = vadd.f32 %v3698_v19, %v3636_v0   ;;  %v3715_v62 = vmul.f32 (%p6361_p1), %v4687_v26, %v3705_v59 }
 0x5f8   : >> { %v6725_v32 = vmov %v3708_v42  ;;  %v3718_v22 = vmul.f32 (%p6361_p1), %v4687_v26, %v3708_v42  ;;  %v3886_v42 = vld [vmem:[%s3882_s9 + $0x30] sm:$0xff] (%p6361_p1) }
 0x5f9   : >> { %v6727_v35 = vmov %v3706_v52  ;;  %v3716_v4 = vmul.f32 (%p6361_p1), %v4687_v26, %v3706_v52  ;;  %v3890_v52 = vld [vmem:[%s3882_s9 + $0x70] sm:$0xff] (%p6361_p1) }
 0x5fa   : > { %v3736_v35 = vld [vmem:[%s6521_s6 + $0x8] sm:$0xff] (%p6361_p1)  ;;  %v3724_v23 = vpack.c.bf16 (%p6361_p1), %v3718_v22, %v3717_v20 }
 0x5fb   : > { %v3723_v60 = vpack.c.bf16 (%p6361_p1), %v3716_v4, %v3715_v62 }
 0x5fd   : > { %4300 = vmatprep.subr.bf16.mxu0 (%p6361_p1), %v3723_v60  ;;  %4324 = vmatprep.subr.bf16.mxu1 (%p6361_p1), %v3723_v60 }
 0x5fe   : > { %4301 = vmatpush3.bf16.msra.mxu0 (%p6361_p1), %v3723_v60  ;;  %4328 = vmatpush3.bf16.msra.mxu1 (%p6361_p1), %v3723_v60 }
 0x5ff   : > { %4302 = vmatprep.subr.bf16.mxu0 (%p6361_p1), %v3724_v23  ;;  %4325 = vmatprep.subr.bf16.mxu1 (%p6361_p1), %v3724_v23 }
 0x601   : >> { %v4298_v13 = vpop.f32.mrb[16].mxu1  ;;  %3089 = sbr.rel (!%p6361_p1) target bundleno = 886 (0x376), region = 117 }
 0x602   : >> { %v6356_v38 = vadd.f32 %v4298_v13, %v3703_v29   ;;  %v3682_v36 = vpop.f32.mrb[17].mxu1  ;;  %v6729_v29 = vmov %v3582_v27  ;;  %4303 = vmatpush3.bf16.msra.mxu0 (%p6361_p1), %v3724_v23  ;;  %4329 = vmatpush3.bf16.msra.mxu1 (%p6361_p1), %v3724_v23  ;;  %v3889_v27 = vld [vmem:[%s3882_s9 + $0x60] sm:$0xff] (%p6361_p1) }
 0x603   : >> { %v3709_v5 = vadd.f32 %v3701_v43, %v3682_v36   ;;  %v4299_v17 = vpop.f32.mrb[18].mxu1  ;;  %v6726_v36 = vmov %v3707_v51  ;;  %v3883_v51 = vld [vmem:[%s3882_s9] sm:$0xff] (%p6361_p1) }
 0x604   : >> { %v6718_v9 = vmov %v6356_v38  ;;  %v3712_v48 = vadd.f32 %v4299_v17, %v3704_v53   ;;  %v3685_v47 = vpop.f32.mrb[19].mxu1  ;;  %v6728_v53 = vmov %v3705_v59  ;;  %v3888_v17 = vld [vmem:[%s3882_s9 + $0x50] sm:$0xff] (%p6361_p1) }
 0x605   : >> { %v3710_v2 = vadd.f32 %v3702_v45, %v3685_v47   ;;  %v6722_v38 = vmov %v6718_v9  ;;  %v6724_v55 = vmov %v3709_v5  ;;  %v3719_v31 = vmul.f32 (%p6361_p1), %v4689_v15, %v3709_v5  ;;  %v3884_v53 = vld [vmem:[%s3882_s9 + $0x10] sm:$0xff] (%p6361_p1) }
 0x606   : >> { %v6721_v11 = vmov %v3712_v48  ;;  %v3735_v38 = vld [vmem:[%s6521_s6] sm:$0xff] (%p6361_p1)  ;;  %v3738_v55 = vld [vmem:[%s6521_s6 + $0x18] sm:$0xff] (%p6361_p1)  ;;  %v3721_v40 = vmul.f32 (%p6361_p1), %v4689_v15, %v6718_v9  ;;  %v3722_v34 = vmul.f32 (%p6361_p1), %v4689_v15, %v3712_v48 }
 0x607   : >> { %v6723_v57 = vmov %v3710_v2  ;;  %v3737_v11 = vld [vmem:[%s6521_s6 + $0x10] sm:$0xff] (%p6361_p1)  ;;  %3745 = vperm.xlu0 (%p6361_p1), %4680, %v3735_v38   ;;  %v3720_v25 = vmul.f32 (%p6361_p1), %v4689_v15, %v3710_v2 }
 0x608   : > { %3755 = vperm.xlu1 %4681, %v3737_v11   ;;  %v3726_v12 = vpack.c.bf16 %v3722_v34, %v3721_v40  ;;  %v4684_v57 = vld [vmem:[%s6520_s5 + $0x8] sm:$0xff]  }
 0x609   : > { %v3725_v37 = vpack.c.bf16 %v3720_v25, %v3719_v31 }
 0x60b   : > { %3750 = vperm.xlu0 %4680, %v3736_v35   ;;  %4304 = vmatprep.subr.bf16.mxu0 %v3725_v37 }
 0x60c   : > { %3760 = vperm.xlu1 %4681, %v3738_v55   ;;  %4326 = vmatprep.subr.bf16.mxu1 %v3725_v37 }
 0x60d   : > { %4305 = vmatpush3.bf16.msra.mxu0 %v3725_v37  ;;  %4330 = vmatpush3.bf16.msra.mxu1 %v3725_v37 }
 0x60e   : > { %4306 = vmatprep.subr.bf16.mxu0 %v3726_v12  ;;  %4327 = vmatprep.subr.bf16.mxu1 %v3726_v12 }
 0x60f   : > { %3765 = vperm.xlu0 %4680, %v3739_v24  }
 0x610   : > { %3770 = vperm.xlu1 %4681, %v3740_v56  }
 0x611   : > { %4307 = vmatpush3.bf16.msra.mxu0 %v3726_v12  ;;  %4331 = vmatpush3.bf16.msra.mxu1 %v3726_v12 }
 0x613   : > { %3775 = vperm.xlu0 %4680, %v3741_v1  }
 0x614   : > { %3780 = vperm.xlu1 %4681, %v3742_v21   ;;  %4309 = vmatmul.mubr.msk.bf16.vlgmr.msra.gmra.mrb[0].mxu0 %vm3803_vm3, %v4684_v57 }
 0x615   : > { %4313 = vmatmul.mubr.msk.bf16.vlgmr.msra.gmra.mrb[0].mxu1 %vm3803_vm3, %v4685_v10 }
 0x686   : > { %v3746_v49 = vpop.permute.xlu0 %3745 }
 0x687   : > { %v3756_v28 = vpop.permute.xlu1 %3755 }
 0x68a   : > { %v3751_v61 = vpop.permute.xlu0 %3750 }
 0x68b   : > { %v3761_v30 = vpop.permute.xlu1 %3760 }
 0x68e   : > { %v3766_v39 = vpop.permute.xlu0 %3765 }
 0x68f   : > { %v3771_v46 = vpop.permute.xlu1 %3770 }
 0x692   : > { %v3776_v63 = vpop.permute.xlu0 %3775 }
 0x693   : > { %v3781_v7 = vpop.permute.xlu1 %3780 }
 0x6e7   : > { %v4310_v44 = vpop.f32.mrb[0].mxu0 }
 0x6e8   : > { %v4314_v41 = vpop.f32.mrb[0].mxu1  ;;  %v3859_v54 = vadd.f32 %v4310_v44, %v3756_v28  ;;  %v3850_v14 = vpop.f32.mrb[1].mxu0 }
 0x6e9   : > { %v3875_v33 = vadd.f32 %v4314_v41, %v3776_v63  ;;  %v3866_v6 = vpop.f32.mrb[1].mxu1  ;;  %v3851_v59 = vadd.f32 %v3850_v14, %v3746_v49  ;;  %v4311_v19 = vpop.f32.mrb[2].mxu0 }
 0x6ea   : > { %v3867_v8 = vadd.f32 %v3866_v6, %v3766_v39  ;;  %v4315_v0 = vpop.f32.mrb[2].mxu1  ;;  %v3893_v29 = vadd.f32 %v3885_v50, %v3859_v54  ;;  %v3862_v43 = vadd.f32 %v4311_v19, %v3761_v30  ;;  %v3853_v36 = vpop.f32.mrb[3].mxu0 }
 0x6eb   : > { %v3897_v13 = vadd.f32 %v3889_v27, %v3875_v33  ;;  %v3878_v9 = vadd.f32 %v4315_v0, %v3781_v7  ;;  %v3869_v5 = vpop.f32.mrb[3].mxu1  ;;  %v3891_v32 = vadd.f32 %v3883_v51, %v3851_v59  ;;  %v3854_v48 = vadd.f32 %v3853_v36, %v3751_v61 }
 0x6ec   : > { %v3895_v45 = vadd.f32 %v3887_v58, %v3867_v8  ;;  %v3870_v47 = vadd.f32 %v3869_v5, %v3771_v46  ;;  %3901 = vst [vmem:[%s5030_s13 + $0x10] sm:$0xff] %v3893_v29  ;;  %v3894_v2 = vadd.f32 %v3886_v42, %v3862_v43 }
 0x6ed   : > { %3905 = vst [vmem:[%s5030_s13 + $0x30] sm:$0xff] %v3897_v13  ;;  %v3898_v3 = vadd.f32 %v3890_v52, %v3878_v9  ;;  %3899 = vst [vmem:[%s5030_s13] sm:$0xff] %v3891_v32  ;;  %v3892_v16 = vadd.f32 %v3884_v53, %v3854_v48 }
 0x6ee   : > { %3903 = vst [vmem:[%s5030_s13 + $0x20] sm:$0xff] %v3895_v45  ;;  %v3896_v18 = vadd.f32 %v3888_v17, %v3870_v47  ;;  %3902 = vst [vmem:[%s5030_s13 + $0x18] sm:$0xff] %v3894_v2 }
 0x6ef   : > { %3906 = vst [vmem:[%s5030_s13 + $0x38] sm:$0xff] %v3898_v3  ;;  %3900 = vst [vmem:[%s5030_s13 + $0x8] sm:$0xff] %v3892_v16 }
 0x6f0   : > { %3904 = vst [vmem:[%s5030_s13 + $0x28] sm:$0xff] %v3896_v18 }
 0x6f1   : > { %4703 = shalt.err (!%p4700_p10)
}
 0x6f2   : > { %s4704_s13 = scalar_lea.hbm %s6449_s20, 1024  ;;  %s4708_s10 = scalar_lea.hbm %s6522_s7, 4096 }
 0x6f3   : > { %p4705_p11 = scmp.ne.s32.totalorder %s6449_s20, %s4704_s13  ;;  %p4709_p0 = scmp.lt.u32.totalorder %s6449_s20, %s6522_s7 }
 0x6f4   : > { %p4710_p1 = scmp.lt.u32.totalorder %s4708_s10, %s4704_s13  ;;  %p4712_p4 = scmp.lt.u32.totalorder %s4704_s13, %s6449_s20 }
 0x6f5   : > { %p4706_p12 = pnand %p4705_p11, %p5000_p3 }
 0x6f6   : > { %p4711_p2 = por %p4710_p1, %p4709_p0 }
 0x6f7   : > { %p4707_p13 = pneg %p4706_p12 }
 0x6f8   : > { %p4713_p5 = por %p4712_p4, %p4711_p2 }
 0x6fa   : > { %p4714_p6 = pnand %p4713_p5, %p4707_p13 }
 0x6fc   : > { %4717 = shalt.err (!%p4714_p6)
}
 0x6fd   : > { %s4906_s12 = smov 128   ;;  %s4907_s18 = smov 256  }
 0x6fe   : > { %s4908_s21 = smov 8  }
 0x6ff   : > { %4332 = dma.vmem_to_hbm [thread:$0]  (%p5000_p3), %s6453_s27, 1024, %s6449_s20, %s6463_s22, %s4906_s12, %s4907_s18, %s4908_s21  }
 0x700 PF: > { %p4338_p7 = scmp.ge.s32.totalorder %s4840_s8, 2  ;;  %s3937_s23 = sand.u32 1, %s4812_s24  }
 0x701   : > { %s3938_s16 = scalar_lea.sflag [#allocation4], %s3937_s23 }
 0x702   : > { %p4335_p9 = pnand %p4338_p7, %p5009_p8 }
 0x704   : > { %4807 = dma.done.wait (!%p4335_p9), %s3938_s16, 1024  }
 0x705   : > { %4809 = vsyncadd (!%p4335_p9), %s3938_s16, 4294966272  ;;  %s20_s8 = sadd.s32 1, %s4840_s8   ;;  %s6734_s14 = sld [smem:[#allocation6_spill]] }
 0x706   : > { %p17_p10 = scmp.ge.s32.totalorder %s20_s8, 6   ;;  %s6735_s24 = smov %s4816_s25 }
 0x707   : > { %s6736_s25 = smov %s4820_s26  ;;  %s6737_s26 = smov %s5018_s19 }
 0x708   : > { %s6738_s27 = smov %s4832_s29  ;;  %s6739_s28 = smov %s4836_s30 }
 0x709   : > { %s6740_s29 = smov %s6743_s11  ;;  %19 = sbr.rel (!%p17_p10) target bundleno = 8 (0x8), region = 128 }
 0x70b   : > { %s6741_s30 = smov %s6734_s14 }
 0x710   :  { %3943 = vsyncpa [#allocation4], 1 }
 0x711   :  { %3945 = vsyncpa [#allocation4 + $0x1], 1 }

</bundles_post_ra>
